<compile_context>
chip_gen: v7x
topology: tpu7x:2x2x1
jax: 0.10.0
libtpu: 0.0.40
codegen_flags: <defaults>
</compile_context>

<pallas_src>
import functools

import jax
import jax.numpy as jnp
from jax import lax
from jax.experimental import pallas as pl
from jax.experimental.pallas import tpu as pltpu


_EXP_CLAMP = 60.0   # bounds positive exponents inside a diagonal sub-block


# ---------------------------------------------------------------------------
# Pallas kernel: chunked gated linear attention (GLA), GQA-aware
#
# Per head and timestep t (state S in R^{D x D}):
#   S_t = diag(exp(g_t)) @ S_{t-1} + (k_t * (1 - exp(g_t))) v_t^T
#   o_t = scale * q_t^T @ S_t
# ---------------------------------------------------------------------------
def gla_kernel(q_ref, k_ref, v_ref, g_ref, o_ref, h_ref, *, scale, sub_chunk):
    """One (kv-head, time-chunk) grid step.

    q_ref, g_ref, o_ref : (G, C, D)   G = query heads sharing this kv head
    k_ref, v_ref        : (C, D)      single kv head (GQA broadcast in-kernel)
    h_ref               : (G, D, D)   f32 scratch, recurrent state stored as S^T
    """
    c_idx = pl.program_id(1)

    @pl.when(c_idx == 0)
    def _():
        h_ref[...] = jnp.zeros_like(h_ref)

    cdt = q_ref.dtype                      # MXU operand dtype (bf16 fast path)
    f32 = jnp.float32

    g = g_ref[...].astype(f32)             # (G, C, D) log-decay, <= 0
    G, C, D = g.shape
    S = sub_chunk

    q = q_ref[...].astype(f32) * scale     # fold 1/sqrt(d) into q
    k = k_ref[...].astype(f32)             # (C, D)
    v_b = jnp.broadcast_to(v_ref[...][None], (G, C, D))      # (G, C, D) in cdt

    # RWKV6 key scaling — depends on the per-query-head decay, so done here.
    k_eff = k[None, :, :] * (1.0 - jnp.exp(g))                # (G, C, D) f32

    # Inclusive cumulative log-decay within the chunk: gc_i = sum_{t<=i} g_t.
    # Two bf16 tri-matmuls on a hi/lo split of g keep it accurate regardless
    # of how the MXU treats f32 matmuls.
    row = lax.broadcasted_iota(jnp.int32, (C, C), 0)
    col = lax.broadcasted_iota(jnp.int32, (C, C), 1)
    tri = jnp.broadcast_to((row >= col).astype(jnp.bfloat16)[None], (G, C, C))
    g_hi = g.astype(jnp.bfloat16)
    g_lo = (g - g_hi.astype(f32)).astype(jnp.bfloat16)
    gc = (jnp.einsum("gij,gjd->gid", tri, g_hi, preferred_element_type=f32)
          + jnp.einsum("gij,gjd->gid", tri, g_lo, preferred_element_type=f32))
    g_tot = gc[:, C - 1:C, :]              # (G, 1, D): total log-decay of chunk

    # ---- inter-chunk: contribution of the carried state S^T ----------------
    q_hat = q * jnp.exp(gc)                                   # exponents <= 0
    h_prev = h_ref[...]                                       # (G, D, D) f32
    o_inter = jnp.einsum("gcd,ged->gce", q_hat.astype(cdt), h_prev.astype(cdt),
                         preferred_element_type=f32)          # (G, C, D)

    # ---- intra-chunk causal attention in row sub-blocks of size S ----------
    srow = lax.broadcasted_iota(jnp.int32, (S, S), 0)
    scol = lax.broadcasted_iota(jnp.int32, (S, S), 1)
    diag_mask = (srow >= scol)[None]                          # (1, S, S)

    khat_past = None                       # columns < r0, at the current base
    gb_prev = None
    for s in range(C // S):
        r0, r1 = s * S, (s + 1) * S
        gc_s = gc[:, r0:r1, :]
        gb = gc_s[:, 0:1, :] - g[:, r0:r0 + 1, :]   # exclusive cum-decay at r0

        q_hat_s = q[:, r0:r1, :] * jnp.exp(gc_s - gb)                 # <= |q|
        khat_d = k_eff[:, r0:r1, :] * jnp.exp(
            jnp.minimum(gb - gc_s, _EXP_CLAMP))                       # finite

        a_d = jnp.einsum("gid,gjd->gij", q_hat_s.astype(cdt), khat_d.astype(cdt),
                         preferred_element_type=f32)                  # (G, S, S)
        a_d = jnp.where(diag_mask, a_d, 0.0)
        o_s = jnp.einsum("gij,gjd->gid", a_d.astype(cdt), v_b[:, r0:r1, :],
                         preferred_element_type=f32)                  # (G, S, D)

        if s > 0:
            # re-base the already seen columns onto this sub-block's base
            khat_past = khat_past * jnp.exp(gb - gb_prev)             # <= old
            a_p = jnp.einsum("gid,gjd->gij", q_hat_s.astype(cdt),
                             khat_past.astype(cdt), preferred_element_type=f32)
            o_s = o_s + jnp.einsum("gij,gjd->gid", a_p.astype(cdt),
                                   v_b[:, :r0, :], preferred_element_type=f32)

        o_ref[:, r0:r1, :] = (o_inter[:, r0:r1, :] + o_s).astype(o_ref.dtype)

        khat_past = khat_d if s == 0 else jnp.concatenate(
            [khat_past, khat_d], axis=1)
        gb_prev = gb

    # ---- carry state:  S^T <- exp(g_tot) * S^T + v^T (k_eff exp(g_tot-gc)) --
    kd = k_eff * jnp.exp(g_tot - gc)                                  # safe
    dh = jnp.einsum("gce,gcd->ged", v_b, kd.astype(cdt),
                    preferred_element_type=f32)                       # (G, D, D)
    h_ref[...] = jnp.exp(g_tot) * h_prev + dh


def chunk_gla(q, k, v, g, scale, chunk_size=128, sub_chunk=32):
    """RWKV6 gated linear attention, chunked, GQA-aware.

    q, g: (B, H, T, D);  k, v: (B, Hk, T, D);  g = per-query-head log-decay.
    Keys are scaled by (1 - exp(g)) and broadcast to query heads inside the
    kernel.  Returns (B, H, T, D) in q.dtype.
    """
    B, H, T, D = q.shape
    Hk = k.shape[1]
    assert H % Hk == 0, "num_heads must be a multiple of num_kv_heads"
    G = H // Hk

    def _round_up(x, m):
        return -(-x // m) * m

    C = min(chunk_size, _round_up(T, 8))
    Tp = _round_up(T, C)
    S = min(sub_chunk, C)
    while C % S:
        S //= 2

    g = g.astype(jnp.float32)
    if Tp != T:
        pad = ((0, 0), (0, 0), (0, Tp - T), (0, 0))
        q, k, v, g = (jnp.pad(a, pad) for a in (q, k, v, g))

    # group layout: q/g/out -> (B*Hk, G, T, D); k/v -> (B*Hk, T, D)
    qf = q.reshape(B * Hk, G, Tp, D)
    gf = g.reshape(B * Hk, G, Tp, D)
    kf = k.reshape(B * Hk, Tp, D)
    vf = v.reshape(B * Hk, Tp, D)

    io_spec = pl.BlockSpec((pl.Squeezed(), G, C, D), lambda b, c: (b, 0, c, 0))
    kv_spec = pl.BlockSpec((pl.Squeezed(), C, D), lambda b, c: (b, c, 0))

    out = pl.pallas_call(
        functools.partial(gla_kernel, scale=float(scale), sub_chunk=S),
        out_shape=jax.ShapeDtypeStruct((B * Hk, G, Tp, D), q.dtype),
        grid_spec=pltpu.PrefetchScalarGridSpec(
            num_scalar_prefetch=0,
            grid=(B * Hk, Tp // C),
            in_specs=[io_spec, kv_spec, kv_spec, io_spec],
            out_specs=io_spec,
            scratch_shapes=[pltpu.VMEM((G, D, D), jnp.float32)],
        ),
        compiler_params=pltpu.CompilerParams(
            dimension_semantics=("parallel", "arbitrary")),
    )(qf, kf, vf, gf)

    out = out.reshape(B, H, Tp, D)
    return out[:, :, :T, :] if Tp != T else out


# Pure-JAX reference recurrence (correctness check only).
def gla_reference(q, k, v, g, scale, **_):
    B, H, T, Dh = q.shape
    Hk = k.shape[1]
    G = H // Hk
    q = q.astype(jnp.float32)
    k = jnp.repeat(k.astype(jnp.float32), G, axis=1)
    v = jnp.repeat(v.astype(jnp.float32), G, axis=1)
    g = g.astype(jnp.float32)
    k = k * (1.0 - jnp.exp(g))

    def step(h, inp):
        qt, kt, vt, gt = inp                      # each (B, H, Dh)
        h = h * jnp.exp(gt)[..., None] + kt[..., None] * vt[..., None, :]
        ot = scale * jnp.einsum("bhk,bhkv->bhv", qt, h)
        return h, ot

    h0 = jnp.zeros((B, H, Dh, Dh), jnp.float32)
    xs = tuple(jnp.moveaxis(t, 2, 0) for t in (q, k, v, g))
    _, o = lax.scan(step, h0, xs)
    return jnp.moveaxis(o, 0, 2)


# ---------------------------------------------------------------------------
# RWKV6Attention forward (no cache, no dropout — eval path, use_cache=False)
# ---------------------------------------------------------------------------
def rwkv6_attention_forward(params, x, cfg, attn_impl=chunk_gla,
                            compute_dtype=jnp.bfloat16):
    B, T, D = x.shape
    H, Hk, hd = cfg["num_heads"], cfg["num_kv_heads"], cfg["head_dim"]

    # token shift:  F.pad(x, (0, 0, 1, -1))  ==  shift right by one along time
    xprev = jnp.concatenate([jnp.zeros((B, 1, D), x.dtype), x[:, :-1]], axis=1)
    dxprev = xprev - x

    # data-dependent token-mixing LoRA
    DM = params["time_maa_w2"].shape[1]
    xxx = x + dxprev * params["time_maa_x"]
    xxx = jnp.tanh(xxx @ params["time_maa_w1"])              # (B, T, 5*DM)
    xxx = xxx.reshape(B * T, 5, DM).transpose(1, 0, 2)       # (5, B*T, DM)
    xxx = jnp.einsum("sbd,sde->sbe", xxx, params["time_maa_w2"])
    xxx = xxx.reshape(5, B, T, D)
    mr, mk, mv, mw, mg = xxx[0], xxx[1], xxx[2], xxx[3], xxx[4]

    xr = x + dxprev * (params["time_maa_r"] + mr)
    xk = x + dxprev * (params["time_maa_k"] + mk)
    xv = x + dxprev * (params["time_maa_v"] + mv)
    xw = x + dxprev * (params["time_maa_w"] + mw)
    xg = x + dxprev * (params["time_maa_g"] + mg)

    q = xr @ params["Wq"].T + params["bq"]
    k = xk @ params["Wk"].T + params["bk"]
    v = xv @ params["Wv"].T + params["bv"]
    decay = (params["time_decay"]
             + jnp.tanh(xw @ params["time_decay_w1"]) @ params["time_decay_w2"])
    gate = jax.nn.silu(xg @ params["Wg"].T + params["bg"])

    q = q.reshape(B, T, H, hd).transpose(0, 2, 1, 3)
    k = k.reshape(B, T, Hk, hd).transpose(0, 2, 1, 3)
    v = v.reshape(B, T, Hk, hd).transpose(0, 2, 1, 3)
    decay = decay.reshape(B, T, H, hd).transpose(0, 2, 1, 3)

    g_log = -jnp.exp(decay.astype(jnp.float32))     # per-query-head log decay

    # NOTE: GQA repeat_kv and the RWKV6 key scaling k*(1-exp(g)) both happen
    # inside the Pallas kernel, so K/V are never expanded to H heads in HBM.
    scale = float(hd) ** -0.5
    attn = attn_impl(q.astype(compute_dtype), k.astype(compute_dtype),
                     v.astype(compute_dtype), g_log, scale)     # (B, H, T, hd)

    attn = attn.astype(jnp.float32).transpose(0, 2, 1, 3).reshape(B, T, H * hd)
    out = (attn * gate) @ params["Wo"].T
    # TODO(synk): RWKV6State cache update (kv_state / shift_state) and the
    # empty attn_weights placeholder are host-side bookkeeping; not represented.
    return out


# ---------------------------------------------------------------------------
# Deterministic parameter construction (shapes follow the module's __init__)
# ---------------------------------------------------------------------------
def make_params(key, D, H, Hk, hd, n_layer, layer_idx):
    dim_att = H * hd
    DM = 32 if D < 4096 else 64          # D_MIX_LORA
    DD = 64 if D < 4096 else 128         # D_DECAY_LORA
    ks = jax.random.split(key, 14)

    def u(k, shape, s):
        return jax.random.uniform(k, shape, jnp.float32, -s, s)

    ratio_0_to_1 = layer_idx / (n_layer - 1)
    n = jnp.arange(dim_att, dtype=jnp.float32)
    decay_speed = -6.0 + 5.0 * (n / (dim_att - 1)) ** (0.7 + 1.3 * ratio_0_to_1)

    return dict(
        Wq=u(ks[0], (H * hd, D), 0.05), bq=u(ks[1], (H * hd,), 0.05),
        Wk=u(ks[2], (Hk * hd, D), 0.05), bk=u(ks[3], (Hk * hd,), 0.05),
        Wv=u(ks[4], (Hk * hd, D), 0.05), bv=u(ks[5], (Hk * hd,), 0.05),
        Wo=u(ks[6], (D, H * hd), 0.05),
        Wg=u(ks[7], (H * hd, D), 0.01),
        bg=jnp.full((H * hd,), 1.227, jnp.float32),
        time_maa_x=jnp.ones((1, 1, D), jnp.float32),
        time_maa_r=jnp.zeros((1, 1, D), jnp.float32),
        time_maa_k=jnp.zeros((1, 1, D), jnp.float32),
        time_maa_v=jnp.zeros((1, 1, D), jnp.float32),
        time_maa_w=jnp.zeros((1, 1, D), jnp.float32),
        time_maa_g=jnp.zeros((1, 1, D), jnp.float32),
        time_maa_w1=u(ks[8], (D, 5 * DM), 0.01),
        time_maa_w2=u(ks[9], (5, DM, D), 0.01),
        time_decay=decay_speed.reshape(1, 1, dim_att),
        time_decay_w1=u(ks[10], (D, DD), 0.01),
        time_decay_w2=u(ks[11], (DD, dim_att), 0.01),
    ), ks[12]


if __name__ == "__main__":
    key = jax.random.PRNGKey(0)

    # ---- 1) standalone GLA kernel check at realistic chunked sizes --------
    Bq, Hq, Hkq, Tq, Dq = 1, 4, 2, 512, 64
    kq, kk, kv, kg, key = jax.random.split(key, 5)
    q = jax.random.normal(kq, (Bq, Hq, Tq, Dq), jnp.float32)
    k = jax.random.normal(kk, (Bq, Hkq, Tq, Dq), jnp.float32)
    v = jax.random.normal(kv, (Bq, Hkq, Tq, Dq), jnp.float32)
    g = -jnp.exp(jax.random.uniform(kg, (Bq, Hq, Tq, Dq), jnp.float32, -6.0, 0.0))
    scale = Dq ** -0.5

    ref = jax.block_until_ready(gla_reference(q, k, v, g, scale))
    out_f32 = jax.block_until_ready(chunk_gla(q, k, v, g, scale))
    out_bf16 = jax.block_until_ready(
        chunk_gla(q.astype(jnp.bfloat16), k.astype(jnp.bfloat16),
                  v.astype(jnp.bfloat16), g, scale)).astype(jnp.float32)

    den = float(jnp.max(jnp.abs(ref))) + 1e-6
    err_f32 = float(jnp.max(jnp.abs(out_f32 - ref))) / den
    err_bf16 = float(jnp.max(jnp.abs(out_bf16 - ref))) / den
    assert err_f32 < 3e-2, f"f32 GLA kernel mismatch: rel err {err_f32}"
    assert err_bf16 < 7e-2, f"bf16 GLA kernel mismatch: rel err {err_bf16}"

    # ---- 2) full RWKV6Attention forward at small module-level shapes ------
    B, T, D = 2, 8, 64
    H, Hk = 4, 2
    hd = D // H
    n_layer, layer_idx = 4, 1
    params, xkey = make_params(jax.random.PRNGKey(0), D, H, Hk, hd,
                               n_layer, layer_idx)
    cfg = dict(num_heads=H, num_kv_heads=Hk, head_dim=hd)
    x = jax.random.normal(xkey, (B, T, D), jnp.float32)

    out = jax.block_until_ready(
        rwkv6_attention_forward(params, x, cfg, attn_impl=chunk_gla,
                                compute_dtype=jnp.bfloat16))
    ref_out = jax.block_until_ready(
        rwkv6_attention_forward(params, x, cfg, attn_impl=gla_reference,
                                compute_dtype=jnp.float32))

    den = float(jnp.max(jnp.abs(ref_out))) + 1e-6
    err = float(jnp.max(jnp.abs(out - ref_out))) / den
    assert err < 5e-2, f"module forward mismatch: rel err {err}"
    print("KERNEL_OK")
</pallas_src>

<mosaic_0001>
module attributes {stable_mosaic.version = 11 : i64} {
  func.func @gla_kernel(%arg0: i32, %arg1: i32, %arg2: memref<1x2x128x64xf32, #tpu.memory_space<vmem>>, %arg3: memref<1x128x64xf32, #tpu.memory_space<vmem>>, %arg4: memref<1x128x64xf32, #tpu.memory_space<vmem>>, %arg5: memref<1x2x128x64xf32, #tpu.memory_space<vmem>>, %arg6: memref<1x2x128x64xf32, #tpu.memory_space<vmem>>, %arg7: memref<2x64x64xf32, #tpu.memory_space<vmem>>) attributes {dimension_semantics = [#tpu.dimension_semantics<parallel>, #tpu.dimension_semantics<arbitrary>], iteration_bounds = array<i64: 2, 4>, scalar_prefetch = 0 : i64, scratch_operands = 1 : i64, tpu.core_type = #tpu.core_type<tc>, window_params = [{transform_indices = @transform_0, window_bounds = array<i64: 1, 2, 128, 64>}, {transform_indices = @transform_1, window_bounds = array<i64: 1, 128, 64>}, {transform_indices = @transform_2, window_bounds = array<i64: 1, 128, 64>}, {transform_indices = @transform_3, window_bounds = array<i64: 1, 2, 128, 64>}, {transform_indices = @transform_4, window_bounds = array<i64: 1, 2, 128, 64>}]} {
    %c0_i32 = arith.constant 0 : i32
    %0 = arith.cmpi eq, %arg1, %c0_i32 : i32
    %1 = arith.extui %0 : i1 to i32
    %c0_i32_0 = arith.constant 0 : i32
    %2 = arith.cmpi ne, %1, %c0_i32_0 : i32
    scf.if %2 {
      %cst_60 = arith.constant 0.000000e+00 : f32
      %195 = vector.broadcast %cst_60 : f32 to vector<2x64x64xf32>
      %c0_61 = arith.constant 0 : index
      %c0_62 = arith.constant 0 : index
      %c0_63 = arith.constant 0 : index
      %196 = vector.load %arg7[%c0_61, %c0_62, %c0_63] : memref<2x64x64xf32, #tpu.memory_space<vmem>>, vector<2x64x64xf32>
      tpu.vector_store %arg7[%c0_61, %c0_62, %c0_63], %195 {strides = array<i32>} : memref<2x64x64xf32, #tpu.memory_space<vmem>>, vector<2x64x64xf32>,
    } else {
    }
    %c0 = arith.constant 0 : index
    %c0_1 = arith.constant 0 : index
    %c0_2 = arith.constant 0 : index
    %c0_3 = arith.constant 0 : index
    %3 = vector.load %arg5[%c0, %c0_1, %c0_2, %c0_3] : memref<1x2x128x64xf32, #tpu.memory_space<vmem>>, vector<1x2x128x64xf32>
    %4 = vector.shape_cast %3 : vector<1x2x128x64xf32> to vector<2x128x64xf32>
    %c0_4 = arith.constant 0 : index
    %c0_5 = arith.constant 0 : index
    %c0_6 = arith.constant 0 : index
    %c0_7 = arith.constant 0 : index
    %5 = vector.load %arg2[%c0_4, %c0_5, %c0_6, %c0_7] : memref<1x2x128x64xf32, #tpu.memory_space<vmem>>, vector<1x2x128x64xf32>
    %6 = vector.shape_cast %5 : vector<1x2x128x64xf32> to vector<2x128x64xf32>
    %cst = arith.constant 1.250000e-01 : f32
    %7 = vector.broadcast %cst : f32 to vector<2x128x64xf32>
    %8 = arith.mulf %6, %7 : vector<2x128x64xf32>
    %c0_8 = arith.constant 0 : index
    %c0_9 = arith.constant 0 : index
    %c0_10 = arith.constant 0 : index
    %9 = vector.load %arg3[%c0_8, %c0_9, %c0_10] : memref<1x128x64xf32, #tpu.memory_space<vmem>>, vector<1x128x64xf32>
    %10 = vector.shape_cast %9 : vector<1x128x64xf32> to vector<128x64xf32>
    %c0_11 = arith.constant 0 : index
    %c0_12 = arith.constant 0 : index
    %c0_13 = arith.constant 0 : index
    %11 = vector.load %arg4[%c0_11, %c0_12, %c0_13] : memref<1x128x64xf32, #tpu.memory_space<vmem>>, vector<1x128x64xf32>
    %12 = vector.shape_cast %11 : vector<1x128x64xf32> to vector<128x64xf32>
    %13 = vector.shape_cast %12 : vector<128x64xf32> to vector<1x128x64xf32>
    %14 = vector.shape_cast %13 : vector<1x128x64xf32> to vector<1x128x64xf32>
    %15 = vector.broadcast %14 : vector<1x128x64xf32> to vector<2x128x64xf32>
    %16 = vector.shape_cast %10 : vector<128x64xf32> to vector<1x128x64xf32>
    %17 = math.exp %4 : vector<2x128x64xf32>
    %cst_14 = arith.constant 1.000000e+00 : f32
    %18 = vector.broadcast %cst_14 : f32 to vector<2x128x64xf32>
    %19 = arith.subf %18, %17 : vector<2x128x64xf32>
    %20 = vector.broadcast %16 : vector<1x128x64xf32> to vector<2x128x64xf32>
    %21 = arith.mulf %20, %19 : vector<2x128x64xf32>
    %22 = tpu.iota {dimensions = array<i32: 0>} : vector<128x128xi32>
    %23 = tpu.iota {dimensions = array<i32: 1>} : vector<128x128xi32>
    %24 = arith.cmpi sge, %22, %23 : vector<128x128xi32>
    %25 = arith.extui %24 : vector<128x128xi1> to vector<128x128xi32>
    %26 = arith.sitofp %25 : vector<128x128xi32> to vector<128x128xf32>
    %27 = arith.truncf %26 : vector<128x128xf32> to vector<128x128xbf16>
    %28 = vector.shape_cast %27 : vector<128x128xbf16> to vector<1x128x128xbf16>
    %29 = vector.shape_cast %28 : vector<1x128x128xbf16> to vector<1x128x128xbf16>
    %30 = vector.broadcast %29 : vector<1x128x128xbf16> to vector<2x128x128xbf16>
    %31 = arith.truncf %4 : vector<2x128x64xf32> to vector<2x128x64xbf16>
    %32 = arith.extf %31 : vector<2x128x64xbf16> to vector<2x128x64xf32>
    %33 = arith.subf %4, %32 : vector<2x128x64xf32>
    %34 = arith.truncf %33 : vector<2x128x64xf32> to vector<2x128x64xbf16>
    "tpu.trace_start"() <{level = 10 : i32, message = "gij,gjd->gid"}> : () -> ()
    %cst_15 = arith.constant dense<0.000000e+00> : vector<2x128x64xf32>
    %35 = tpu.matmul %30, %31, %cst_15 {dimension_numbers = #tpu.dot_dimension_numbers<[2], [1], [1], [2], [0, 0, 0, 1, 1, 2], [0], [0]>} : vector<2x128x128xbf16>, vector<2x128x64xbf16>, vector<2x128x64xf32> -> vector<2x128x64xf32>
    %cst_16 = arith.constant dense<0.000000e+00> : vector<2x128x64xf32>
    %36 = tpu.matmul %30, %34, %cst_16 {dimension_numbers = #tpu.dot_dimension_numbers<[2], [1], [1], [2], [0, 0, 0, 1, 1, 2], [0], [0]>} : vector<2x128x128xbf16>, vector<2x128x64xbf16>, vector<2x128x64xf32> -> vector<2x128x64xf32>
    "tpu.trace_stop"() : () -> ()
    %37 = arith.addf %35, %36 : vector<2x128x64xf32>
    %38 = vector.extract_strided_slice %37 {offsets = [0, 127, 0], sizes = [2, 1, 64], strides = [1, 1, 1]} : vector<2x128x64xf32> to vector<2x1x64xf32>
    %39 = math.exp %37 : vector<2x128x64xf32>
    %40 = arith.mulf %8, %39 : vector<2x128x64xf32>
    %c0_17 = arith.constant 0 : index
    %c0_18 = arith.constant 0 : index
    %c0_19 = arith.constant 0 : index
    %41 = vector.load %arg7[%c0_17, %c0_18, %c0_19] : memref<2x64x64xf32, #tpu.memory_space<vmem>>, vector<2x64x64xf32>
    "tpu.trace_start"() <{level = 10 : i32, message = "gcd,ged->gce"}> : () -> ()
    %cst_20 = arith.constant dense<0.000000e+00> : vector<2x128x64xf32>
    %42 = tpu.matmul %40, %41, %cst_20 {dimension_numbers = #tpu.dot_dimension_numbers<[2], [2], [1], [1], [0, 0, 0, 1, 1, 1], [0], [0]>} : vector<2x128x64xf32>, vector<2x64x64xf32>, vector<2x128x64xf32> -> vector<2x128x64xf32>
    "tpu.trace_stop"() : () -> ()
    %43 = tpu.iota {dimensions = array<i32: 0>} : vector<32x32xi32>
    %44 = tpu.iota {dimensions = array<i32: 1>} : vector<32x32xi32>
    %45 = arith.cmpi sge, %43, %44 : vector<32x32xi32>
    %46 = vector.shape_cast %45 : vector<32x32xi1> to vector<1x32x32xi1>
    %47 = vector.extract_strided_slice %37 {offsets = [0, 0, 0], sizes = [2, 32, 64], strides = [1, 1, 1]} : vector<2x128x64xf32> to vector<2x32x64xf32>
    %48 = vector.extract_strided_slice %47 {offsets = [0, 0, 0], sizes = [2, 1, 64], strides = [1, 1, 1]} : vector<2x32x64xf32> to vector<2x1x64xf32>
    %49 = vector.extract_strided_slice %4 {offsets = [0, 0, 0], sizes = [2, 1, 64], strides = [1, 1, 1]} : vector<2x128x64xf32> to vector<2x1x64xf32>
    %50 = arith.subf %48, %49 : vector<2x1x64xf32>
    %51 = vector.extract_strided_slice %8 {offsets = [0, 0, 0], sizes = [2, 32, 64], strides = [1, 1, 1]} : vector<2x128x64xf32> to vector<2x32x64xf32>
    %52 = vector.broadcast %50 : vector<2x1x64xf32> to vector<2x32x64xf32>
    %53 = arith.subf %47, %52 : vector<2x32x64xf32>
    %54 = math.exp %53 : vector<2x32x64xf32>
    %55 = arith.mulf %51, %54 : vector<2x32x64xf32>
    %56 = vector.extract_strided_slice %21 {offsets = [0, 0, 0], sizes = [2, 32, 64], strides = [1, 1, 1]} : vector<2x128x64xf32> to vector<2x32x64xf32>
    %57 = vector.broadcast %50 : vector<2x1x64xf32> to vector<2x32x64xf32>
    %58 = arith.subf %57, %47 : vector<2x32x64xf32>
    %cst_21 = arith.constant 6.000000e+01 : f32
    %59 = vector.broadcast %cst_21 : f32 to vector<2x32x64xf32>
    %60 = arith.minimumf %58, %59 : vector<2x32x64xf32>
    %61 = math.exp %60 : vector<2x32x64xf32>
    %62 = arith.mulf %56, %61 : vector<2x32x64xf32>
    "tpu.trace_start"() <{level = 10 : i32, message = "gid,gjd->gij"}> : () -> ()
    %cst_22 = arith.constant dense<0.000000e+00> : vector<2x32x32xf32>
    %63 = tpu.matmul %55, %62, %cst_22 {dimension_numbers = #tpu.dot_dimension_numbers<[2], [2], [1], [1], [0, 0, 0, 1, 1, 1], [0], [0]>} : vector<2x32x64xf32>, vector<2x32x64xf32>, vector<2x32x32xf32> -> vector<2x32x32xf32>
    %cst_23 = arith.constant 0.000000e+00 : f32
    "tpu.trace_stop"() : () -> ()
    %64 = vector.shape_cast %46 : vector<1x32x32xi1> to vector<1x32x32xi1>
    %65 = vector.broadcast %64 : vector<1x32x32xi1> to vector<2x32x32xi1>
    %66 = vector.broadcast %cst_23 : f32 to vector<2x32x32xf32>
    %67 = arith.select %65, %63, %66 : vector<2x32x32xi1>, vector<2x32x32xf32>
    %68 = vector.extract_strided_slice %15 {offsets = [0, 0, 0], sizes = [2, 32, 64], strides = [1, 1, 1]} : vector<2x128x64xf32> to vector<2x32x64xf32>
    "tpu.trace_start"() <{level = 10 : i32, message = "gij,gjd->gid"}> : () -> ()
    %cst_24 = arith.constant dense<0.000000e+00> : vector<2x32x64xf32>
    %69 = tpu.matmul %67, %68, %cst_24 {dimension_numbers = #tpu.dot_dimension_numbers<[2], [1], [1], [2], [0, 0, 0, 1, 1, 2], [0], [0]>} : vector<2x32x32xf32>, vector<2x32x64xf32>, vector<2x32x64xf32> -> vector<2x32x64xf32>
    "tpu.trace_stop"() : () -> ()
    %70 = vector.extract_strided_slice %42 {offsets = [0, 0, 0], sizes = [2, 32, 64], strides = [1, 1, 1]} : vector<2x128x64xf32> to vector<2x32x64xf32>
    %71 = arith.addf %70, %69 : vector<2x32x64xf32>
    %c0_25 = arith.constant 0 : index
    %c0_26 = arith.constant 0 : index
    %c0_27 = arith.constant 0 : index
    %c0_28 = arith.constant 0 : index
    %72 = vector.load %arg6[%c0_25, %c0_26, %c0_27, %c0_28] : memref<1x2x128x64xf32, #tpu.memory_space<vmem>>, vector<1x2x32x64xf32>
    %73 = vector.shape_cast %72 : vector<1x2x32x64xf32> to vector<2x32x64xf32>
    %74 = vector.shape_cast %71 : vector<2x32x64xf32> to vector<1x2x32x64xf32>
    tpu.vector_store %arg6[%c0_25, %c0_26, %c0_27, %c0_28], %74 {strides = array<i32>} : memref<1x2x128x64xf32, #tpu.memory_space<vmem>>, vector<1x2x32x64xf32>,
    %75 = vector.extract_strided_slice %37 {offsets = [0, 32, 0], sizes = [2, 32, 64], strides = [1, 1, 1]} : vector<2x128x64xf32> to vector<2x32x64xf32>
    %76 = vector.extract_strided_slice %75 {offsets = [0, 0, 0], sizes = [2, 1, 64], strides = [1, 1, 1]} : vector<2x32x64xf32> to vector<2x1x64xf32>
    %77 = vector.extract_strided_slice %4 {offsets = [0, 32, 0], sizes = [2, 1, 64], strides = [1, 1, 1]} : vector<2x128x64xf32> to vector<2x1x64xf32>
    %78 = arith.subf %76, %77 : vector<2x1x64xf32>
    %79 = vector.extract_strided_slice %8 {offsets = [0, 32, 0], sizes = [2, 32, 64], strides = [1, 1, 1]} : vector<2x128x64xf32> to vector<2x32x64xf32>
    %80 = vector.broadcast %78 : vector<2x1x64xf32> to vector<2x32x64xf32>
    %81 = arith.subf %75, %80 : vector<2x32x64xf32>
    %82 = math.exp %81 : vector<2x32x64xf32>
    %83 = arith.mulf %79, %82 : vector<2x32x64xf32>
    %84 = vector.extract_strided_slice %21 {offsets = [0, 32, 0], sizes = [2, 32, 64], strides = [1, 1, 1]} : vector<2x128x64xf32> to vector<2x32x64xf32>
    %85 = vector.broadcast %78 : vector<2x1x64xf32> to vector<2x32x64xf32>
    %86 = arith.subf %85, %75 : vector<2x32x64xf32>
    %cst_29 = arith.constant 6.000000e+01 : f32
    %87 = vector.broadcast %cst_29 : f32 to vector<2x32x64xf32>
    %88 = arith.minimumf %86, %87 : vector<2x32x64xf32>
    %89 = math.exp %88 : vector<2x32x64xf32>
    %90 = arith.mulf %84, %89 : vector<2x32x64xf32>
    "tpu.trace_start"() <{level = 10 : i32, message = "gid,gjd->gij"}> : () -> ()
    %cst_30 = arith.constant dense<0.000000e+00> : vector<2x32x32xf32>
    %91 = tpu.matmul %83, %90, %cst_30 {dimension_numbers = #tpu.dot_dimension_numbers<[2], [2], [1], [1], [0, 0, 0, 1, 1, 1], [0], [0]>} : vector<2x32x64xf32>, vector<2x32x64xf32>, vector<2x32x32xf32> -> vector<2x32x32xf32>
    %cst_31 = arith.constant 0.000000e+00 : f32
    "tpu.trace_stop"() : () -> ()
    %92 = vector.shape_cast %46 : vector<1x32x32xi1> to vector<1x32x32xi1>
    %93 = vector.broadcast %92 : vector<1x32x32xi1> to vector<2x32x32xi1>
    %94 = vector.broadcast %cst_31 : f32 to vector<2x32x32xf32>
    %95 = arith.select %93, %91, %94 : vector<2x32x32xi1>, vector<2x32x32xf32>
    %96 = vector.extract_strided_slice %15 {offsets = [0, 32, 0], sizes = [2, 32, 64], strides = [1, 1, 1]} : vector<2x128x64xf32> to vector<2x32x64xf32>
    "tpu.trace_start"() <{level = 10 : i32, message = "gij,gjd->gid"}> : () -> ()
    %cst_32 = arith.constant dense<0.000000e+00> : vector<2x32x64xf32>
    %97 = tpu.matmul %95, %96, %cst_32 {dimension_numbers = #tpu.dot_dimension_numbers<[2], [1], [1], [2], [0, 0, 0, 1, 1, 2], [0], [0]>} : vector<2x32x32xf32>, vector<2x32x64xf32>, vector<2x32x64xf32> -> vector<2x32x64xf32>
    "tpu.trace_stop"() : () -> ()
    %98 = arith.subf %78, %50 : vector<2x1x64xf32>
    %99 = math.exp %98 : vector<2x1x64xf32>
    %100 = vector.broadcast %99 : vector<2x1x64xf32> to vector<2x32x64xf32>
    %101 = arith.mulf %62, %100 : vector<2x32x64xf32>
    "tpu.trace_start"() <{level = 10 : i32, message = "gid,gjd->gij"}> : () -> ()
    %cst_33 = arith.constant dense<0.000000e+00> : vector<2x32x32xf32>
    %102 = tpu.matmul %83, %101, %cst_33 {dimension_numbers = #tpu.dot_dimension_numbers<[2], [2], [1], [1], [0, 0, 0, 1, 1, 1], [0], [0]>} : vector<2x32x64xf32>, vector<2x32x64xf32>, vector<2x32x32xf32> -> vector<2x32x32xf32>
    "tpu.trace_stop"() : () -> ()
    %103 = vector.extract_strided_slice %15 {offsets = [0, 0, 0], sizes = [2, 32, 64], strides = [1, 1, 1]} : vector<2x128x64xf32> to vector<2x32x64xf32>
    "tpu.trace_start"() <{level = 10 : i32, message = "gij,gjd->gid"}> : () -> ()
    %cst_34 = arith.constant dense<0.000000e+00> : vector<2x32x64xf32>
    %104 = tpu.matmul %102, %103, %cst_34 {dimension_numbers = #tpu.dot_dimension_numbers<[2], [1], [1], [2], [0, 0, 0, 1, 1, 2], [0], [0]>} : vector<2x32x32xf32>, vector<2x32x64xf32>, vector<2x32x64xf32> -> vector<2x32x64xf32>
    "tpu.trace_stop"() : () -> ()
    %105 = arith.addf %97, %104 : vector<2x32x64xf32>
    %106 = vector.extract_strided_slice %42 {offsets = [0, 32, 0], sizes = [2, 32, 64], strides = [1, 1, 1]} : vector<2x128x64xf32> to vector<2x32x64xf32>
    %107 = arith.addf %106, %105 : vector<2x32x64xf32>
    %c0_35 = arith.constant 0 : index
    %c0_36 = arith.constant 0 : index
    %c32 = arith.constant 32 : index
    %c0_37 = arith.constant 0 : index
    %108 = vector.load %arg6[%c0_35, %c0_36, %c32, %c0_37] : memref<1x2x128x64xf32, #tpu.memory_space<vmem>>, vector<1x2x32x64xf32>
    %109 = vector.shape_cast %108 : vector<1x2x32x64xf32> to vector<2x32x64xf32>
    %110 = vector.shape_cast %107 : vector<2x32x64xf32> to vector<1x2x32x64xf32>
    tpu.vector_store %arg6[%c0_35, %c0_36, %c32, %c0_37], %110 {strides = array<i32>} : memref<1x2x128x64xf32, #tpu.memory_space<vmem>>, vector<1x2x32x64xf32>,
    %111 = tpu.concatenate %101, %90 in 1 : vector<2x32x64xf32>, vector<2x32x64xf32> -> vector<2x64x64xf32>
    %112 = vector.extract_strided_slice %37 {offsets = [0, 64, 0], sizes = [2, 32, 64], strides = [1, 1, 1]} : vector<2x128x64xf32> to vector<2x32x64xf32>
    %113 = vector.extract_strided_slice %112 {offsets = [0, 0, 0], sizes = [2, 1, 64], strides = [1, 1, 1]} : vector<2x32x64xf32> to vector<2x1x64xf32>
    %114 = vector.extract_strided_slice %4 {offsets = [0, 64, 0], sizes = [2, 1, 64], strides = [1, 1, 1]} : vector<2x128x64xf32> to vector<2x1x64xf32>
    %115 = arith.subf %113, %114 : vector<2x1x64xf32>
    %116 = vector.extract_strided_slice %8 {offsets = [0, 64, 0], sizes = [2, 32, 64], strides = [1, 1, 1]} : vector<2x128x64xf32> to vector<2x32x64xf32>
    %117 = vector.broadcast %115 : vector<2x1x64xf32> to vector<2x32x64xf32>
    %118 = arith.subf %112, %117 : vector<2x32x64xf32>
    %119 = math.exp %118 : vector<2x32x64xf32>
    %120 = arith.mulf %116, %119 : vector<2x32x64xf32>
    %121 = vector.extract_strided_slice %21 {offsets = [0, 64, 0], sizes = [2, 32, 64], strides = [1, 1, 1]} : vector<2x128x64xf32> to vector<2x32x64xf32>
    %122 = vector.broadcast %115 : vector<2x1x64xf32> to vector<2x32x64xf32>
    %123 = arith.subf %122, %112 : vector<2x32x64xf32>
    %cst_38 = arith.constant 6.000000e+01 : f32
    %124 = vector.broadcast %cst_38 : f32 to vector<2x32x64xf32>
    %125 = arith.minimumf %123, %124 : vector<2x32x64xf32>
    %126 = math.exp %125 : vector<2x32x64xf32>
    %127 = arith.mulf %121, %126 : vector<2x32x64xf32>
    "tpu.trace_start"() <{level = 10 : i32, message = "gid,gjd->gij"}> : () -> ()
    %cst_39 = arith.constant dense<0.000000e+00> : vector<2x32x32xf32>
    %128 = tpu.matmul %120, %127, %cst_39 {dimension_numbers = #tpu.dot_dimension_numbers<[2], [2], [1], [1], [0, 0, 0, 1, 1, 1], [0], [0]>} : vector<2x32x64xf32>, vector<2x32x64xf32>, vector<2x32x32xf32> -> vector<2x32x32xf32>
    %cst_40 = arith.constant 0.000000e+00 : f32
    "tpu.trace_stop"() : () -> ()
    %129 = vector.shape_cast %46 : vector<1x32x32xi1> to vector<1x32x32xi1>
    %130 = vector.broadcast %129 : vector<1x32x32xi1> to vector<2x32x32xi1>
    %131 = vector.broadcast %cst_40 : f32 to vector<2x32x32xf32>
    %132 = arith.select %130, %128, %131 : vector<2x32x32xi1>, vector<2x32x32xf32>
    %133 = vector.extract_strided_slice %15 {offsets = [0, 64, 0], sizes = [2, 32, 64], strides = [1, 1, 1]} : vector<2x128x64xf32> to vector<2x32x64xf32>
    "tpu.trace_start"() <{level = 10 : i32, message = "gij,gjd->gid"}> : () -> ()
    %cst_41 = arith.constant dense<0.000000e+00> : vector<2x32x64xf32>
    %134 = tpu.matmul %132, %133, %cst_41 {dimension_numbers = #tpu.dot_dimension_numbers<[2], [1], [1], [2], [0, 0, 0, 1, 1, 2], [0], [0]>} : vector<2x32x32xf32>, vector<2x32x64xf32>, vector<2x32x64xf32> -> vector<2x32x64xf32>
    "tpu.trace_stop"() : () -> ()
    %135 = arith.subf %115, %78 : vector<2x1x64xf32>
    %136 = math.exp %135 : vector<2x1x64xf32>
    %137 = vector.broadcast %136 : vector<2x1x64xf32> to vector<2x64x64xf32>
    %138 = arith.mulf %111, %137 : vector<2x64x64xf32>
    "tpu.trace_start"() <{level = 10 : i32, message = "gid,gjd->gij"}> : () -> ()
    %cst_42 = arith.constant dense<0.000000e+00> : vector<2x32x64xf32>
    %139 = tpu.matmul %120, %138, %cst_42 {dimension_numbers = #tpu.dot_dimension_numbers<[2], [2], [1], [1], [0, 0, 0, 1, 1, 1], [0], [0]>} : vector<2x32x64xf32>, vector<2x64x64xf32>, vector<2x32x64xf32> -> vector<2x32x64xf32>
    "tpu.trace_stop"() : () -> ()
    %140 = vector.extract_strided_slice %15 {offsets = [0, 0, 0], sizes = [2, 64, 64], strides = [1, 1, 1]} : vector<2x128x64xf32> to vector<2x64x64xf32>
    "tpu.trace_start"() <{level = 10 : i32, message = "gij,gjd->gid"}> : () -> ()
    %cst_43 = arith.constant dense<0.000000e+00> : vector<2x32x64xf32>
    %141 = tpu.matmul %139, %140, %cst_43 {dimension_numbers = #tpu.dot_dimension_numbers<[2], [1], [1], [2], [0, 0, 0, 1, 1, 2], [0], [0]>} : vector<2x32x64xf32>, vector<2x64x64xf32>, vector<2x32x64xf32> -> vector<2x32x64xf32>
    "tpu.trace_stop"() : () -> ()
    %142 = arith.addf %134, %141 : vector<2x32x64xf32>
    %143 = vector.extract_strided_slice %42 {offsets = [0, 64, 0], sizes = [2, 32, 64], strides = [1, 1, 1]} : vector<2x128x64xf32> to vector<2x32x64xf32>
    %144 = arith.addf %143, %142 : vector<2x32x64xf32>
    %c0_44 = arith.constant 0 : index
    %c0_45 = arith.constant 0 : index
    %c64 = arith.constant 64 : index
    %c0_46 = arith.constant 0 : index
    %145 = vector.load %arg6[%c0_44, %c0_45, %c64, %c0_46] : memref<1x2x128x64xf32, #tpu.memory_space<vmem>>, vector<1x2x32x64xf32>
    %146 = vector.shape_cast %145 : vector<1x2x32x64xf32> to vector<2x32x64xf32>
    %147 = vector.shape_cast %144 : vector<2x32x64xf32> to vector<1x2x32x64xf32>
    tpu.vector_store %arg6[%c0_44, %c0_45, %c64, %c0_46], %147 {strides = array<i32>} : memref<1x2x128x64xf32, #tpu.memory_space<vmem>>, vector<1x2x32x64xf32>,
    %148 = tpu.concatenate %138, %127 in 1 : vector<2x64x64xf32>, vector<2x32x64xf32> -> vector<2x96x64xf32>
    %149 = vector.extract_strided_slice %37 {offsets = [0, 96, 0], sizes = [2, 32, 64], strides = [1, 1, 1]} : vector<2x128x64xf32> to vector<2x32x64xf32>
    %150 = vector.extract_strided_slice %149 {offsets = [0, 0, 0], sizes = [2, 1, 64], strides = [1, 1, 1]} : vector<2x32x64xf32> to vector<2x1x64xf32>
    %151 = vector.extract_strided_slice %4 {offsets = [0, 96, 0], sizes = [2, 1, 64], strides = [1, 1, 1]} : vector<2x128x64xf32> to vector<2x1x64xf32>
    %152 = arith.subf %150, %151 : vector<2x1x64xf32>
    %153 = vector.extract_strided_slice %8 {offsets = [0, 96, 0], sizes = [2, 32, 64], strides = [1, 1, 1]} : vector<2x128x64xf32> to vector<2x32x64xf32>
    %154 = vector.broadcast %152 : vector<2x1x64xf32> to vector<2x32x64xf32>
    %155 = arith.subf %149, %154 : vector<2x32x64xf32>
    %156 = math.exp %155 : vector<2x32x64xf32>
    %157 = arith.mulf %153, %156 : vector<2x32x64xf32>
    %158 = vector.extract_strided_slice %21 {offsets = [0, 96, 0], sizes = [2, 32, 64], strides = [1, 1, 1]} : vector<2x128x64xf32> to vector<2x32x64xf32>
    %159 = vector.broadcast %152 : vector<2x1x64xf32> to vector<2x32x64xf32>
    %160 = arith.subf %159, %149 : vector<2x32x64xf32>
    %cst_47 = arith.constant 6.000000e+01 : f32
    %161 = vector.broadcast %cst_47 : f32 to vector<2x32x64xf32>
    %162 = arith.minimumf %160, %161 : vector<2x32x64xf32>
    %163 = math.exp %162 : vector<2x32x64xf32>
    %164 = arith.mulf %158, %163 : vector<2x32x64xf32>
    "tpu.trace_start"() <{level = 10 : i32, message = "gid,gjd->gij"}> : () -> ()
    %cst_48 = arith.constant dense<0.000000e+00> : vector<2x32x32xf32>
    %165 = tpu.matmul %157, %164, %cst_48 {dimension_numbers = #tpu.dot_dimension_numbers<[2], [2], [1], [1], [0, 0, 0, 1, 1, 1], [0], [0]>} : vector<2x32x64xf32>, vector<2x32x64xf32>, vector<2x32x32xf32> -> vector<2x32x32xf32>
    %cst_49 = arith.constant 0.000000e+00 : f32
    "tpu.trace_stop"() : () -> ()
    %166 = vector.shape_cast %46 : vector<1x32x32xi1> to vector<1x32x32xi1>
    %167 = vector.broadcast %166 : vector<1x32x32xi1> to vector<2x32x32xi1>
    %168 = vector.broadcast %cst_49 : f32 to vector<2x32x32xf32>
    %169 = arith.select %167, %165, %168 : vector<2x32x32xi1>, vector<2x32x32xf32>
    %170 = vector.extract_strided_slice %15 {offsets = [0, 96, 0], sizes = [2, 32, 64], strides = [1, 1, 1]} : vector<2x128x64xf32> to vector<2x32x64xf32>
    "tpu.trace_start"() <{level = 10 : i32, message = "gij,gjd->gid"}> : () -> ()
    %cst_50 = arith.constant dense<0.000000e+00> : vector<2x32x64xf32>
    %171 = tpu.matmul %169, %170, %cst_50 {dimension_numbers = #tpu.dot_dimension_numbers<[2], [1], [1], [2], [0, 0, 0, 1, 1, 2], [0], [0]>} : vector<2x32x32xf32>, vector<2x32x64xf32>, vector<2x32x64xf32> -> vector<2x32x64xf32>
    "tpu.trace_stop"() : () -> ()
    %172 = arith.subf %152, %115 : vector<2x1x64xf32>
    %173 = math.exp %172 : vector<2x1x64xf32>
    %174 = vector.broadcast %173 : vector<2x1x64xf32> to vector<2x96x64xf32>
    %175 = arith.mulf %148, %174 : vector<2x96x64xf32>
    "tpu.trace_start"() <{level = 10 : i32, message = "gid,gjd->gij"}> : () -> ()
    %cst_51 = arith.constant dense<0.000000e+00> : vector<2x32x96xf32>
    %176 = tpu.matmul %157, %175, %cst_51 {dimension_numbers = #tpu.dot_dimension_numbers<[2], [2], [1], [1], [0, 0, 0, 1, 1, 1], [0], [0]>} : vector<2x32x64xf32>, vector<2x96x64xf32>, vector<2x32x96xf32> -> vector<2x32x96xf32>
    "tpu.trace_stop"() : () -> ()
    %177 = vector.extract_strided_slice %15 {offsets = [0, 0, 0], sizes = [2, 96, 64], strides = [1, 1, 1]} : vector<2x128x64xf32> to vector<2x96x64xf32>
    "tpu.trace_start"() <{level = 10 : i32, message = "gij,gjd->gid"}> : () -> ()
    %cst_52 = arith.constant dense<0.000000e+00> : vector<2x32x64xf32>
    %178 = tpu.matmul %176, %177, %cst_52 {dimension_numbers = #tpu.dot_dimension_numbers<[2], [1], [1], [2], [0, 0, 0, 1, 1, 2], [0], [0]>} : vector<2x32x96xf32>, vector<2x96x64xf32>, vector<2x32x64xf32> -> vector<2x32x64xf32>
    "tpu.trace_stop"() : () -> ()
    %179 = arith.addf %171, %178 : vector<2x32x64xf32>
    %180 = vector.extract_strided_slice %42 {offsets = [0, 96, 0], sizes = [2, 32, 64], strides = [1, 1, 1]} : vector<2x128x64xf32> to vector<2x32x64xf32>
    %181 = arith.addf %180, %179 : vector<2x32x64xf32>
    %c0_53 = arith.constant 0 : index
    %c0_54 = arith.constant 0 : index
    %c96 = arith.constant 96 : index
    %c0_55 = arith.constant 0 : index
    %182 = vector.load %arg6[%c0_53, %c0_54, %c96, %c0_55] : memref<1x2x128x64xf32, #tpu.memory_space<vmem>>, vector<1x2x32x64xf32>
    %183 = vector.shape_cast %182 : vector<1x2x32x64xf32> to vector<2x32x64xf32>
    %184 = vector.shape_cast %181 : vector<2x32x64xf32> to vector<1x2x32x64xf32>
    tpu.vector_store %arg6[%c0_53, %c0_54, %c96, %c0_55], %184 {strides = array<i32>} : memref<1x2x128x64xf32, #tpu.memory_space<vmem>>, vector<1x2x32x64xf32>,
    %185 = vector.broadcast %38 : vector<2x1x64xf32> to vector<2x128x64xf32>
    %186 = arith.subf %185, %37 : vector<2x128x64xf32>
    %187 = math.exp %186 : vector<2x128x64xf32>
    %188 = arith.mulf %21, %187 : vector<2x128x64xf32>
    "tpu.trace_start"() <{level = 10 : i32, message = "gce,gcd->ged"}> : () -> ()
    %cst_56 = arith.constant dense<0.000000e+00> : vector<2x64x64xf32>
    %189 = tpu.matmul %15, %188, %cst_56 {dimension_numbers = #tpu.dot_dimension_numbers<[1], [1], [2], [2], [0, 0, 0, 2, 1, 2], [0], [0]>} : vector<2x128x64xf32>, vector<2x128x64xf32>, vector<2x64x64xf32> -> vector<2x64x64xf32>
    "tpu.trace_stop"() : () -> ()
    %190 = math.exp %38 : vector<2x1x64xf32>
    %191 = vector.broadcast %190 : vector<2x1x64xf32> to vector<2x64x64xf32>
    %192 = arith.mulf %191, %41 : vector<2x64x64xf32>
    %193 = arith.addf %192, %189 : vector<2x64x64xf32>
    %c0_57 = arith.constant 0 : index
    %c0_58 = arith.constant 0 : index
    %c0_59 = arith.constant 0 : index
    %194 = vector.load %arg7[%c0_57, %c0_58, %c0_59] : memref<2x64x64xf32, #tpu.memory_space<vmem>>, vector<2x64x64xf32>
    tpu.vector_store %arg7[%c0_57, %c0_58, %c0_59], %193 {strides = array<i32>} : memref<2x64x64xf32, #tpu.memory_space<vmem>>, vector<2x64x64xf32>,
    return
  }
  func.func @transform_0(%arg0: i32, %arg1: i32) -> (i32, i32, i32, i32) {
    %c0_i32 = arith.constant 0 : i32
    %c0_i32_0 = arith.constant 0 : i32
    %c0_i32_1 = arith.constant 0 : i32
    return %arg0, %c0_i32, %arg1, %c0_i32_0 : i32, i32, i32, i32
  }
  func.func @transform_1(%arg0: i32, %arg1: i32) -> (i32, i32, i32) {
    %c0_i32 = arith.constant 0 : i32
    %c0_i32_0 = arith.constant 0 : i32
    return %arg0, %arg1, %c0_i32 : i32, i32, i32
  }
  func.func @transform_2(%arg0: i32, %arg1: i32) -> (i32, i32, i32) {
    %c0_i32 = arith.constant 0 : i32
    %c0_i32_0 = arith.constant 0 : i32
    return %arg0, %arg1, %c0_i32 : i32, i32, i32
  }
  func.func @transform_3(%arg0: i32, %arg1: i32) -> (i32, i32, i32, i32) {
    %c0_i32 = arith.constant 0 : i32
    %c0_i32_0 = arith.constant 0 : i32
    %c0_i32_1 = arith.constant 0 : i32
    return %arg0, %c0_i32, %arg1, %c0_i32_0 : i32, i32, i32, i32
  }
  func.func @transform_4(%arg0: i32, %arg1: i32) -> (i32, i32, i32, i32) {
    %c0_i32 = arith.constant 0 : i32
    %c0_i32_0 = arith.constant 0 : i32
    %c0_i32_1 = arith.constant 0 : i32
    return %arg0, %c0_i32, %arg1, %c0_i32_0 : i32, i32, i32, i32
  }
}

</mosaic_0001>

<bundles_post_ra>
// kernel: tpu_custom_call.1
= control target key start
LH: loop header
LB: loop body
LE: loop exit
PB: predicated region body
PF: predicated region fallthrough
CT: control target
= control target key end

     0   :  { %s8812_s15 = smov 0   ;;  %s8814_s16 = smov 0   ;;  %s11923_s0 = inlined_call_operand.vmem [shape: f32[2,2,512,64], index: 0, kind: input, shape index: {}]   ;;  %s11924_s1 = inlined_call_operand.vmem [shape: f32[2,512,64], index: 1, kind: input, shape index: {}]   ;;  %s11925_s2 = inlined_call_operand.vmem [shape: f32[2,512,64], index: 2, kind: input, shape index: {}]   ;;  %s11926_s3 = inlined_call_operand.vmem [shape: f32[2,2,512,64], index: 3, kind: input, shape index: {}]   ;;  %s11927_s4 = inlined_call_operand.vmem [shape: f32[2,2,512,64], index: 4, kind: output, shape index: {}]  }
   0x1   :  { %s8816_s17 = smov 0   ;;  %s8818_s18 = smov 0  }
   0x2   :  { %s8820_s19 = smov 0   ;;  %s8822_s20 = smov 0  }
   0x3   :  { %s8824_s21 = smov 0  }
   0x4 LB: > { %s23_s22 = sadd.s32 1, %s8775_s19  ;;  %s26_s23 = sadd.s32 1, %s8779_s20  ;;  %s8783_s21 = sphi %s8824_s21, %s14_s21   ;;  %s8779_s20 = sphi %s8822_s20, %s12555_s20   ;;  %s8775_s19 = sphi %s8820_s19, %s12554_s19   ;;  %s8771_s18 = sphi %s8818_s18, %s12553_s18   ;;  %s8767_s17 = sphi %s8816_s17, %s12552_s17   ;;  %s8763_s16 = sphi %s8814_s16, %s12551_s16   ;;  %s8759_s15 = sphi %s8812_s15, %s12550_s15  }
   0x5   : > { %p24_p0 = scmp.ge.s32.totalorder %s23_s22, 4  ;;  %s6148_s24 = sadd.s32 4294967295, %s8783_s21  }
   0x6   : > { %p42_p1 = scmp.ne.s32.totalorder %s8763_s16, %s8759_s15  ;;  %p43_p2 = scmp.eq.s32.totalorder %s8783_s21, 0 }
   0x7   : > { %s12557_s22 = smov (%p24_p0, %s23_s22), 0  ;;  %s12559_s23 = smov (!%p24_p0, %s26_s23), %s8779_s20 }
   0x8   : > { %p28_p3 = scmp.ge.s32.totalorder %s12559_s23, 2  ;;  %p158_p4 = scmp.eq.s32.totalorder %s6148_s24, 7 }
   0x9   : > { %s31_s25 = ssub.s32 %s8775_s19, %s12557_s22  ;;  %p8858_p5 = por %p43_p2, %p42_p1 }
   0xa   : > { %s12561_s23 = smov (%p28_p3, %s12559_s23), 0  ;;  %p8864_p6 = por %p158_p4, %p42_p1 }
   0xb   : > { %s30_s28 = ssub.s32 %s8779_s20, %s12561_s23  ;;  %s35_s30 = sadd.s32 1, %s8763_s16 }
   0xc   : > { %s32_s29 = sor.u32 %s31_s25, %s30_s28  ;;  %p6151_p8 = scmp.ge.s32.totalorder %s8783_s21, 8 }
   0xd   : > { %p33_p7 = scmp.eq.s32.totalorder %s32_s29, 0 }
   0xe   : > { %180 = sbr.rel (%p6151_p8) target bundleno = 67 (0x43), region = 16 }
   0xf   : > { %s8872_s5 = scalar_select %p33_p7, %s8763_s16, %s35_s30  }
  0x15   : > { %183 = sbr.rel (!%p8858_p5) target bundleno = 44 (0x2c), region = 20  ;;  %s185_s6 = sand.u32 (%p8858_p5), 1, %s8763_s16  }
  0x16   : > { %s6153_s7 = sshll.u32 (%p8858_p5), %s8775_s19, 4  ;;  %s6152_s8 = sshll.u32 (%p8858_p5), %s185_s6, 8 }
  0x17   : > { %s6154_s9 = sshll.u32 (%p8858_p5), %s8779_s20, 7  ;;  %s8888_s24 = scalar_lea.vmem (%p8858_p5), [#allocation3], %s6152_s8 }
  0x18   : > { %s190_s10 = sadd.s32 (%p8858_p5), %s6154_s9, %s6153_s7 }
  0x19   : > { %s6155_s11 = sshll.u32 (%p8858_p5), %s190_s10, 3 }
  0x1a   : > { %s8883_s14 = scalar_lea.vmem (%p8858_p5), %s11923_s0, %s6155_s11 }
  0x1b   : > { %v282_v0 = vld [vmem:[%s8883_s14] sm:$0xff] (%p8858_p5)  ;;  %v284_v1 = vld [vmem:[%s8883_s14 + $0x8] sm:$0xff] (%p8858_p5)  ;;  %v286_v2 = vld [vmem:[%s8883_s14 + $0x10] sm:$0xff] (%p8858_p5) }
  0x1c   : > { %283 = vst [vmem:[%s8888_s24] sm:$0xff] %v282_v0  ;;  %285 = vst [vmem:[%s8888_s24 + $0x8] sm:$0xff] %v284_v1  ;;  %v288_v3 = vld [vmem:[%s8883_s14 + $0x18] sm:$0xff]  ;;  %v290_v4 = vld [vmem:[%s8883_s14 + $0x20] sm:$0xff] }
  0x1d   : > { %287 = vst [vmem:[%s8888_s24 + $0x10] sm:$0xff] %v286_v2  ;;  %v292_v5 = vld [vmem:[%s8883_s14 + $0x28] sm:$0xff]  ;;  %289 = vst [vmem:[%s8888_s24 + $0x18] sm:$0xff] %v288_v3  ;;  %v294_v6 = vld [vmem:[%s8883_s14 + $0x30] sm:$0xff] }
  0x1e   : > { %291 = vst [vmem:[%s8888_s24 + $0x20] sm:$0xff] %v290_v4  ;;  %293 = vst [vmem:[%s8888_s24 + $0x28] sm:$0xff] %v292_v5  ;;  %v296_v7 = vld [vmem:[%s8883_s14 + $0x38] sm:$0xff]  ;;  %v298_v8 = vld [vmem:[%s8883_s14 + $0x40] sm:$0xff] }
  0x1f   : > { %295 = vst [vmem:[%s8888_s24 + $0x30] sm:$0xff] %v294_v6  ;;  %297 = vst [vmem:[%s8888_s24 + $0x38] sm:$0xff] %v296_v7  ;;  %v300_v9 = vld [vmem:[%s8883_s14 + $0x48] sm:$0xff]  ;;  %v302_v10 = vld [vmem:[%s8883_s14 + $0x50] sm:$0xff] }
  0x20   : > { %299 = vst [vmem:[%s8888_s24 + $0x40] sm:$0xff] %v298_v8  ;;  %v304_v11 = vld [vmem:[%s8883_s14 + $0x58] sm:$0xff]  ;;  %301 = vst [vmem:[%s8888_s24 + $0x48] sm:$0xff] %v300_v9  ;;  %v306_v12 = vld [vmem:[%s8883_s14 + $0x60] sm:$0xff] }
  0x21   : > { %303 = vst [vmem:[%s8888_s24 + $0x50] sm:$0xff] %v302_v10  ;;  %305 = vst [vmem:[%s8888_s24 + $0x58] sm:$0xff] %v304_v11  ;;  %v308_v13 = vld [vmem:[%s8883_s14 + $0x68] sm:$0xff]  ;;  %v310_v14 = vld [vmem:[%s8883_s14 + $0x70] sm:$0xff] }
  0x22   : > { %307 = vst [vmem:[%s8888_s24 + $0x60] sm:$0xff] %v306_v12  ;;  %309 = vst [vmem:[%s8888_s24 + $0x68] sm:$0xff] %v308_v13  ;;  %v312_v15 = vld [vmem:[%s8883_s14 + $0x78] sm:$0xff]  ;;  %v314_v16 = vld [vmem:[%s8883_s14 + $0x200] sm:$0xff] }
  0x23   : > { %311 = vst [vmem:[%s8888_s24 + $0x70] sm:$0xff] %v310_v14  ;;  %v316_v17 = vld [vmem:[%s8883_s14 + $0x208] sm:$0xff]  ;;  %313 = vst [vmem:[%s8888_s24 + $0x78] sm:$0xff] %v312_v15  ;;  %v318_v18 = vld [vmem:[%s8883_s14 + $0x210] sm:$0xff] }
  0x24   : > { %315 = vst [vmem:[%s8888_s24 + $0x80] sm:$0xff] %v314_v16  ;;  %317 = vst [vmem:[%s8888_s24 + $0x88] sm:$0xff] %v316_v17  ;;  %v320_v19 = vld [vmem:[%s8883_s14 + $0x218] sm:$0xff]  ;;  %v322_v20 = vld [vmem:[%s8883_s14 + $0x220] sm:$0xff] }
  0x25   : > { %319 = vst [vmem:[%s8888_s24 + $0x90] sm:$0xff] %v318_v18  ;;  %321 = vst [vmem:[%s8888_s24 + $0x98] sm:$0xff] %v320_v19  ;;  %v324_v21 = vld [vmem:[%s8883_s14 + $0x228] sm:$0xff]  ;;  %v326_v22 = vld [vmem:[%s8883_s14 + $0x230] sm:$0xff] }
  0x26   : > { %323 = vst [vmem:[%s8888_s24 + $0xa0] sm:$0xff] %v322_v20  ;;  %v328_v23 = vld [vmem:[%s8883_s14 + $0x238] sm:$0xff]  ;;  %325 = vst [vmem:[%s8888_s24 + $0xa8] sm:$0xff] %v324_v21  ;;  %v330_v24 = vld [vmem:[%s8883_s14 + $0x240] sm:$0xff] }
  0x27   : > { %327 = vst [vmem:[%s8888_s24 + $0xb0] sm:$0xff] %v326_v22  ;;  %329 = vst [vmem:[%s8888_s24 + $0xb8] sm:$0xff] %v328_v23  ;;  %v332_v25 = vld [vmem:[%s8883_s14 + $0x248] sm:$0xff]  ;;  %v334_v26 = vld [vmem:[%s8883_s14 + $0x250] sm:$0xff] }
  0x28   : > { %331 = vst [vmem:[%s8888_s24 + $0xc0] sm:$0xff] %v330_v24  ;;  %333 = vst [vmem:[%s8888_s24 + $0xc8] sm:$0xff] %v332_v25  ;;  %v336_v27 = vld [vmem:[%s8883_s14 + $0x258] sm:$0xff]  ;;  %v338_v28 = vld [vmem:[%s8883_s14 + $0x260] sm:$0xff] }
  0x29   : > { %335 = vst [vmem:[%s8888_s24 + $0xd0] sm:$0xff] %v334_v26  ;;  %v340_v29 = vld [vmem:[%s8883_s14 + $0x268] sm:$0xff]  ;;  %337 = vst [vmem:[%s8888_s24 + $0xd8] sm:$0xff] %v336_v27  ;;  %v342_v30 = vld [vmem:[%s8883_s14 + $0x270] sm:$0xff] }
  0x2a   : > { %339 = vst [vmem:[%s8888_s24 + $0xe0] sm:$0xff] %v338_v28  ;;  %341 = vst [vmem:[%s8888_s24 + $0xe8] sm:$0xff] %v340_v29  ;;  %v344_v31 = vld [vmem:[%s8883_s14 + $0x278] sm:$0xff] }
  0x2b   : > { %343 = vst [vmem:[%s8888_s24 + $0xf0] sm:$0xff] %v342_v30  ;;  %345 = vst [vmem:[%s8888_s24 + $0xf8] sm:$0xff] %v344_v31 }
  0x2c PF: > { %377 = sbr.rel (!%p8858_p5) target bundleno = 67 (0x43), region = 66  ;;  %s379_s25 = sand.u32 (%p8858_p5), 1, %s8763_s16  }
  0x2d   : > { %s6157_s28 = sshll.u32 (%p8858_p5), %s8775_s19, 4  ;;  %s6156_s29 = sshll.u32 (%p8858_p5), %s379_s25, 8 }
  0x2e   : > { %s6158_s30 = sshll.u32 (%p8858_p5), %s8779_s20, 7  ;;  %s8964_s26 = scalar_lea.vmem (%p8858_p5), [#allocation4], %s6156_s29 }
  0x2f   : > { %s384_s6 = sadd.s32 (%p8858_p5), %s6158_s30, %s6157_s28 }
  0x30   : > { %s6159_s7 = sshll.u32 (%p8858_p5), %s384_s6, 3 }
  0x31   : > { %s8959_s10 = scalar_lea.vmem (%p8858_p5), %s11926_s3, %s6159_s7 }
  0x32   : > { %v476_v32 = vld [vmem:[%s8959_s10] sm:$0xff] (%p8858_p5)  ;;  %v478_v33 = vld [vmem:[%s8959_s10 + $0x8] sm:$0xff] (%p8858_p5)  ;;  %v480_v34 = vld [vmem:[%s8959_s10 + $0x10] sm:$0xff] (%p8858_p5) }
  0x33   : > { %477 = vst [vmem:[%s8964_s26] sm:$0xff] %v476_v32  ;;  %479 = vst [vmem:[%s8964_s26 + $0x8] sm:$0xff] %v478_v33  ;;  %v482_v35 = vld [vmem:[%s8959_s10 + $0x18] sm:$0xff]  ;;  %v484_v36 = vld [vmem:[%s8959_s10 + $0x20] sm:$0xff] }
  0x34   : > { %481 = vst [vmem:[%s8964_s26 + $0x10] sm:$0xff] %v480_v34  ;;  %v486_v37 = vld [vmem:[%s8959_s10 + $0x28] sm:$0xff]  ;;  %483 = vst [vmem:[%s8964_s26 + $0x18] sm:$0xff] %v482_v35  ;;  %v488_v38 = vld [vmem:[%s8959_s10 + $0x30] sm:$0xff] }
  0x35   : > { %485 = vst [vmem:[%s8964_s26 + $0x20] sm:$0xff] %v484_v36  ;;  %487 = vst [vmem:[%s8964_s26 + $0x28] sm:$0xff] %v486_v37  ;;  %v490_v39 = vld [vmem:[%s8959_s10 + $0x38] sm:$0xff]  ;;  %v492_v40 = vld [vmem:[%s8959_s10 + $0x40] sm:$0xff] }
  0x36   : > { %489 = vst [vmem:[%s8964_s26 + $0x30] sm:$0xff] %v488_v38  ;;  %491 = vst [vmem:[%s8964_s26 + $0x38] sm:$0xff] %v490_v39  ;;  %v494_v41 = vld [vmem:[%s8959_s10 + $0x48] sm:$0xff]  ;;  %v496_v42 = vld [vmem:[%s8959_s10 + $0x50] sm:$0xff] }
  0x37   : > { %493 = vst [vmem:[%s8964_s26 + $0x40] sm:$0xff] %v492_v40  ;;  %v498_v43 = vld [vmem:[%s8959_s10 + $0x58] sm:$0xff]  ;;  %495 = vst [vmem:[%s8964_s26 + $0x48] sm:$0xff] %v494_v41  ;;  %v500_v44 = vld [vmem:[%s8959_s10 + $0x60] sm:$0xff] }
  0x38   : > { %497 = vst [vmem:[%s8964_s26 + $0x50] sm:$0xff] %v496_v42  ;;  %499 = vst [vmem:[%s8964_s26 + $0x58] sm:$0xff] %v498_v43  ;;  %v502_v45 = vld [vmem:[%s8959_s10 + $0x68] sm:$0xff]  ;;  %v504_v46 = vld [vmem:[%s8959_s10 + $0x70] sm:$0xff] }
  0x39   : > { %501 = vst [vmem:[%s8964_s26 + $0x60] sm:$0xff] %v500_v44  ;;  %503 = vst [vmem:[%s8964_s26 + $0x68] sm:$0xff] %v502_v45  ;;  %v506_v47 = vld [vmem:[%s8959_s10 + $0x78] sm:$0xff]  ;;  %v508_v48 = vld [vmem:[%s8959_s10 + $0x200] sm:$0xff] }
  0x3a   : > { %505 = vst [vmem:[%s8964_s26 + $0x70] sm:$0xff] %v504_v46  ;;  %v510_v49 = vld [vmem:[%s8959_s10 + $0x208] sm:$0xff]  ;;  %507 = vst [vmem:[%s8964_s26 + $0x78] sm:$0xff] %v506_v47  ;;  %v512_v50 = vld [vmem:[%s8959_s10 + $0x210] sm:$0xff] }
  0x3b   : > { %509 = vst [vmem:[%s8964_s26 + $0x80] sm:$0xff] %v508_v48  ;;  %511 = vst [vmem:[%s8964_s26 + $0x88] sm:$0xff] %v510_v49  ;;  %v514_v51 = vld [vmem:[%s8959_s10 + $0x218] sm:$0xff]  ;;  %v516_v52 = vld [vmem:[%s8959_s10 + $0x220] sm:$0xff] }
  0x3c   : > { %513 = vst [vmem:[%s8964_s26 + $0x90] sm:$0xff] %v512_v50  ;;  %515 = vst [vmem:[%s8964_s26 + $0x98] sm:$0xff] %v514_v51  ;;  %v518_v53 = vld [vmem:[%s8959_s10 + $0x228] sm:$0xff]  ;;  %v520_v54 = vld [vmem:[%s8959_s10 + $0x230] sm:$0xff] }
  0x3d   : > { %517 = vst [vmem:[%s8964_s26 + $0xa0] sm:$0xff] %v516_v52  ;;  %v522_v55 = vld [vmem:[%s8959_s10 + $0x238] sm:$0xff]  ;;  %519 = vst [vmem:[%s8964_s26 + $0xa8] sm:$0xff] %v518_v53  ;;  %v524_v56 = vld [vmem:[%s8959_s10 + $0x240] sm:$0xff] }
  0x3e   : > { %521 = vst [vmem:[%s8964_s26 + $0xb0] sm:$0xff] %v520_v54  ;;  %523 = vst [vmem:[%s8964_s26 + $0xb8] sm:$0xff] %v522_v55  ;;  %v526_v57 = vld [vmem:[%s8959_s10 + $0x248] sm:$0xff]  ;;  %v528_v58 = vld [vmem:[%s8959_s10 + $0x250] sm:$0xff] }
  0x3f   : > { %525 = vst [vmem:[%s8964_s26 + $0xc0] sm:$0xff] %v524_v56  ;;  %527 = vst [vmem:[%s8964_s26 + $0xc8] sm:$0xff] %v526_v57  ;;  %v530_v59 = vld [vmem:[%s8959_s10 + $0x258] sm:$0xff]  ;;  %v532_v60 = vld [vmem:[%s8959_s10 + $0x260] sm:$0xff] }
  0x40   : > { %529 = vst [vmem:[%s8964_s26 + $0xd0] sm:$0xff] %v528_v58  ;;  %v534_v61 = vld [vmem:[%s8959_s10 + $0x268] sm:$0xff]  ;;  %531 = vst [vmem:[%s8964_s26 + $0xd8] sm:$0xff] %v530_v59  ;;  %v536_v62 = vld [vmem:[%s8959_s10 + $0x270] sm:$0xff] }
  0x41   : > { %533 = vst [vmem:[%s8964_s26 + $0xe0] sm:$0xff] %v532_v60  ;;  %535 = vst [vmem:[%s8964_s26 + $0xe8] sm:$0xff] %v534_v61  ;;  %v538_v63 = vld [vmem:[%s8959_s10 + $0x278] sm:$0xff] }
  0x42   : > { %537 = vst [vmem:[%s8964_s26 + $0xf0] sm:$0xff] %v536_v62  ;;  %539 = vst [vmem:[%s8964_s26 + $0xf8] sm:$0xff] %v538_v63 }
  0x43 PF: > { %p6160_p9 = scmp.ge.s32.totalorder %s8783_s21, 1  ;;  %p544_p10 = scmp.lt.s32.totalorder %s8783_s21, 9 }
  0x45   : > { %p545_p11 = pnand %p6160_p9, %p544_p10 }
  0x47   : > { %548 = sbr.rel (%p545_p11) target bundleno = 1801 (0x709), region = 104 }
  0x4e   : > { %s551_s11 = sand.u32 1, %s8759_s15   ;;  %s9031_s12 = sshll.u32 %s8767_s17, 4 }
  0x4f   : > { %s6161_s13 = sshll.u32 %s551_s11, 8  ;;  %p606_p12 = scmp.lt.s32.totalorder %s8771_s18, 1 }
  0x50   : > { %p608_p13 = scmp.lt.s32.totalorder %s9031_s12, 63  ;;  %s9047_s10 = scalar_lea.vmem [#allocation3], %s6161_s13 }
  0x51   : > { %s607_s14 = scalar_select %p606_p12, %s8771_s18, 1 }
  0x52   : > { %s609_s24 = scalar_select %p608_p13, %s9031_s12, 63 }
  0x53   : > { %s6165_s25 = sshll.u32 %s607_s14, 6  ;;  %s9049_s26 = scalar_lea.vmem [#allocation4], %s6161_s13 }
  0x54   : > { %s611_s28 = sadd.s32 %s6165_s25, %s609_s24  ;;  %s9051_s11 = scalar_lea.vmem [#allocation5], %s6161_s13 }
  0x55   : > { %s6166_s29 = sshll.u32 %s611_s28, 3  ;;  %p6170_p0 = scmp.ne.s32.totalorder %s8767_s17, 0 }
  0x56   : > { %s9040_s7 = scalar_lea.vmem %s11924_s1, %s6166_s29  ;;  %s9045_s15 = scalar_lea.vmem %s11925_s2, %s6166_s29  ;;  %vm632_vm0 = vcmask (!%p6170_p0), 523264   ;;  %v8785_v0 = vmov (!%p6170_p0), 0.0  }
  0x57   : > { %631 = sbr.rel (%p6170_p0) target bundleno = 95 (0x5f), region = 116  ;;  %633 = vst.msk [vmem:[#allocation2] sm:$0xff] (!%p6170_p0), %vm632_vm0, %v8785_v0  ;;  %634 = vst.msk [vmem:[#allocation2 + $0x8] sm:$0xff] (!%p6170_p0), %vm632_vm0, %v8785_v0 }
  0x58   : > { %635 = vst.msk [vmem:[#allocation2 + $0x10] sm:$0xff] (!%p6170_p0), %vm632_vm0, %v8785_v0  ;;  %636 = vst.msk [vmem:[#allocation2 + $0x18] sm:$0xff] (!%p6170_p0), %vm632_vm0, %v8785_v0 }
  0x59   : > { %637 = vst.msk [vmem:[#allocation2 + $0x20] sm:$0xff] (!%p6170_p0), %vm632_vm0, %v8785_v0  ;;  %638 = vst.msk [vmem:[#allocation2 + $0x28] sm:$0xff] (!%p6170_p0), %vm632_vm0, %v8785_v0 }
  0x5a   : > { %639 = vst.msk [vmem:[#allocation2 + $0x30] sm:$0xff] (!%p6170_p0), %vm632_vm0, %v8785_v0  ;;  %640 = vst.msk [vmem:[#allocation2 + $0x38] sm:$0xff] (!%p6170_p0), %vm632_vm0, %v8785_v0 }
  0x5b   : > { %641 = vst.msk [vmem:[#allocation2 + $0x40] sm:$0xff] (!%p6170_p0), %vm632_vm0, %v8785_v0  ;;  %642 = vst.msk [vmem:[#allocation2 + $0x48] sm:$0xff] (!%p6170_p0), %vm632_vm0, %v8785_v0 }
  0x5c   : > { %643 = vst.msk [vmem:[#allocation2 + $0x50] sm:$0xff] (!%p6170_p0), %vm632_vm0, %v8785_v0  ;;  %644 = vst.msk [vmem:[#allocation2 + $0x58] sm:$0xff] (!%p6170_p0), %vm632_vm0, %v8785_v0 }
  0x5d   : > { %645 = vst.msk [vmem:[#allocation2 + $0x60] sm:$0xff] (!%p6170_p0), %vm632_vm0, %v8785_v0  ;;  %646 = vst.msk [vmem:[#allocation2 + $0x68] sm:$0xff] (!%p6170_p0), %vm632_vm0, %v8785_v0 }
  0x5e   : > { %647 = vst.msk [vmem:[#allocation2 + $0x70] sm:$0xff] %vm632_vm0, %v8785_v0  ;;  %648 = vst.msk [vmem:[#allocation2 + $0x78] sm:$0xff] %vm632_vm0, %v8785_v0 }
  0x5f PF: > { %v9071_v1 = vld [vmem:[%s9049_s26] sm:$0xff]  ;;  %v9074_v2 = vld [vmem:[%s9049_s26 + $0x8] sm:$0xff]  ;;  %v9091_v7 = vld [vmem:[%s9049_s26 + $0x10] sm:$0xff]  ;;  %s6493_s17 = sshll.u32 (%p8864_p6), %s8771_s18, 7 }
  0x60   : > { %v9077_v3 = vld [vmem:[%s9049_s26 + $0x80] sm:$0xff]  ;;  %v9081_v4 = vpack.c.bf16 %v9074_v2, %v9071_v1  ;;  %v9084_v5 = vld [vmem:[%s9049_s26 + $0x88] sm:$0xff]  ;;  %v9094_v8 = vld [vmem:[%s9049_s26 + $0x18] sm:$0xff]  ;;  %s5858_s27 = sadd.s32 (%p8864_p6), %s6493_s17, %s9031_s12 }
  0x61   : > { %v9088_v6 = vpack.c.bf16 %v9084_v5, %v9077_v3  ;;  %v9104_v15 = vpack.c.bf16 %v9094_v8, %v9091_v7  ;;  %v9107_v16 = vld [vmem:[%s9049_s26 + $0x90] sm:$0xff]  ;;  %v9110_v17 = vld [vmem:[%s9049_s26 + $0x98] sm:$0xff]  ;;  %v9121_v25 = vld [vmem:[%s9049_s26 + $0x20] sm:$0xff]  ;;  %s6494_s13 = sshll.u32 (%p8864_p6), %s5858_s27, 3 }
  0x62   : > { %v996_v9 = vunpack.c.l.bf16 %v9081_v4  ;;  %v997_v10 = vunpack.c.h.bf16 %v9081_v4  ;;  %v9118_v24 = vpack.c.bf16 %v9110_v17, %v9107_v16  ;;  %v9124_v26 = vld [vmem:[%s9049_s26 + $0x28] sm:$0xff]  ;;  %v9131_v31 = vld [vmem:[%s9049_s26 + $0xa0] sm:$0xff]  ;;  %v9149_v40 = vld [vmem:[%s9049_s26 + $0x30] sm:$0xff]  ;;  %s11845_s25 = scalar_lea.vmem (%p8864_p6), %s11927_s4, %s6494_s13 }
  0x63   : > { %v1012_v11 = vunpack.c.l.bf16 %v9088_v6  ;;  %v1013_v12 = vunpack.c.h.bf16 %v9088_v6  ;;  %v998_v21 = vunpack.c.l.bf16 %v9104_v15  ;;  %v999_v22 = vunpack.c.h.bf16 %v9104_v15  ;;  %v9134_v32 = vld [vmem:[%s9049_s26 + $0xa8] sm:$0xff]  ;;  %v9152_v41 = vld [vmem:[%s9049_s26 + $0x38] sm:$0xff]  ;;  %v9163_v48 = vld [vmem:[%s9049_s26 + $0xb0] sm:$0xff] }
  0x64   : > { %v1028_v13 = vsub.f32 %v9071_v1, %v996_v9  ;;  %v1029_v14 = vsub.f32 %v9074_v2, %v997_v10  ;;  %v1014_v29 = vunpack.c.l.bf16 %v9118_v24  ;;  %v1015_v30 = vunpack.c.h.bf16 %v9118_v24  ;;  %v9166_v49 = vld [vmem:[%s9049_s26 + $0xb8] sm:$0xff]  ;;  %v9170_v52 = vld [vmem:[%s9049_s26 + $0x40] sm:$0xff]  ;;  %v9173_v53 = vld [vmem:[%s9049_s26 + $0x48] sm:$0xff] }
  0x65   : > { %v1044_v18 = vsub.f32 %v9077_v3, %v1012_v11  ;;  %v1045_v19 = vsub.f32 %v9084_v5, %v1013_v12  ;;  %v1030_v27 = vsub.f32 %v9091_v7, %v998_v21  ;;  %v1031_v28 = vsub.f32 %v9094_v8, %v999_v22  ;;  %v9191_v0 = vld [vmem:[%s9049_s26 + $0xc0] sm:$0xff]  ;;  %v9194_v9 = vld [vmem:[%s9049_s26 + $0xc8] sm:$0xff] }
  0x66   : > { %v1060_v20 = vpack.c.bf16 %v1029_v14, %v1028_v13  ;;  %v9138_v34 = vpack.c.bf16 %v9124_v26, %v9121_v25  ;;  %v1046_v35 = vsub.f32 %v9107_v16, %v1014_v29  ;;  %v1047_v36 = vsub.f32 %v9110_v17, %v1015_v30 }
  0x67   : > { %v1068_v23 = vpack.c.bf16 %v1045_v19, %v1044_v18  ;;  %v1061_v33 = vpack.c.bf16 %v1031_v28, %v1030_v27  ;;  %v9146_v39 = vpack.c.bf16 %v9134_v32, %v9131_v31  ;;  %v9160_v47 = vpack.c.bf16 %v9152_v41, %v9149_v40  ;;  %v9201_v18 = vld [vmem:[%s9049_s26 + $0x50] sm:$0xff]  ;;  %v9204_v19 = vld [vmem:[%s9049_s26 + $0x58] sm:$0xff] }
  0x68   : > { %6929 = vmatprep.subr.bf16.mxu0 %v1060_v20  ;;  %v1000_v37 = vunpack.c.l.bf16 %v9138_v34  ;;  %v1001_v38 = vunpack.c.h.bf16 %v9138_v34  ;;  %v1069_v42 = vpack.c.bf16 %v1047_v36, %v1046_v35  ;;  %v9180_v57 = vpack.c.bf16 %v9166_v49, %v9163_v48  ;;  %v9216_v27 = vld [vmem:[%s9049_s26 + $0xd8] sm:$0xff] }
  0x69   : > { %6961 = vmatprep.subr.bf16.mxu1 %v1068_v23  ;;  %6930 = vmatpush3.bf16.msra.mxu0 %v1060_v20  ;;  %v1016_v45 = vunpack.c.l.bf16 %v9146_v39  ;;  %v1017_v46 = vunpack.c.h.bf16 %v9146_v39  ;;  %v1002_v55 = vunpack.c.l.bf16 %v9160_v47  ;;  %v1003_v56 = vunpack.c.h.bf16 %v9160_v47 }
  0x6a   : > { %6962 = vmatpush3.bf16.msra.mxu1 %v1068_v23  ;;  %6931 = vmatprep.subr.bf16.mxu0 %v1061_v33  ;;  %v1032_v43 = vsub.f32 %v9121_v25, %v1000_v37  ;;  %v1033_v44 = vsub.f32 %v9124_v26, %v1001_v38  ;;  %v9186_v61 = vpack.c.bf16 %v9173_v53, %v9170_v52  ;;  %v1018_v62 = vunpack.c.l.bf16 %v9180_v57  ;;  %v9213_v23 = vld [vmem:[%s9049_s26 + $0xd0] sm:$0xff] }
  0x6b   : > { %6963 = vmatprep.subr.bf16.mxu1 %v1069_v42  ;;  %v1048_v51 = vsub.f32 %v9131_v31, %v1016_v45  ;;  %v1049_v54 = vsub.f32 %v9134_v32, %v1017_v46  ;;  %v1034_v59 = vsub.f32 %v9149_v40, %v1002_v55  ;;  %v1035_v60 = vsub.f32 %v9152_v41, %v1003_v56  ;;  %v9235_v46 = vld [vmem:[%s9049_s26 + $0x60] sm:$0xff]  ;;  %v9245_v56 = vld [vmem:[%s9049_s26 + $0xe8] sm:$0xff] }
  0x6c   : > { %v1062_v50 = vpack.c.bf16 %v1033_v44, %v1032_v43  ;;  %v1019_v63 = vunpack.c.h.bf16 %v9180_v57  ;;  %v1004_v11 = vunpack.c.l.bf16 %v9186_v61  ;;  %v1005_v12 = vunpack.c.h.bf16 %v9186_v61  ;;  %v9242_v55 = vld [vmem:[%s9049_s26 + $0xe0] sm:$0xff] }
  0x6d   : > { %6932 = vmatpush3.bf16.msra.mxu0 %v1061_v33  ;;  %v1070_v58 = vpack.c.bf16 %v1049_v54, %v1048_v51  ;;  %v1063_v10 = vpack.c.bf16 %v1035_v60, %v1034_v59  ;;  %v1050_v13 = vsub.f32 %v9163_v48, %v1018_v62  ;;  %v9210_v22 = vpack.c.bf16 %v9194_v9, %v9191_v0 }
  0x6e   : > { %6964 = vmatpush3.bf16.msra.mxu1 %v1069_v42  ;;  %6933 = vmatprep.subr.bf16.mxu0 %v1062_v50  ;;  %v1051_v14 = vsub.f32 %v9166_v49, %v1019_v63  ;;  %v1036_v20 = vsub.f32 %v9170_v52, %v1004_v11  ;;  %v1037_v21 = vsub.f32 %v9173_v53, %v1005_v12  ;;  %v9259_v12 = vld [vmem:[%s9049_s26 + $0x70] sm:$0xff] }
  0x6f   : > { %6965 = vmatprep.subr.bf16.mxu1 %v1070_v58  ;;  %v1020_v30 = vunpack.c.l.bf16 %v9210_v22  ;;  %v1021_v33 = vunpack.c.h.bf16 %v9210_v22  ;;  %v9222_v35 = vpack.c.bf16 %v9204_v19, %v9201_v18  ;;  %v9226_v36 = vpack.c.bf16 %v9216_v27, %v9213_v23 }
  0x70   : > { %v1071_v28 = vpack.c.bf16 %v1051_v14, %v1050_v13  ;;  %v1064_v29 = vpack.c.bf16 %v1037_v21, %v1036_v20  ;;  %v9256_v11 = vpack.c.bf16 %v9245_v56, %v9242_v55  ;;  %v9262_v13 = vld [vmem:[%s9049_s26 + $0x78] sm:$0xff] }
  0x71   : > { %6934 = vmatpush3.bf16.msra.mxu0 %v1062_v50  ;;  %v1052_v37 = vsub.f32 %v9191_v0, %v1020_v30  ;;  %v1053_v38 = vsub.f32 %v9194_v9, %v1021_v33  ;;  %v1006_v42 = vunpack.c.l.bf16 %v9222_v35  ;;  %v1007_v43 = vunpack.c.h.bf16 %v9222_v35  ;;  %v9238_v50 = vld [vmem:[%s9049_s26 + $0x68] sm:$0xff] }
  0x72   : > { %6966 = vmatpush3.bf16.msra.mxu1 %v1070_v58  ;;  %6935 = vmatprep.subr.bf16.mxu0 %v1063_v10  ;;  %v1022_v44 = vunpack.c.l.bf16 %v9226_v36  ;;  %v1023_v45 = vunpack.c.h.bf16 %v9226_v36  ;;  %v9252_v62 = vpack.c.bf16 %v9238_v50, %v9235_v46  ;;  %v1024_v21 = vunpack.c.l.bf16 %v9256_v11 }
  0x73   : > { %6967 = vmatprep.subr.bf16.mxu1 %v1071_v28  ;;  %v1072_v51 = vpack.c.bf16 %v1053_v38, %v1052_v37  ;;  %v1038_v54 = vsub.f32 %v9201_v18, %v1006_v42  ;;  %v1039_v58 = vsub.f32 %v9204_v19, %v1007_v43  ;;  %v9272_v37 = vpack.c.bf16 %v9262_v13, %v9259_v12  ;;  %v9275_v38 = vld [vmem:[%s9049_s26 + $0xf0] sm:$0xff]  ;;  %v9278_v42 = vld [vmem:[%s9049_s26 + $0xf8] sm:$0xff] }
  0x74   : > { %v1054_v59 = vsub.f32 %v9213_v23, %v1022_v44  ;;  %v1055_v60 = vsub.f32 %v9216_v27, %v1023_v45  ;;  %v1008_v14 = vunpack.c.l.bf16 %v9252_v62  ;;  %v1009_v20 = vunpack.c.h.bf16 %v9252_v62 }
  0x75   : > { %6936 = vmatpush3.bf16.msra.mxu0 %v1063_v10  ;;  %v1065_v63 = vpack.c.bf16 %v1039_v58, %v1038_v54  ;;  %v1056_v43 = vsub.f32 %v9242_v55, %v1024_v21  ;;  %v1011_v54 = vunpack.c.h.bf16 %v9272_v37 }
  0x76   : > { %6968 = vmatpush3.bf16.msra.mxu1 %v1071_v28  ;;  %6937 = vmatprep.subr.bf16.mxu0 %v1064_v29  ;;  %v1073_v10 = vpack.c.bf16 %v1055_v60, %v1054_v59  ;;  %v1025_v28 = vunpack.c.h.bf16 %v9256_v11  ;;  %v1040_v30 = vsub.f32 %v9235_v46, %v1008_v14  ;;  %v1041_v33 = vsub.f32 %v9238_v50, %v1009_v20 }
  0x77   : > { %6969 = vmatprep.subr.bf16.mxu1 %v1072_v51  ;;  %v9286_v59 = vpack.c.bf16 %v9278_v42, %v9275_v38 }
  0x78   : > { %v1057_v44 = vsub.f32 %v9245_v56, %v1025_v28  ;;  %v1066_v45 = vpack.c.bf16 %v1041_v33, %v1040_v30 }
  0x79   : > { %6938 = vmatpush3.bf16.msra.mxu0 %v1064_v29  ;;  %v905_v29 = vlaneseq  ;;  %v1026_v20 = vunpack.c.l.bf16 %v9286_v59  ;;  %v1027_v21 = vunpack.c.h.bf16 %v9286_v59 }
  0x7a   : > { %6970 = vmatpush3.bf16.msra.mxu1 %v1072_v51  ;;  %6939 = vmatprep.subr.bf16.mxu0 %v1065_v63  ;;  %v1010_v51 = vunpack.c.l.bf16 %v9272_v37  ;;  %v1074_v58 = vpack.c.bf16 %v1057_v44, %v1056_v43  ;;  %v12114_v43 = vmov 0 }
  0x7b   : > { %6971 = vmatprep.subr.bf16.mxu1 %v1073_v10  ;;  %v9288_v60 = vshrl.u32 %v905_v29, 7  ;;  %v9292_v14 = vand.u32 127, %v905_v29 }
  0x7d   : > { %6940 = vmatpush3.bf16.msra.mxu0 %v1065_v63  ;;  %v1042_v63 = vsub.f32 %v9259_v12, %v1010_v51  ;;  %v907_v28 = vadd.s32 8, %v9288_v60  ;;  %v908_v30 = vadd.s32 16, %v9288_v60  ;;  %vm9300_vm1 = vcmp.ge.s32.totalorder %v9288_v60, %v9292_v14 }
  0x7e   : > { %6972 = vmatpush3.bf16.msra.mxu1 %v1073_v10  ;;  %6941 = vmatprep.subr.bf16.mxu0 %v1066_v45  ;;  %v1043_v10 = vsub.f32 %v9262_v13, %v1011_v54  ;;  %v12115_v43 = vsel %vm9300_vm1, 4294967295, %v12114_v43  ;;  %v909_v29 = vadd.s32 24, %v9288_v60  ;;  %v910_v44 = vadd.s32 32, %v9288_v60 }
  0x7f   : > { %6973 = vmatprep.subr.bf16.mxu1 %v1074_v58  ;;  %12116 = vst [vmem:[#allocation6_spill] sm:$0xff] %v12115_v43  ;;  %v1059_v51 = vsub.f32 %v9278_v42, %v1027_v21  ;;  %vm9309_vm2 = vcmp.ge.s32.totalorder %v907_v28, %v9292_v14  ;;  %v12117_v54 = vmov 0  ;;  %vm9314_vm3 = vcmp.ge.s32.totalorder %v908_v30, %v9292_v14  ;;  %v1564_v30 = vld [vmem:[#allocation2 + $0x20] sm:$0xff] }
  0x80   : > { %v1067_v33 = vpack.c.bf16 %v1043_v10, %v1042_v63  ;;  %v12118_v54 = vsel %vm9309_vm2, 4294967295, %v12117_v54  ;;  %vm9322_vm4 = vmpackc.low %vm9309_vm2, %vm9300_vm1  ;;  %vm9327_vm5 = vcmp.ge.s32.totalorder %v909_v29, %v9292_v14  ;;  %v12125_v10 = vmov 0  ;;  %v1570_v63 = vld [vmem:[#allocation2 + $0x50] sm:$0xff] }
  0x81   : > { %6942 = vmatpush3.bf16.msra.mxu0 %v1066_v45  ;;  %v1058_v45 = vsub.f32 %v9275_v38, %v1026_v20  ;;  %12119 = vst [vmem:[#allocation7_spill] sm:$0xff] %v12118_v54  ;;  %v12126_v10 = vsel %vm9327_vm5, 4294967295, %v12125_v10  ;;  %v911_v20 = vadd.s32 40, %v9288_v60  ;;  %vm928_vm6 = vcmp.ge.s32.totalorder %v910_v44, %v9292_v14  ;;  %vm9340_vm7 = vmpackc.low %vm9327_vm5, %vm9314_vm3  ;;  %v1565_v44 = vld [vmem:[#allocation2 + $0x28] sm:$0xff] }
  0x82   : > { %6974 = vmatpush3.bf16.msra.mxu1 %v1074_v58  ;;  %v12120_v58 = vmov 0  ;;  %6943 = vmatprep.subr.bf16.mxu0 %v1067_v33  ;;  %12127 = vst [vmem:[#allocation9_spill] sm:$0xff] %v12126_v10  ;;  %v8786_v28 = vmov 1.0|1.0   ;;  %v913_v29 = vadd.s32 56, %v9288_v60 }
  0x83   : > { %v12121_v58 = vsel %vm9314_vm3, 4294967295, %v12120_v58  ;;  %v1075_v21 = vpack.c.bf16 %v1059_v51, %v1058_v45  ;;  %6945 = vmatprep.mubr.msk.bf16.mxu0 %vm9322_vm4, %v8786_v28  ;;  %6977 = vmatprep.mubr.msk.bf16.mxu1 %vm9322_vm4, %v8786_v28  ;;  %vm929_vm8 = vcmp.ge.s32.totalorder %v911_v20, %v9292_v14  ;;  %v914_v45 = vadd.s32 64, %v9288_v60 }
  0x84   : > { %12122 = vst [vmem:[#allocation8_spill] sm:$0xff] %v12121_v58  ;;  %vm9351_vm9 = vmpackc.low %vm929_vm8, %vm928_vm6  ;;  %v915_v51 = vadd.s32 72, %v9288_v60  ;;  %vm931_vm11 = vcmp.ge.s32.totalorder %v913_v29, %v9292_v14  ;;  %v917_v20 = vadd.s32 88, %v9288_v60  ;;  %v777_v29 = vmul.f32 1.442695, %v9071_v1 }
  0x85   : > { %6944 = vmatpush3.bf16.msra.mxu0 %v1067_v33  ;;  %v912_v33 = vadd.s32 48, %v9288_v60  ;;  %6975 = vmatprep.subr.bf16.mxu1 %v1075_v21  ;;  %vm932_vm12 = vcmp.ge.s32.totalorder %v914_v45, %v9292_v14  ;;  %v1562_v45 = vld [vmem:[#allocation2 + $0x10] sm:$0xff]  ;;  %v785_v1 = vmul.f32 1.442695, %v9121_v25 }
  0x86   : > { %6993 = vmatprep.subr.bf16.mxu0 %v9081_v4  ;;  %6976 = vmatpush3.bf16.msra.mxu1 %v1075_v21  ;;  %vm933_vm13 = vcmp.ge.s32.totalorder %v915_v51, %v9292_v14  ;;  %vm935_vm6 = vcmp.ge.s32.totalorder %v917_v20, %v9292_v14  ;;  %v1573_v20 = vld [vmem:[#allocation2 + $0x68] sm:$0xff]  ;;  %8371 = vpow2.f32 %v777_v29 }
  0x87   : > { %7025 = vmatprep.subr.bf16.mxu1 %v9088_v6  ;;  %vm930_vm10 = vcmp.ge.s32.totalorder %v912_v33, %v9292_v14  ;;  %vm9386_vm15 = vmpackc.low %vm933_vm13, %vm932_vm12  ;;  %v919_v33 = vadd.s32 104, %v9288_v60 }
  0x88   : > { %6946 = vmatmul.mubr.msk.bf16.vlgmr.msra.gmra.mrb[0].mxu0 %vm9340_vm7, %v8786_v28  ;;  %vm9379_vm14 = vmpackc.low %vm931_vm11, %vm930_vm10 }
  0x89   : > { %6994 = vmatpush3.bf16.msra.mxu0 %v9081_v4  ;;  %6949 = vmatprep.mubr.msk.bf16.mxu0 %vm9351_vm9, %v8786_v28  ;;  %vm937_vm10 = vcmp.ge.s32.totalorder %v919_v33, %v9292_v14  ;;  %v1572_v4 = vld [vmem:[#allocation2 + $0x60] sm:$0xff]  ;;  %v1574_v33 = vld [vmem:[#allocation2 + $0x70] sm:$0xff] }
  0x8a   : > { %6995 = vmatprep.subr.bf16.mxu0 %v9104_v15  ;;  %6978 = vmatmul.mubr.msk.bf16.vlgmr.msra.gmra.mrb[0].mxu1 %vm9340_vm7, %v8786_v28  ;;  %v7749_v21 = vpack.c.bf16 %v1573_v20, %v1572_v4  ;;  %v805_v20 = vmul.f32 1.442695, %v9259_v12  ;;  %v683_v12 = vld [vmem:[%s9047_s10 + $0x10] sm:$0xff] }
  0x8b   : > { %7026 = vmatpush3.bf16.msra.mxu1 %v9088_v6  ;;  %6981 = vmatprep.mubr.msk.bf16.mxu1 %vm9351_vm9, %v8786_v28  ;;  %v916_v6 = vadd.s32 80, %v9288_v60 }
  0x8c   : > { %7027 = vmatprep.subr.bf16.mxu1 %v9118_v24 }
  0x8d   : > { %6996 = vmatpush3.bf16.msra.mxu0 %v9104_v15  ;;  %v918_v15 = vadd.s32 96, %v9288_v60  ;;  %vm934_vm0 = vcmp.ge.s32.totalorder %v916_v6, %v9292_v14  ;;  %v7725_v6 = vpack.c.bf16 %v1565_v44, %v1564_v30 }
  0x8e   : > { %6997 = vmatprep.subr.bf16.mxu0 %v9138_v34  ;;  %vm9415_vm11 = vmpackc.low %vm935_vm6, %vm934_vm0 }
  0x8f   : > { %7028 = vmatpush3.bf16.msra.mxu1 %v9118_v24  ;;  %vm936_vm8 = vcmp.ge.s32.totalorder %v918_v15, %v9292_v14  ;;  %v1566_v15 = vld [vmem:[#allocation2 + $0x30] sm:$0xff] }
  0x90   : > { %6950 = vmatmul.mubr.msk.bf16.gmra.mrb[4].mxu0 %vm9379_vm14, %v8786_v28  ;;  %7029 = vmatprep.subr.bf16.mxu1 %v9146_v39  ;;  %vm9422_vm12 = vmpackc.low %vm937_vm10, %vm936_vm8  ;;  %vm1576_vm8 = vcmask 523264  }
  0x91   : > { %6998 = vmatpush3.bf16.msra.mxu0 %v9138_v34  ;;  %6953 = vmatprep.mubr.msk.bf16.mxu0 %vm9386_vm15, %v8786_v28  ;;  %v920_v34 = vadd.s32 112, %v9288_v60  ;;  %vm9467_vm10 = vmpackc.low %vm1576_vm8, %vm1576_vm8 }
  0x92   : > { %6999 = vmatprep.subr.bf16.mxu0 %v9160_v47  ;;  %6982 = vmatmul.mubr.msk.bf16.gmra.mrb[4].mxu1 %vm9379_vm14, %v8786_v28 }
  0x93   : > { %7030 = vmatpush3.bf16.msra.mxu1 %v9146_v39  ;;  %6985 = vmatprep.mubr.msk.bf16.mxu1 %vm9386_vm15, %v8786_v28  ;;  %v921_v39 = vadd.s32 120, %v9288_v60  ;;  %vm938_vm13 = vcmp.ge.s32.totalorder %v920_v34, %v9292_v14  ;;  %v1575_v34 = vld [vmem:[#allocation2 + $0x78] sm:$0xff] }
  0x94   : > { %7031 = vmatprep.subr.bf16.mxu1 %v9180_v57 }
  0x95   : > { %7000 = vmatpush3.bf16.msra.mxu0 %v9160_v47  ;;  %vm939_vm0 = vcmp.ge.s32.totalorder %v921_v39, %v9292_v14  ;;  %v1569_v14 = vld [vmem:[#allocation2 + $0x48] sm:$0xff]  ;;  %v7755_v39 = vpack.c.bf16 %v1575_v34, %v1574_v33  ;;  %v779_v47 = vmul.f32 1.442695, %v9074_v2  ;;  %v787_v2 = vmul.f32 1.442695, %v9124_v26  ;;  %v697_v34 = vld [vmem:[%s9047_s10 + $0x80] sm:$0xff] }
  0x96   : > { %7001 = vmatprep.subr.bf16.mxu0 %v9186_v61  ;;  %vm9447_vm6 = vmpackc.low %vm939_vm0, %vm938_vm13  ;;  %v823_v26 = vmul.f32 1.442695, %v9166_v49  ;;  %v827_v49 = vmul.f32 1.442695, %v9194_v9  ;;  %v831_v9 = vmul.f32 1.442695, %v9216_v27 }
  0x97   : > { %7032 = vmatpush3.bf16.msra.mxu1 %v9180_v57  ;;  %v1560_v57 = vld [vmem:[#allocation2] sm:$0xff]  ;;  %8373 = vpow2.f32 %v779_v47  ;;  %v835_v27 = vmul.f32 1.442695, %v9245_v56  ;;  %v807_v56 = vmul.f32 1.442695, %v9262_v13 }
  0x98   : > { %6954 = vmatmul.mubr.msk.bf16.gmra.mrb[8].mxu0 %vm9415_vm11, %v8786_v28  ;;  %7033 = vmatprep.subr.bf16.mxu1 %v9210_v22  ;;  %v837_v47 = vmul.f32 1.442695, %v9275_v38  ;;  %v700_v38 = vld [vmem:[%s9047_s10 + $0x98] sm:$0xff] }
  0x99   : > { %7002 = vmatpush3.bf16.msra.mxu0 %v9186_v61  ;;  %6957 = vmatprep.mubr.msk.bf16.mxu0 %vm9422_vm12, %v8786_v28  ;;  %v1561_v61 = vld [vmem:[#allocation2 + $0x8] sm:$0xff] }
  0x9a   : > { %7003 = vmatprep.subr.bf16.mxu0 %v9222_v35  ;;  %6986 = vmatmul.mubr.msk.bf16.gmra.mrb[8].mxu1 %vm9415_vm11, %v8786_v28 }
  0x9b   : > { %7034 = vmatpush3.bf16.msra.mxu1 %v9210_v22  ;;  %6989 = vmatprep.mubr.msk.bf16.mxu1 %vm9422_vm12, %v8786_v28  ;;  %v7713_v22 = vpack.c.bf16 %v1561_v61, %v1560_v57  ;;  %v809_v57 = vmul.f32 1.442695, %v9077_v3  ;;  %v811_v61 = vmul.f32 1.442695, %v9084_v5  ;;  %v817_v3 = vmul.f32 1.442695, %v9131_v31 }
  0x9c   : > { %7035 = vmatprep.subr.bf16.mxu1 %v9226_v36  ;;  %v819_v5 = vmul.f32 1.442695, %v9134_v32  ;;  %v793_v32 = vmul.f32 1.442695, %v9170_v52  ;;  %v797_v52 = vmul.f32 1.442695, %v9201_v18 }
  0x9d   : > { %7004 = vmatpush3.bf16.msra.mxu0 %v9222_v35  ;;  %v1568_v35 = vld [vmem:[#allocation2 + $0x40] sm:$0xff]  ;;  %8375 = vpow2.f32 %v809_v57  ;;  %v801_v18 = vmul.f32 1.442695, %v9235_v46  ;;  %v839_v57 = vmul.f32 1.442695, %v9278_v42 }
  0x9e   : > { %7005 = vmatprep.subr.bf16.mxu0 %v9252_v62  ;;  %8377 = vpow2.f32 %v811_v61  ;;  %v9629_v61 = vsub.s32 0, %v9288_v60  ;;  %v685_v42 = vld [vmem:[%s9047_s10 + $0x20] sm:$0xff] }
  0x9f   : > { %7036 = vmatpush3.bf16.msra.mxu1 %v9226_v36  ;;  %v12142_v36 = vmov 0 }
  0xa0   : > { %6958 = vmatmul.mubr.msk.bf16.gmra.mrb[12].mxu0 %vm9447_vm6, %v8786_v28  ;;  %7037 = vmatprep.subr.bf16.mxu1 %v9256_v11  ;;  %v12143_v36 = vsel %vm9467_vm10, 4294967295, %v12142_v36 }
  0xa1   : > { %7006 = vmatpush3.bf16.msra.mxu0 %v9252_v62  ;;  %7009 = vmatprep.mubr.msk.bf16.mxu0 %vm9322_vm4, %v8786_v28  ;;  %12144 = vst [vmem:[#allocation10_spill] sm:$0xff] %v12143_v36  ;;  %v7737_v62 = vpack.c.bf16 %v1569_v14, %v1568_v35  ;;  %v783_v35 = vmul.f32 1.442695, %v9094_v8  ;;  %v813_v14 = vmul.f32 1.442695, %v9107_v16  ;;  %v9566_v16 = vpop.eup %8371 }
  0xa2   : > { %7007 = vmatprep.subr.bf16.mxu0 %v9272_v37  ;;  %6990 = vmatmul.mubr.msk.bf16.gmra.mrb[12].mxu1 %vm9447_vm6, %v8786_v28  ;;  %v791_v8 = vmul.f32 1.442695, %v9152_v41  ;;  %v9569_v25 = vpop.eup %8373 }
  0xa3   : > { %7038 = vmatpush3.bf16.msra.mxu1 %v9256_v11  ;;  %7041 = vmatprep.mubr.msk.bf16.mxu1 %vm9322_vm4, %v8786_v28  ;;  %v1563_v11 = vld [vmem:[#allocation2 + $0x18] sm:$0xff]  ;;  %vm2323_vm4 = vcmask 261120  }
  0xa4   : > { %7039 = vmatprep.subr.bf16.mxu1 %v9286_v59 }
  0xa5   : > { %7008 = vmatpush3.bf16.msra.mxu0 %v9272_v37  ;;  %v7719_v37 = vpack.c.bf16 %v1563_v11, %v1562_v45 }
  0xa6   : > { %7715 = vmatprep.subr.msk.bf16.mxu0 %vm9467_vm10, %v7713_v22 }
  0xa7   : > { %7040 = vmatpush3.bf16.msra.mxu1 %v9286_v59  ;;  %v1571_v59 = vld [vmem:[#allocation2 + $0x58] sm:$0xff]  ;;  %v9572_v31 = vpop.eup %8375 }
  0xa8   : > { %7010 = vmatmul.mubr.msk.bf16.vlgmr.msra.gmra.mrb[0].mxu0 %vm9340_vm7, %v8786_v28  ;;  %7739 = vmatprep.subr.msk.bf16.mxu1 %vm9467_vm10, %v7737_v62  ;;  %v7743_v51 = vpack.c.bf16 %v1571_v59, %v1570_v63  ;;  %v9575_v45 = vpop.eup %8377 }
  0xa9   : > { %7013 = vmatprep.mubr.msk.bf16.mxu0 %vm9351_vm9, %v8786_v28 }
  0xaa   : > { %7042 = vmatmul.mubr.msk.bf16.vlgmr.msra.gmra.mrb[0].mxu1 %vm9340_vm7, %v8786_v28  ;;  %vm5010_vm7 = vcmask 785408  }
  0xab   : > { %7045 = vmatprep.mubr.msk.bf16.mxu1 %vm9351_vm9, %v8786_v28 }
  0xae   : > { %7718 = vmatpush3.bf16.xpose.msk.msra.mxu0 %vm9467_vm10, %v7713_v22  ;;  %v781_v22 = vmul.f32 1.442695, %v9091_v7  ;;  %v789_v7 = vmul.f32 1.442695, %v9149_v40  ;;  %v795_v40 = vmul.f32 1.442695, %v9173_v53 }
  0xaf   : > { %7721 = vmatprep.subr.msk.bf16.mxu0 %vm9467_vm10, %v7719_v37  ;;  %v799_v53 = vmul.f32 1.442695, %v9204_v19  ;;  %v803_v19 = vmul.f32 1.442695, %v9238_v50  ;;  %v842_v50 = vsub.f32 1.0, %v9569_v25  ;;  %v703_v25 = vld [vmem:[%s9047_s10 + $0xb0] sm:$0xff] }
  0xb0   : > { %7014 = vmatmul.mubr.msk.bf16.gmra.mrb[4].mxu0 %vm9379_vm14, %v8786_v28  ;;  %7742 = vmatpush3.bf16.xpose.msk.msra.mxu1 %vm9467_vm10, %v7737_v62  ;;  %v815_v62 = vmul.f32 1.442695, %v9110_v17  ;;  %8379 = vpow2.f32 %v781_v22  ;;  %v821_v17 = vmul.f32 1.442695, %v9163_v48  ;;  %v825_v48 = vmul.f32 1.442695, %v9191_v0 }
  0xb1   : > { %7017 = vmatprep.mubr.msk.bf16.mxu0 %vm9386_vm15, %v8786_v28  ;;  %7745 = vmatprep.subr.msk.bf16.mxu1 %vm9467_vm10, %v7743_v51  ;;  %8381 = vpow2.f32 %v783_v35  ;;  %v829_v0 = vmul.f32 1.442695, %v9213_v23  ;;  %v833_v23 = vmul.f32 1.442695, %v9242_v55  ;;  %v682_v55 = vld [vmem:[%s9047_s10 + $0x8] sm:$0xff]  ;;  %v684_v22 = vld [vmem:[%s9047_s10 + $0x18] sm:$0xff] }
  0xb2   : > { %7046 = vmatmul.mubr.msk.bf16.gmra.mrb[4].mxu1 %vm9379_vm14, %v8786_v28  ;;  %8383 = vpow2.f32 %v813_v14  ;;  %v9634_v13 = vmul.f32 0.125, %v682_v55  ;;  %v688_v55 = vld [vmem:[%s9047_s10 + $0x38] sm:$0xff] }
  0xb3   : > { %7049 = vmatprep.mubr.msk.bf16.mxu1 %vm9386_vm15, %v8786_v28  ;;  %8385 = vpow2.f32 %v815_v62 }
  0xb4   : > { %8387 = vpow2.f32 %v785_v1  ;;  %12145 = vst [vmem:[#allocation11_spill] sm:$0xff] %v9634_v13  ;;  %v701_v1 = vld [vmem:[%s9047_s10 + $0xa0] sm:$0xff] }
  0xb5   : > { %8389 = vpow2.f32 %v787_v2 }
  0xb6   : > { %7724 = vmatpush3.bf16.xpose.msk.msra.mxu0 %vm9467_vm10, %v7719_v37  ;;  %8391 = vpow2.f32 %v817_v3  ;;  %v9645_v3 = vmul.f32 0.125, %v697_v34 }
  0xb7   : > { %7727 = vmatprep.subr.msk.bf16.mxu0 %vm9467_vm10, %v7725_v6  ;;  %8393 = vpow2.f32 %v819_v5  ;;  %v9647_v5 = vmul.f32 0.125, %v683_v12 }
  0xb8   : > { %7018 = vmatmul.mubr.msk.bf16.gmra.mrb[8].mxu0 %vm9415_vm11, %v8786_v28  ;;  %7748 = vmatpush3.bf16.xpose.msk.msra.mxu1 %vm9467_vm10, %v7743_v51  ;;  %8395 = vpow2.f32 %v789_v7  ;;  %12147 = vst [vmem:[#allocation13_spill] sm:$0xff] %v9645_v3 }
  0xb9   : > { %7021 = vmatprep.mubr.msk.bf16.mxu0 %vm9422_vm12, %v8786_v28  ;;  %7751 = vmatprep.subr.msk.bf16.mxu1 %vm9467_vm10, %v7749_v21  ;;  %8397 = vpow2.f32 %v791_v8  ;;  %12148 = vst [vmem:[#allocation14_spill] sm:$0xff] %v9647_v5  ;;  %v841_v8 = vsub.f32 1.0, %v9566_v16 }
  0xba   : > { %7050 = vmatmul.mubr.msk.bf16.gmra.mrb[8].mxu1 %vm9415_vm11, %v8786_v28  ;;  %v9578_v41 = vpop.eup %8379  ;;  %8399 = vpow2.f32 %v821_v17  ;;  %v687_v17 = vld [vmem:[%s9047_s10 + $0x30] sm:$0xff] }
  0xbb   : > { %7053 = vmatprep.mubr.msk.bf16.mxu1 %vm9422_vm12, %v8786_v28  ;;  %v9581_v11 = vpop.eup %8381  ;;  %8401 = vpow2.f32 %v823_v26 }
  0xbc   : > { %v9584_v37 = vpop.eup %8383  ;;  %8403 = vpow2.f32 %v793_v32  ;;  %v9656_v32 = vmul.f32 0.125, %v684_v22 }
  0xbd   : > { %v9587_v63 = vpop.eup %8385  ;;  %8405 = vpow2.f32 %v795_v40  ;;  %v746_v40 = vld [vmem:[%s9040_s7 + $0x8] sm:$0xff] }
  0xbe   : > { %7730 = vmatpush3.bf16.xpose.msk.msra.mxu0 %vm9467_vm10, %v7725_v6  ;;  %v9590_v59 = vpop.eup %8387  ;;  %8407 = vpow2.f32 %v825_v48  ;;  %v857_v48 = vsub.f32 1.0, %v9572_v31  ;;  %v748_v31 = vld [vmem:[%s9040_s7 + $0x18] sm:$0xff]  ;;  %v9688_v12 = vmul.f32 %v842_v50, %v746_v40  ;;  %v860_v50 = vsub.f32 1.0, %v9587_v63 }
  0xbf   : > { %v9593_v51 = vpop.eup %8389  ;;  %8409 = vpow2.f32 %v827_v49  ;;  %v747_v49 = vld [vmem:[%s9040_s7 + $0x10] sm:$0xff] }
  0xc0   : > { %7022 = vmatmul.mubr.msk.bf16.gmra.mrb[12].mxu0 %vm9447_vm6, %v8786_v28  ;;  %7754 = vmatpush3.bf16.xpose.msk.msra.mxu1 %vm9467_vm10, %v7749_v21  ;;  %v9596_v30 = vpop.eup %8391  ;;  %8411 = vpow2.f32 %v797_v52  ;;  %v843_v52 = vsub.f32 1.0, %v9578_v41  ;;  %v9677_v41 = vsub.s32 7, %v9288_v60  ;;  %12151 = vst [vmem:[#allocation17_spill] sm:$0xff] %v9688_v12  ;;  %v9692_v60 = vmul.f32 0.125, %v703_v25 }
  0xc1   : > { %7757 = vmatprep.subr.msk.bf16.mxu1 %vm9467_vm10, %v7755_v39  ;;  %v9599_v44 = vpop.eup %8393  ;;  %8413 = vpow2.f32 %v799_v53  ;;  %v9665_v53 = vmul.f32 0.125, %v700_v38 }
  0xc2   : > { %7054 = vmatmul.mubr.msk.bf16.gmra.mrb[12].mxu1 %vm9447_vm6, %v8786_v28  ;;  %v1567_v28 = vld [vmem:[#allocation2 + $0x38] sm:$0xff]  ;;  %v9602_v4 = vpop.eup %8395  ;;  %8415 = vpow2.f32 %v829_v0  ;;  %v9667_v0 = vmul.f32 0.125, %v685_v42  ;;  %12153 = vst [vmem:[#allocation19_spill] sm:$0xff] %v9692_v60  ;;  %v9703_v42 = vmul.f32 %v843_v52, %v747_v49 }
  0xc3   : > { %v7731_v24 = vpack.c.bf16 %v1567_v28, %v1566_v15  ;;  %v9605_v6 = vpop.eup %8397  ;;  %8417 = vpow2.f32 %v831_v9  ;;  %v698_v15 = vld [vmem:[%s9047_s10 + $0x88] sm:$0xff]  ;;  %v681_v28 = vld [vmem:[%s9047_s10] sm:$0xff]  ;;  %v9669_v9 = vmul.f32 0.125, %v701_v1  ;;  %v691_v1 = vld [vmem:[%s9047_s10 + $0x50] sm:$0xff] }
  0xc4   : > { %v9608_v46 = vpop.eup %8399  ;;  %8419 = vpow2.f32 %v801_v18  ;;  %v9636_v14 = vmul.f32 0.125, %v698_v15  ;;  %v9638_v62 = vmul.f32 0.125, %v681_v28  ;;  %v686_v18 = vld [vmem:[%s9047_s10 + $0x28] sm:$0xff]  ;;  %v704_v15 = vld [vmem:[%s9047_s10 + $0xb8] sm:$0xff]  ;;  %v689_v28 = vld [vmem:[%s9047_s10 + $0x40] sm:$0xff]  ;;  %12156 = vst [vmem:[#allocation22_spill] sm:$0xff] %v9703_v42 }
  0xc5   : > { %7733 = vmatprep.subr.msk.bf16.mxu0 %vm9467_vm10, %v7731_v24  ;;  %v9611_v21 = vpop.eup %8401  ;;  %8421 = vpow2.f32 %v803_v19  ;;  %v702_v19 = vld [vmem:[%s9047_s10 + $0xa8] sm:$0xff]  ;;  %v9711_v10 = vmul.f32 0.125, %v686_v18  ;;  %v9728_v42 = vmul.f32 0.125, %v704_v15  ;;  %v9730_v18 = vmul.f32 0.125, %v689_v28  ;;  %v695_v15 = vld [vmem:[%s9047_s10 + $0x70] sm:$0xff] }
  0xc6   : > { %7736 = vmatpush3.bf16.xpose.msk.msra.mxu0 %vm9467_vm10, %v7731_v24  ;;  %v9617_v33 = vpop.eup %8403  ;;  %v858_v24 = vsub.f32 1.0, %v9575_v45  ;;  %8423 = vpow2.f32 %v833_v23  ;;  %12146 = vst [vmem:[#allocation12_spill] sm:$0xff] %v9636_v14  ;;  %v745_v45 = vld [vmem:[%s9040_s7] sm:$0xff]  ;;  %v9713_v58 = vmul.f32 0.125, %v702_v19 }
  0xc7   : > { %v9624_v29 = vpop.eup %8405  ;;  %8425 = vpow2.f32 %v835_v27  ;;  %v844_v27 = vsub.f32 1.0, %v9581_v11  ;;  %v9686_v34 = vmul.f32 %v841_v8, %v745_v45  ;;  %v705_v11 = vld [vmem:[%s9047_s10 + $0xc0] sm:$0xff]  ;;  %v9699_v22 = vmul.f32 %v857_v48, %v745_v45  ;;  %v708_v48 = vld [vmem:[%s9047_s10 + $0xd8] sm:$0xff]  ;;  %12161 = vst [vmem:[#allocation27_spill] sm:$0xff] %v9728_v42  ;;  %12162 = vst [vmem:[#allocation28_spill] sm:$0xff] %v9730_v18 }
  0xc8   : > { %7760 = vmatpush3.bf16.xpose.msk.msra.mxu1 %vm9467_vm10, %v7755_v39  ;;  %v699_v39 = vld [vmem:[%s9047_s10 + $0x90] sm:$0xff]  ;;  %v9632_v35 = vpop.eup %8407  ;;  %8427 = vpow2.f32 %v805_v20  ;;  %v859_v20 = vsub.f32 1.0, %v9584_v37  ;;  %v690_v37 = vld [vmem:[%s9047_s10 + $0x48] sm:$0xff]  ;;  %v9701_v38 = vmul.f32 %v858_v24, %v746_v40  ;;  %v761_v8 = vld [vmem:[%s9045_s15] sm:$0xff]  ;;  %v9715_v45 = vmul.f32 0.125, %v688_v55 }
  0xc9   : > { %v9643_v2 = vpop.eup %8409  ;;  %v9649_v7 = vmul.f32 0.125, %v699_v39  ;;  %8429 = vpow2.f32 %v807_v56  ;;  %12150 = vst [vmem:[#allocation16_spill] sm:$0xff] %v9686_v34  ;;  %v9690_v39 = vmul.f32 0.125, %v687_v17  ;;  %12154 = vst [vmem:[#allocation20_spill] sm:$0xff] %v9699_v22  ;;  %v762_v17 = vld [vmem:[%s9045_s15 + $0x8] sm:$0xff]  ;;  %v707_v24 = vld [vmem:[%s9047_s10 + $0xd0] sm:$0xff]  ;;  %v9724_v54 = vmul.f32 %v844_v27, %v748_v31 }
  0xca   : > { %v9654_v26 = vpop.eup %8411  ;;  %8431 = vpow2.f32 %v837_v47  ;;  %v706_v47 = vld [vmem:[%s9047_s10 + $0xc8] sm:$0xff]  ;;  %12155 = vst [vmem:[#allocation21_spill] sm:$0xff] %v9701_v38  ;;  %12157 = vst [vmem:[#allocation23_spill] sm:$0xff] %v9715_v45  ;;  %v692_v40 = vld [vmem:[%s9047_s10 + $0x58] sm:$0xff]  ;;  %v9720_v52 = vpack.c.bf16 %v762_v17, %v761_v8  ;;  %v9726_v43 = vmul.f32 %v859_v20, %v747_v49  ;;  %5551 = vxpose.xlu0.b32.start [1/16] (narrow) %v761_v8, 64  ;;  %v9739_v60 = vmul.f32 0.125, %v690_v37 }
  0xcb   : > { %12149 = vst [vmem:[#allocation15_spill] sm:$0xff] %v9649_v7  ;;  %v9663_v16 = vpop.eup %8413  ;;  %8433 = vpow2.f32 %v839_v57  ;;  %12152 = vst [vmem:[#allocation18_spill] sm:$0xff] %v9690_v39  ;;  %v693_v19 = vld [vmem:[%s9047_s10 + $0x60] sm:$0xff]  ;;  %v694_v45 = vld [vmem:[%s9047_s10 + $0x68] sm:$0xff]  ;;  %v9741_v49 = vmul.f32 0.125, %v706_v47  ;;  %v9743_v27 = vmul.f32 0.125, %v691_v1 }
  0xcc   : > { %v9674_v23 = vpop.eup %8415  ;;  %12158 = vst [vmem:[#allocation24_spill] sm:$0xff] %v9720_v52  ;;  %12159 = vst [vmem:[#allocation25_spill] sm:$0xff] %v9724_v54  ;;  %v709_v55 = vld [vmem:[%s9047_s10 + $0xe0] sm:$0xff]  ;;  %v9737_v52 = vmul.f32 0.125, %v705_v11  ;;  %v710_v20 = vld [vmem:[%s9047_s10 + $0xe8] sm:$0xff]  ;;  %v9751_v54 = vmul.f32 0.125, %v707_v24 }
  0xcd   : > { %v9684_v56 = vpop.eup %8417  ;;  %12160 = vst [vmem:[#allocation26_spill] sm:$0xff] %v9726_v43  ;;  %12164 = vst [vmem:[#allocation30_spill] sm:$0xff] %v9739_v60  ;;  %v9749_v43 = vmul.f32 %v860_v50, %v748_v31  ;;  %v9753_v8 = vmul.f32 0.125, %v692_v40  ;;  %v9755_v11 = vmul.f32 0.125, %v708_v48  ;;  %v711_v37 = vld [vmem:[%s9047_s10 + $0xf0] sm:$0xff]  ;;  %v696_v60 = vld [vmem:[%s9047_s10 + $0x78] sm:$0xff] }
  0xce   : > { %v9697_v57 = vpop.eup %8419  ;;  %12163 = vst [vmem:[#allocation29_spill] sm:$0xff] %v9737_v52  ;;  %12165 = vst [vmem:[#allocation31_spill] sm:$0xff] %v9741_v49  ;;  %v712_v47 = vld [vmem:[%s9047_s10 + $0xf8] sm:$0xff]  ;;  %v9760_v49 = vmul.f32 0.125, %v693_v19  ;;  %v9762_v1 = vmul.f32 0.125, %v709_v55  ;;  %v763_v52 = vld [vmem:[%s9045_s15 + $0x10] sm:$0xff] }
  0xcf   : > { %v9709_v25 = vpop.eup %8421  ;;  %12166 = vst [vmem:[#allocation32_spill] sm:$0xff] %v9743_v27  ;;  %12167 = vst [vmem:[#allocation33_spill] sm:$0xff] %v9749_v43  ;;  %v9764_v27 = vmul.f32 0.125, %v694_v45  ;;  %v764_v31 = vld [vmem:[%s9045_s15 + $0x18] sm:$0xff]  ;;  %v845_v50 = vsub.f32 1.0, %v9590_v59  ;;  %v9771_v40 = vmul.f32 0.125, %v710_v20 }
  0xd0   : > { %v9722_v63 = vpop.eup %8423  ;;  %12168 = vst [vmem:[#allocation34_spill] sm:$0xff] %v9751_v54  ;;  %12169 = vst [vmem:[#allocation35_spill] sm:$0xff] %v9753_v8  ;;  %v9773_v48 = vmul.f32 0.125, %v695_v15  ;;  %v749_v19 = vld [vmem:[%s9040_s7 + $0x20] sm:$0xff]  ;;  %v846_v55 = vsub.f32 1.0, %v9593_v51  ;;  %5552 = vxpose.xlu0.b32.cont [2/16] (narrow) %v762_v17, 64 }
  0xd1   : > { %v9735_v36 = vpop.eup %8425  ;;  %12170 = vst [vmem:[#allocation36_spill] sm:$0xff] %v9755_v11  ;;  %12171 = vst [vmem:[#allocation37_spill] sm:$0xff] %v9760_v49  ;;  %v9775_v11 = vpack.c.bf16 %v764_v31, %v763_v52  ;;  %v9785_v59 = vmul.f32 0.125, %v712_v47  ;;  %v750_v20 = vld [vmem:[%s9040_s7 + $0x28] sm:$0xff]  ;;  %v861_v15 = vsub.f32 1.0, %v9596_v30  ;;  %v847_v51 = vsub.f32 1.0, %v9602_v4 }
  0xd2   : > { %v9747_v28 = vpop.eup %8427  ;;  %12172 = vst [vmem:[#allocation38_spill] sm:$0xff] %v9762_v1  ;;  %12173 = vst [vmem:[#allocation39_spill] sm:$0xff] %v9764_v27  ;;  %v9781_v27 = vmul.f32 0.125, %v711_v37  ;;  %v9783_v1 = vmul.f32 0.125, %v696_v60  ;;  %v848_v17 = vsub.f32 1.0, %v9605_v6  ;;  %v863_v37 = vsub.f32 1.0, %v9608_v46 }
  0xd3   : > { %v9769_v24 = vpop.eup %8429  ;;  %12174 = vst [vmem:[#allocation40_spill] sm:$0xff] %v9771_v40  ;;  %12175 = vst [vmem:[#allocation41_spill] sm:$0xff] %v9773_v48  ;;  %v862_v40 = vsub.f32 1.0, %v9599_v44  ;;  %v9795_v60 = vmul.f32 %v845_v50, %v749_v19  ;;  %v752_v47 = vld [vmem:[%s9040_s7 + $0x38] sm:$0xff]  ;;  %v850_v30 = vsub.f32 1.0, %v9624_v29  ;;  %v9802_v48 = vmul.f32 %v846_v55, %v750_v20  ;;  %v753_v44 = vld [vmem:[%s9040_s7 + $0x40] sm:$0xff] }
  0xd4   : > { %12176 = vst [vmem:[#allocation42_spill] sm:$0xff] %v9775_v11  ;;  %v9779_v45 = vpop.eup %8431  ;;  %12178 = vst [vmem:[#allocation44_spill] sm:$0xff] %v9781_v27  ;;  %v849_v27 = vsub.f32 1.0, %v9617_v33  ;;  %v754_v4 = vld [vmem:[%s9040_s7 + $0x48] sm:$0xff]  ;;  %v865_v6 = vsub.f32 1.0, %v9632_v35  ;;  %v866_v49 = vsub.f32 1.0, %v9643_v2  ;;  %v9809_v50 = vmul.f32 %v861_v15, %v749_v19 }
  0xd5   : > { %12177 = vst [vmem:[#allocation43_spill] sm:$0xff] %v9779_v45  ;;  %12179 = vst [vmem:[#allocation45_spill] sm:$0xff] %v9783_v1  ;;  %v9789_v11 = vpop.eup %8433  ;;  %v751_v1 = vld [vmem:[%s9040_s7 + $0x30] sm:$0xff]  ;;  %v851_v46 = vsub.f32 1.0, %v9654_v26  ;;  %5553 = vxpose.xlu0.b32.cont [3/16] (narrow) %v763_v52, 64  ;;  %v867_v33 = vsub.f32 1.0, %v9674_v23  ;;  %v9815_v55 = vmul.f32 %v862_v40, %v750_v20  ;;  %v9819_v35 = vmul.f32 %v848_v17, %v752_v47 }
  0xd6   : > { %12180 = vst [vmem:[#allocation46_spill] sm:$0xff] %v9785_v59  ;;  %12181 = vst [vmem:[#allocation47_spill] sm:$0xff] %v9789_v11  ;;  %v864_v59 = vsub.f32 1.0, %v9611_v21  ;;  %v852_v21 = vsub.f32 1.0, %v9663_v16  ;;  %v868_v29 = vsub.f32 1.0, %v9684_v56  ;;  %v9821_v2 = vmul.f32 %v863_v37, %v751_v1  ;;  %v756_v26 = vld [vmem:[%s9040_s7 + $0x58] sm:$0xff] }
  0xd7   : > { %12182 = vst [vmem:[#allocation48_spill] sm:$0xff] %v9795_v60  ;;  %12183 = vst [vmem:[#allocation49_spill] sm:$0xff] %v9802_v48  ;;  %v755_v60 = vld [vmem:[%s9040_s7 + $0x50] sm:$0xff]  ;;  %v9817_v48 = vmul.f32 %v847_v51, %v751_v1  ;;  %v9826_v19 = vmul.f32 %v849_v27, %v753_v44  ;;  %v9828_v16 = vmul.f32 %v850_v30, %v754_v4  ;;  %v853_v23 = vsub.f32 1.0, %v9697_v57  ;;  %v9840_v1 = vld [vmem:[%s9040_s7 + $0x60] sm:$0xff] }
  0xd8   : > { %12184 = vst [vmem:[#allocation50_spill] sm:$0xff] %v9809_v50  ;;  %12185 = vst [vmem:[#allocation51_spill] sm:$0xff] %v9815_v55  ;;  %v9824_v52 = vmul.f32 %v864_v59, %v752_v47  ;;  %v9833_v40 = vmul.f32 %v865_v6, %v753_v44  ;;  %v9835_v20 = vmul.f32 %v866_v49, %v754_v4  ;;  %v854_v59 = vsub.f32 1.0, %v9709_v25  ;;  %v9853_v47 = vld [vmem:[%s9040_s7 + $0x68] sm:$0xff]  ;;  %v8703_v30 = vld [vmem:[%s9049_s26] sm:$0xff] }
  0xd9   : > { %12186 = vst [vmem:[#allocation52_spill] sm:$0xff] %v9817_v48  ;;  %12187 = vst [vmem:[#allocation53_spill] sm:$0xff] %v9819_v35  ;;  %v9837_v15 = vmul.f32 %v851_v46, %v755_v60  ;;  %v9846_v17 = vmul.f32 %v852_v21, %v756_v26  ;;  %v9848_v37 = vmul.f32 %v867_v33, %v755_v60  ;;  %5554 = vxpose.xlu0.b32.cont [4/16] (narrow) %v764_v31, 64 }
  0xda   : > { %12188 = vst [vmem:[#allocation54_spill] sm:$0xff] %v9821_v2  ;;  %12189 = vst [vmem:[#allocation55_spill] sm:$0xff] %v9824_v52  ;;  %v9850_v57 = vmul.f32 %v868_v29, %v756_v26  ;;  %v869_v4 = vsub.f32 1.0, %v9722_v63  ;;  %v9870_v31 = vmul.f32 %v853_v23, %v9840_v1  ;;  %v9882_v6 = vmul.f32 %v854_v59, %v9853_v47  ;;  %v759_v52 = vld [vmem:[%s9040_s7 + $0x70] sm:$0xff] }
  0xdb   : > { %12190 = vst [vmem:[#allocation56_spill] sm:$0xff] %v9826_v19  ;;  %12191 = vst [vmem:[#allocation57_spill] sm:$0xff] %v9828_v16 }
  0xdc   : > { %12193 = vst [vmem:[#allocation59_spill] sm:$0xff] %v9833_v40  ;;  %12194 = vst [vmem:[#allocation60_spill] sm:$0xff] %v9835_v20 }
  0xdd   : > { %12195 = vst [vmem:[#allocation61_spill] sm:$0xff] %v9837_v15  ;;  %12197 = vst [vmem:[#allocation63_spill] sm:$0xff] %v9846_v17 }
  0xde   : > { %12198 = vst [vmem:[#allocation64_spill] sm:$0xff] %v9848_v37  ;;  %12199 = vst [vmem:[#allocation65_spill] sm:$0xff] %v9850_v57  ;;  %v8704_v37 = vld [vmem:[%s9049_s26 + $0x80] sm:$0xff] }
  0xdf   : > { %12203 = vst [vmem:[#allocation69_spill] sm:$0xff] %v9870_v31  ;;  %12206 = vst [vmem:[#allocation72_spill] sm:$0xff] %v9882_v6 }
 0x17b   : > { %v9831_v56 = vpop.f32.mrb[0].mxu0 }
 0x17c   : > { %12192 = vst [vmem:[#allocation58_spill] sm:$0xff] %v9831_v56  ;;  %v1468_v27 = vmul.f32 1.442695, %v9831_v56  ;;  %v9844_v51 = vpop.f32.mrb[1].mxu0 }
 0x17d   : > { %12196 = vst [vmem:[#allocation62_spill] sm:$0xff] %v9844_v51  ;;  %v1464_v49 = vmul.f32 1.442695, %v9844_v51  ;;  %v9858_v44 = vsub.f32 %v9844_v51, %v8703_v30  ;;  %v9860_v25 = vpop.f32.mrb[2].mxu0  ;;  %v9864_v60 = vpop.f32.mrb[0].mxu1 }
 0x17e   : > { %12200 = vst [vmem:[#allocation66_spill] sm:$0xff] %v9860_v25  ;;  %12201 = vst [vmem:[#allocation67_spill] sm:$0xff] %v9864_v60  ;;  %v1470_v46 = vmul.f32 1.442695, %v9860_v25  ;;  %v9867_v21 = vpop.f32.mrb[3].mxu0  ;;  %8435 = vpow2.f32 %v1468_v27  ;;  %v9879_v30 = vpop.f32.mrb[1].mxu1 }
 0x17f   : > { %12202 = vst [vmem:[#allocation68_spill] sm:$0xff] %v9867_v21  ;;  %v1500_v26 = vmul.f32 1.442695, %v9864_v60  ;;  %v9877_v63 = vrot.slane %v9858_v44, %v9629_v61  ;;  %12205 = vst [vmem:[#allocation71_spill] sm:$0xff] %v9879_v30  ;;  %8437 = vpow2.f32 %v1464_v49  ;;  %v1496_v23 = vmul.f32 1.442695, %v9879_v30 }
 0x180   : > { %v9887_v33 = vsub.f32 %v9879_v30, %v8704_v37  ;;  %v9889_v29 = vpop.f32.mrb[2].mxu1  ;;  %v1466_v27 = vmul.f32 1.442695, %v9867_v21  ;;  %8439 = vpow2.f32 %v1470_v46 }
 0x181   : > { %12204 = vst [vmem:[#allocation70_spill] sm:$0xff] %v9877_v63  ;;  %12207 = vst [vmem:[#allocation73_spill] sm:$0xff] %v9889_v29  ;;  %v2021_v15 = vsub.f32 %v9844_v51, %v9877_v63  ;;  %v2053_v31 = vsub.f32 %v9877_v63, %v9844_v51  ;;  %v2024_v59 = vsub.f32 %v9860_v25, %v9877_v63  ;;  %v9898_v49 = vpop.f32.mrb[3].mxu1  ;;  %8441 = vpow2.f32 %v1500_v26 }
 0x182   : > { %12208 = vst [vmem:[#allocation74_spill] sm:$0xff] %v9898_v49  ;;  %v9902_v37 = vrot.slane %v9887_v33, %v9629_v61  ;;  %v2056_v6 = vsub.f32 %v9877_v63, %v9860_v25  ;;  %v1502_v2 = vmul.f32 1.442695, %v9889_v29  ;;  %8443 = vpow2.f32 %v1496_v23 }
 0x183   : > { %v2029_v48 = vmul.f32 1.442695, %v2021_v15  ;;  %v2061_v57 = vmin.f32 %v2053_v31, 60.0  ;;  %v2035_v51 = vmul.f32 1.442695, %v2024_v59  ;;  %v9907_v46 = vpop.f32.mrb[4].mxu0  ;;  %8445 = vpow2.f32 %v1466_v27 }
 0x184   : > { %12209 = vst [vmem:[#allocation75_spill] sm:$0xff] %v9902_v37  ;;  %12210 = vst [vmem:[#allocation76_spill] sm:$0xff] %v9907_v46  ;;  %v2025_v17 = vsub.f32 %v9879_v30, %v9902_v37  ;;  %v2057_v26 = vsub.f32 %v9902_v37, %v9879_v30  ;;  %v2064_v20 = vmin.f32 %v2056_v6, 60.0  ;;  %v9913_v40 = vpop.f32.mrb[5].mxu0  ;;  %8447 = vpow2.f32 %v1502_v2 }
 0x185   : > { %12211 = vst [vmem:[#allocation77_spill] sm:$0xff] %v9913_v40  ;;  %v2069_v16 = vmul.f32 1.442695, %v2061_v57  ;;  %v2028_v15 = vsub.f32 %v9889_v29, %v9902_v37  ;;  %v2060_v31 = vsub.f32 %v9902_v37, %v9889_v29  ;;  %v9919_v23 = vpop.f32.mrb[6].mxu0  ;;  %8449 = vpow2.f32 %v2029_v48  ;;  %v9921_v6 = vpop.f32.mrb[4].mxu1 }
 0x186   : > { %12212 = vst [vmem:[#allocation78_spill] sm:$0xff] %v9919_v23  ;;  %v2037_v59 = vmul.f32 1.442695, %v2025_v17  ;;  %v2065_v25 = vmin.f32 %v2057_v26, 60.0  ;;  %v2075_v30 = vmul.f32 1.442695, %v2064_v20  ;;  %8451 = vpow2.f32 %v2035_v51 }
 0x187   : > { %12213 = vst [vmem:[#allocation79_spill] sm:$0xff] %v9921_v6  ;;  %v2068_v27 = vmin.f32 %v2060_v31, 60.0  ;;  %v2022_v2 = vsub.f32 %v9867_v21, %v9877_v63  ;;  %v9925_v57 = vpop.f32.mrb[5].mxu1  ;;  %v9927_v19 = vpop.f32.mrb[7].mxu0  ;;  %v9930_v29 = vmul.f32 %v869_v4, %v9840_v1  ;;  %8453 = vpow2.f32 %v2069_v16  ;;  %v760_v51 = vld [vmem:[%s9040_s7 + $0x78] sm:$0xff] }
 0x188   : > { %12214 = vst [vmem:[#allocation80_spill] sm:$0xff] %v9925_v57  ;;  %12215 = vst [vmem:[#allocation81_spill] sm:$0xff] %v9927_v19  ;;  %v2077_v48 = vmul.f32 1.442695, %v2065_v25  ;;  %v2043_v17 = vmul.f32 1.442695, %v2028_v15  ;;  %v2054_v20 = vsub.f32 %v9877_v63, %v9867_v21  ;;  %v9938_v31 = vpop.eup %8435  ;;  %8455 = vpow2.f32 %v2037_v59 }
 0x189   : > { %12216 = vst [vmem:[#allocation82_spill] sm:$0xff] %v9930_v29  ;;  %v9935_v26 = vpop.f32.mrb[6].mxu1  ;;  %v2083_v35 = vmul.f32 1.442695, %v2068_v27  ;;  %v2026_v55 = vsub.f32 %v9898_v49, %v9902_v37  ;;  %v12219_v16 = vsub.f32 1.0, %v9735_v36  ;;  %v9949_v25 = vpop.eup %8437  ;;  %8457 = vpow2.f32 %v2075_v30 }
 0x18a   : > { %12217 = vst [vmem:[#allocation83_spill] sm:$0xff] %v9935_v26  ;;  %v9942_v50 = vpop.f32.mrb[7].mxu1  ;;  %v2031_v4 = vmul.f32 1.442695, %v2022_v2  ;;  %v2062_v15 = vmin.f32 %v2054_v20, 60.0  ;;  %v2058_v59 = vsub.f32 %v9902_v37, %v9898_v49  ;;  %v9953_v27 = vpop.eup %8439  ;;  %8459 = vpow2.f32 %v2077_v48 }
 0x18b   : > { %12218 = vst [vmem:[#allocation84_spill] sm:$0xff] %v9942_v50  ;;  %v9947_v1 = vmul.f32 %v12219_v16, %v9853_v47  ;;  %v1498_v21 = vmul.f32 1.442695, %v9898_v49  ;;  %v12221_v29 = vsub.f32 1.0, %v9747_v28  ;;  %v12223_v47 = vsub.f32 1.0, %v9769_v24  ;;  %v9964_v30 = vpop.eup %8441  ;;  %v9970_v48 = vpop.f32.mrb[8].mxu0 }
 0x18c   : > { %8461 = vpow2.f32 %v2043_v17  ;;  %v2071_v2 = vmul.f32 1.442695, %v2062_v15  ;;  %v2066_v20 = vmin.f32 %v2058_v59, 60.0  ;;  %12225 = vst [vmem:[#allocation88_spill] sm:$0xff] %v9970_v48  ;;  %v9972_v49 = vpop.eup %8443  ;;  %v2039_v28 = vmul.f32 1.442695, %v2026_v55 }
 0x18d   : > { %12220 = vst [vmem:[#allocation85_spill] sm:$0xff] %v9947_v1  ;;  %v9958_v36 = vmul.f32 %v12221_v29, %v759_v52  ;;  %v9962_v16 = vmul.f32 %v12223_v47, %v760_v51  ;;  %v8705_v1 = vld [vmem:[%s9049_s26 + $0x20] sm:$0xff]  ;;  %8463 = vpow2.f32 %v2083_v35  ;;  %v9978_v29 = vpop.f32.mrb[9].mxu0  ;;  %v9981_v51 = vpop.eup %8445 }
 0x18e   : > { %v9968_v8 = vsub.f32 %v9913_v40, %v8705_v1  ;;  %v8706_v52 = vld [vmem:[%s9049_s26 + $0xa0] sm:$0xff]  ;;  %12226 = vst [vmem:[#allocation89_spill] sm:$0xff] %v9978_v29  ;;  %8465 = vpow2.f32 %v2031_v4  ;;  %v2079_v15 = vmul.f32 1.442695, %v2066_v20  ;;  %v1476_v1 = vmul.f32 1.442695, %v9907_v46  ;;  %v9992_v47 = vpop.eup %8447 }
 0x18f   : > { %12222 = vst [vmem:[#allocation86_spill] sm:$0xff] %v9958_v36  ;;  %12224 = vst [vmem:[#allocation87_spill] sm:$0xff] %v9962_v16  ;;  %v9976_v24 = vsub.f32 %v9925_v57, %v8706_v52  ;;  %v9988_v35 = vpop.f32.mrb[8].mxu1  ;;  %v9990_v55 = vpop.f32.mrb[10].mxu0  ;;  %8467 = vpow2.f32 %v1498_v21  ;;  %v1508_v16 = vmul.f32 1.442695, %v9921_v6  ;;  %v1529_v34 = vmul.f32 %v9981_v51, %v9634_v13 }
 0x190   : > { %v9986_v59 = vrot.slane %v9968_v8, %v9629_v61  ;;  %12228 = vst [vmem:[#allocation91_spill] sm:$0xff] %v9988_v35  ;;  %12229 = vst [vmem:[#allocation92_spill] sm:$0xff] %v9990_v55  ;;  %v2842_v52 = vsub.f32 %v9968_v8, %v9858_v44  ;;  %v10002_v17 = vpop.f32.mrb[9].mxu1  ;;  %v10004_v36 = vpop.f32.mrb[11].mxu0  ;;  %8469 = vpow2.f32 %v2071_v2 }
 0x191   : > { %v9998_v4 = vrot.slane %v9976_v24, %v9629_v61  ;;  %v2843_v20 = vsub.f32 %v9976_v24, %v9887_v33  ;;  %12231 = vst [vmem:[#allocation94_spill] sm:$0xff] %v10002_v17  ;;  %12232 = vst [vmem:[#allocation95_spill] sm:$0xff] %v10004_v36  ;;  %v10006_v45 = vpop.eup %8449  ;;  %v10013_v46 = vpop.f32.mrb[10].mxu1  ;;  %8471 = vpow2.f32 %v2039_v28  ;;  %v1472_v33 = vmul.f32 1.442695, %v9913_v40 }
 0x192   : > { %12227 = vst [vmem:[#allocation90_spill] sm:$0xff] %v9986_v59  ;;  %12233 = vst [vmem:[#allocation96_spill] sm:$0xff] %v10006_v45  ;;  %v2544_v21 = vsub.f32 %v9913_v40, %v9986_v59  ;;  %v2576_v44 = vsub.f32 %v9986_v59, %v9913_v40  ;;  %v10015_v54 = vpop.eup %8451  ;;  %v10020_v45 = vpop.f32.mrb[11].mxu1  ;;  %8473 = vpow2.f32 %v2079_v15  ;;  %v1504_v28 = vmul.f32 1.442695, %v9925_v57 }
 0x193   : > { %12230 = vst [vmem:[#allocation93_spill] sm:$0xff] %v9998_v4  ;;  %12234 = vst [vmem:[#allocation97_spill] sm:$0xff] %v10013_v46  ;;  %v2580_v43 = vsub.f32 %v9998_v4, %v9925_v57  ;;  %v10023_v6 = vpop.eup %8453  ;;  %v2548_v37 = vsub.f32 %v9925_v57, %v9998_v4  ;;  %8475 = vpow2.f32 %v1476_v1  ;;  %v10032_v63 = vpop.f32.mrb[12].mxu0  ;;  %v2551_v1 = vsub.f32 %v9935_v26, %v9998_v4 }
 0x194   : > { %12235 = vst [vmem:[#allocation98_spill] sm:$0xff] %v10015_v54  ;;  %12236 = vst [vmem:[#allocation99_spill] sm:$0xff] %v10020_v45  ;;  %v2552_v18 = vmul.f32 1.442695, %v2544_v21  ;;  %v2584_v42 = vmin.f32 %v2576_v44, 60.0  ;;  %v10027_v60 = vpop.eup %8455  ;;  %v2547_v54 = vsub.f32 %v9919_v23, %v9986_v59  ;;  %8477 = vpow2.f32 %v1508_v16  ;;  %v10038_v11 = vpop.f32.mrb[13].mxu0 }
 0x195   : > { %12237 = vst [vmem:[#allocation100_spill] sm:$0xff] %v10023_v6  ;;  %12238 = vst [vmem:[#allocation101_spill] sm:$0xff] %v10027_v60  ;;  %v2588_v40 = vmin.f32 %v2580_v43, 60.0  ;;  %v10034_v2 = vpop.eup %8457  ;;  %v2844_v21 = vmul.f32 1.442695, %v2842_v52  ;;  %v2579_v44 = vsub.f32 %v9986_v59, %v9919_v23  ;;  %8479 = vpow2.f32 %v1472_v33  ;;  %v10053_v39 = vpop.f32.mrb[12].mxu1 }
 0x196   : > { %12239 = vst [vmem:[#allocation102_spill] sm:$0xff] %v10032_v63  ;;  %12240 = vst [vmem:[#allocation103_spill] sm:$0xff] %v10034_v2  ;;  %v2592_v15 = vmul.f32 1.442695, %v2584_v42  ;;  %v10040_v60 = vpop.eup %8459  ;;  %v1478_v43 = vmul.f32 1.442695, %v9919_v23  ;;  %v2583_v57 = vsub.f32 %v9998_v4, %v9935_v26  ;;  %8481 = vpow2.f32 %v2552_v18 }
 0x197   : > { %12241 = vst [vmem:[#allocation104_spill] sm:$0xff] %v10038_v11  ;;  %12242 = vst [vmem:[#allocation105_spill] sm:$0xff] %v10040_v60  ;;  %v10047_v2 = vpop.f32.mrb[14].mxu0  ;;  %v10049_v42 = vpop.eup %8461  ;;  %v2560_v16 = vmul.f32 1.442695, %v2548_v37  ;;  %v2587_v52 = vmin.f32 %v2579_v44, 60.0  ;;  %v2545_v56 = vsub.f32 %v9927_v19, %v9986_v59  ;;  %v2577_v22 = vsub.f32 %v9986_v59, %v9927_v19 }
 0x198   : > { %12243 = vst [vmem:[#allocation106_spill] sm:$0xff] %v10049_v42  ;;  %12244 = vst [vmem:[#allocation107_spill] sm:$0xff] %v10053_v39  ;;  %v10055_v33 = vpop.f32.mrb[15].mxu0  ;;  %v10057_v23 = vpop.eup %8463  ;;  %8483 = vpow2.f32 %v2592_v15  ;;  %v2600_v38 = vmul.f32 1.442695, %v2588_v40  ;;  %v2591_v60 = vmin.f32 %v2583_v57, 60.0 }
 0x199   : > { %12245 = vst [vmem:[#allocation108_spill] sm:$0xff] %v10057_v23  ;;  %v10061_v12 = vpop.f32.mrb[13].mxu1  ;;  %v10063_v18 = vpop.eup %8465  ;;  %8485 = vpow2.f32 %v2844_v21  ;;  %v2846_v37 = vmul.f32 1.442695, %v2843_v20  ;;  %v2558_v44 = vmul.f32 1.442695, %v2547_v54  ;;  %v2581_v54 = vsub.f32 %v9998_v4, %v9942_v50 }
 0x19a   : > { %12246 = vst [vmem:[#allocation109_spill] sm:$0xff] %v10061_v12  ;;  %12247 = vst [vmem:[#allocation110_spill] sm:$0xff] %v10063_v18  ;;  %v1510_v42 = vmul.f32 1.442695, %v9935_v26  ;;  %v8468_v6 = vpop.eup %8467  ;;  %8487 = vpow2.f32 %v1504_v28  ;;  %v2566_v15 = vmul.f32 1.442695, %v2551_v1 }
 0x19b   : > { %v1474_v40 = vmul.f32 1.442695, %v9927_v19  ;;  %v10069_v57 = vpop.f32.mrb[14].mxu1  ;;  %v10071_v59 = vpop.eup %8469  ;;  %8489 = vpow2.f32 %v2560_v16  ;;  %v2598_v18 = vmul.f32 1.442695, %v2587_v52  ;;  %v2585_v28 = vmin.f32 %v2577_v22, 60.0 }
 0x19c   : > { %v2554_v21 = vmul.f32 1.442695, %v2545_v56  ;;  %v10075_v20 = vpop.f32.mrb[15].mxu1  ;;  %v10077_v26 = vpop.eup %8471  ;;  %8491 = vpow2.f32 %v2600_v38  ;;  %v2606_v51 = vmul.f32 1.442695, %v2591_v60  ;;  %v1545_v13 = vmul.f32 %v8468_v6, %v9636_v14  ;;  %v8707_v16 = vld [vmem:[%s9049_s26 + $0x40] sm:$0xff] }
 0x19d   : > { %12248 = vst [vmem:[#allocation111_spill] sm:$0xff] %v10075_v20  ;;  %12249 = vst [vmem:[#allocation112_spill] sm:$0xff] %v10077_v26  ;;  %v1506_v1 = vmul.f32 1.442695, %v9942_v50  ;;  %v10080_v19 = vpop.eup %8473  ;;  %8493 = vpow2.f32 %v2846_v37  ;;  %v2549_v56 = vsub.f32 %v9942_v50, %v9998_v4  ;;  %v10087_v52 = vsub.f32 %v9978_v29, %v8707_v16  ;;  %v8708_v22 = vld [vmem:[%s9049_s26 + $0xc0] sm:$0xff] }
 0x19e   : > { %v10089_v23 = vpop.eup %8475  ;;  %8495 = vpow2.f32 %v1478_v43  ;;  %v10092_v38 = vmul.f32 1.442695, %v9970_v48  ;;  %v10096_v60 = vsub.f32 %v10002_v17, %v8708_v22  ;;  %v1528_v6 = vmul.f32 %v9949_v25, %v9638_v62 }
 0x19f   : > { %v10100_v37 = vpop.eup %8477  ;;  %8497 = vpow2.f32 %v2558_v44  ;;  %v2589_v50 = vmin.f32 %v2581_v54, 60.0  ;;  %v10104_v16 = vrot.slane %v10087_v52, %v9629_v61  ;;  %v3770_v43 = vsub.f32 %v10087_v52, %v9968_v8 }
 0x1a0   : > { %v10108_v48 = vpop.eup %8479  ;;  %8499 = vpow2.f32 %v2598_v18  ;;  %v10112_v22 = vrot.slane %v10096_v60, %v9629_v61  ;;  %v3771_v25 = vsub.f32 %v10096_v60, %v9976_v24  ;;  %7073 = vmatprep.mubr.msk.f32.mxu0 %vm1576_vm8, %v1528_v6  ;;  %v1544_v44 = vmul.f32 %v9972_v49, %v9645_v3 }
 0x1a1   : > { %12250 = vst [vmem:[#allocation113_spill] sm:$0xff] %v10104_v16  ;;  %v10119_v54 = vpop.eup %8481  ;;  %8501 = vpow2.f32 %v1510_v42  ;;  %v2594_v4 = vmul.f32 1.442695, %v2585_v28  ;;  %v2562_v8 = vmul.f32 1.442695, %v2549_v56  ;;  %v3504_v18 = vsub.f32 %v10104_v16, %v9978_v29  ;;  %7074 = vmatmul.mubr.msk.f32.vlgmr.msra.gmra.mrb[16].mxu0 %vm1576_vm8, %v1529_v34 }
 0x1a2   : > { %12251 = vst [vmem:[#allocation114_spill] sm:$0xff] %v10112_v22  ;;  %12252 = vst [vmem:[#allocation115_spill] sm:$0xff] %v10119_v54  ;;  %v10124_v26 = vpop.eup %8483  ;;  %8503 = vpow2.f32 %v2566_v15  ;;  %v1516_v24 = vmul.f32 1.442695, %v9988_v35  ;;  %v3472_v6 = vsub.f32 %v9978_v29, %v10104_v16  ;;  %v3508_v49 = vsub.f32 %v10112_v22, %v10002_v17  ;;  %7113 = vmatprep.mubr.msk.f32.mxu1 %vm1576_vm8, %v1544_v44 }
 0x1a3   : > { %12253 = vst [vmem:[#allocation116_spill] sm:$0xff] %v10124_v26  ;;  %v10132_v42 = vpop.eup %8485  ;;  %8505 = vpow2.f32 %v2606_v51  ;;  %v1480_v28 = vmul.f32 1.442695, %v9978_v29  ;;  %v10136_v34 = vmul.f32 1.442695, %v10002_v17  ;;  %v3476_v15 = vsub.f32 %v10002_v17, %v10112_v22  ;;  %7114 = vmatmul.mubr.msk.f32.vlgmr.msra.gmra.mrb[16].mxu1 %vm1576_vm8, %v1545_v13 }
 0x1a4   : > { %12254 = vst [vmem:[#allocation117_spill] sm:$0xff] %v10132_v42  ;;  %v10141_v56 = vpop.eup %8487  ;;  %8507 = vpow2.f32 %v1474_v40  ;;  %v2602_v35 = vmul.f32 1.442695, %v2589_v50  ;;  %v3512_v54 = vmin.f32 %v3504_v18, 60.0  ;;  %v3475_v44 = vsub.f32 %v9990_v55, %v10104_v16 }
 0x1a5   : > { %v10145_v42 = vpop.eup %8489  ;;  %8509 = vpow2.f32 %v2554_v21  ;;  %v3772_v51 = vmul.f32 1.442695, %v3770_v43  ;;  %v3516_v29 = vmin.f32 %v3508_v49, 60.0  ;;  %v3507_v26 = vsub.f32 %v10104_v16, %v9990_v55 }
 0x1a6   : > { %12255 = vst [vmem:[#allocation118_spill] sm:$0xff] %v10145_v42  ;;  %v10149_v14 = vpop.eup %8491  ;;  %8511 = vpow2.f32 %v2594_v4  ;;  %v3480_v13 = vmul.f32 1.442695, %v3472_v6  ;;  %v10151_v17 = vmul.f32 1.442695, %v3771_v25  ;;  %v3479_v50 = vsub.f32 %v10013_v46, %v10112_v22 }
 0x1a7   : > { %12256 = vst [vmem:[#allocation119_spill] sm:$0xff] %v10149_v14  ;;  %v10155_v40 = vpop.eup %8493  ;;  %8513 = vpow2.f32 %v1506_v1  ;;  %v3488_v18 = vmul.f32 1.442695, %v3476_v15  ;;  %v10158_v21 = vmul.f32 1.442695, %v9990_v55  ;;  %v3511_v43 = vsub.f32 %v10112_v22, %v10013_v46 }
 0x1a8   : > { %12257 = vst [vmem:[#allocation120_spill] sm:$0xff] %v10155_v40  ;;  %v10162_v49 = vpop.eup %8495  ;;  %8515 = vpow2.f32 %v2562_v8  ;;  %v3520_v4 = vmul.f32 1.442695, %v3512_v54  ;;  %v3473_v25 = vsub.f32 %v10004_v36, %v10104_v16  ;;  %v3505_v6 = vsub.f32 %v10104_v16, %v10004_v36 }
 0x1a9   : > { %v10168_v42 = vpop.eup %8497  ;;  %8517 = vpow2.f32 %v2602_v35  ;;  %v3528_v1 = vmul.f32 1.442695, %v3516_v29  ;;  %v3515_v15 = vmin.f32 %v3507_v26, 60.0  ;;  %v10171_v55 = vmul.f32 1.442695, %v10013_v46 }
 0x1aa   : > { %12258 = vst [vmem:[#allocation121_spill] sm:$0xff] %v10168_v42  ;;  %v10173_v40 = vpop.eup %8499  ;;  %8519 = vpow2.f32 %v10092_v38  ;;  %v3486_v8 = vmul.f32 1.442695, %v3475_v44  ;;  %v3519_v54 = vmin.f32 %v3511_v43, 60.0  ;;  %v3477_v14 = vsub.f32 %v10020_v45, %v10112_v22 }
 0x1ab   : > { %v10178_v3 = vpop.eup %8501  ;;  %8521 = vpow2.f32 %v1516_v24  ;;  %v3513_v16 = vmin.f32 %v3505_v6, 60.0  ;;  %v3509_v29 = vsub.f32 %v10112_v22, %v10020_v45  ;;  %v1530_v26 = vmul.f32 %v9938_v31, %v9647_v5 }
 0x1ac   : > { %v10184_v35 = vpop.eup %8503  ;;  %8523 = vpow2.f32 %v1480_v28  ;;  %v10186_v46 = vmul.f32 1.442695, %v3479_v50  ;;  %v10189_v38 = vmul.f32 1.442695, %v10004_v36  ;;  %v1546_v44 = vmul.f32 %v9964_v30, %v9649_v7 }
 0x1ad   : > { %12259 = vst [vmem:[#allocation122_spill] sm:$0xff] %v10184_v35  ;;  %v10193_v43 = vpop.eup %8505  ;;  %8525 = vpow2.f32 %v3480_v13  ;;  %v3526_v24 = vmul.f32 1.442695, %v3515_v15  ;;  %7076 = vmatprep.mubr.msk.f32.mxu0 %vm1576_vm8, %v1530_v26  ;;  %v1531_v31 = vmul.f32 %v9953_v27, %v9656_v32  ;;  %v1547_v28 = vmul.f32 %v9992_v47, %v9665_v53  ;;  %v8709_v47 = vld [vmem:[%s9049_s26 + $0x60] sm:$0xff] }
 0x1ae   : > { %v10200_v50 = vpop.eup %8507  ;;  %8527 = vpow2.f32 %v3520_v4  ;;  %v3534_v6 = vmul.f32 1.442695, %v3519_v54  ;;  %v10202_v36 = vmul.f32 1.442695, %v3473_v25  ;;  %v10205_v30 = vmul.f32 1.442695, %v10020_v45  ;;  %7116 = vmatprep.mubr.msk.f32.mxu1 %vm1576_vm8, %v1546_v44 }
 0x1af   : > { %v10208_v13 = vpop.eup %8509  ;;  %8529 = vpow2.f32 %v3772_v51  ;;  %v10210_v15 = vmul.f32 1.442695, %v3513_v16  ;;  %v10212_v27 = vmul.f32 1.442695, %v3477_v14  ;;  %7077 = vmatmul.mubr.msk.f32.gmra.mrb[18].mxu0 %vm1576_vm8, %v1531_v31  ;;  %7117 = vmatmul.mubr.msk.f32.gmra.mrb[18].mxu1 %vm1576_vm8, %v1547_v28  ;;  %v4422_v4 = vsub.f32 %v10038_v11, %v8709_v47  ;;  %v8710_v54 = vld [vmem:[%s9049_s26 + $0xe0] sm:$0xff] }
 0x1b0   : > { %v10218_v25 = vpop.eup %8511  ;;  %8531 = vpow2.f32 %v10136_v34  ;;  %v4423_v26 = vsub.f32 %v10061_v12, %v8710_v54  ;;  %v1532_v16 = vmul.f32 %v10108_v48, %v9667_v0  ;;  %v1548_v14 = vmul.f32 %v10141_v56, %v9669_v9 }
 0x1b1   : > { %v10227_v51 = vpop.eup %8513  ;;  %8533 = vpow2.f32 %v3488_v18  ;;  %v3517_v44 = vmin.f32 %v3509_v29, 60.0  ;;  %v10230_v31 = vrot.slane %v4422_v4, %v9629_v61  ;;  %v4730_v28 = vsub.f32 %v4422_v4, %v10087_v52 }
 0x1b2   : > { %v10233_v47 = vpop.eup %8515  ;;  %8535 = vpow2.f32 %v10151_v17  ;;  %v10237_v34 = vmul.f32 1.442695, %v10032_v63  ;;  %v10240_v48 = vrot.slane %v4423_v26, %v9629_v61  ;;  %v4731_v56 = vsub.f32 %v4423_v26, %v10096_v60  ;;  %7079 = vmatprep.mubr.msk.f32.mxu0 %vm1576_vm8, %v1532_v16  ;;  %7119 = vmatprep.mubr.msk.f32.mxu1 %vm1576_vm8, %v1548_v14 }
 0x1b3   : > { %12260 = vst [vmem:[#allocation123_spill] sm:$0xff] %v10230_v31  ;;  %v10245_v18 = vpop.eup %8517  ;;  %8537 = vpow2.f32 %v3528_v1  ;;  %v10248_v52 = vmul.f32 1.442695, %v10053_v39  ;;  %v10251_v17 = vmul.f32 1.442695, %v10038_v11  ;;  %v4464_v29 = vsub.f32 %v10230_v31, %v10038_v11 }
 0x1b4   : > { %12261 = vst [vmem:[#allocation124_spill] sm:$0xff] %v10240_v48  ;;  %v10255_v4 = vpop.eup %8519  ;;  %8539 = vpow2.f32 %v10158_v21  ;;  %v4432_v60 = vsub.f32 %v10038_v11, %v10230_v31  ;;  %v4436_v54 = vsub.f32 %v10061_v12, %v10240_v48  ;;  %v4468_v1 = vsub.f32 %v10240_v48, %v10061_v12 }
 0x1b5   : > { %v10264_v26 = vpop.eup %8521  ;;  %8541 = vpow2.f32 %v3486_v8  ;;  %v4472_v16 = vmin.f32 %v4464_v29, 60.0  ;;  %v4435_v14 = vsub.f32 %v10047_v2, %v10230_v31  ;;  %v10270_v45 = vrot.slane %v10047_v2, %v9677_v41 }
 0x1b6   : > { %v10272_v21 = vpop.eup %8523  ;;  %8543 = vpow2.f32 %v3526_v24  ;;  %v3530_v11 = vmul.f32 1.442695, %v3517_v44  ;;  %v10275_v39 = vmul.f32 1.442695, %v10061_v12  ;;  %v4467_v63 = vsub.f32 %v10230_v31, %v10047_v2 }
 0x1b7   : > { %12262 = vst [vmem:[#allocation125_spill] sm:$0xff] %v10270_v45  ;;  %v10279_v7 = vpop.eup %8525  ;;  %8545 = vpow2.f32 %v10171_v55  ;;  %v10282_v8 = vmul.f32 1.442695, %v4730_v28  ;;  %v4476_v29 = vmin.f32 %v4468_v1, 60.0  ;;  %v10285_v5 = vmul.f32 1.442695, %v10047_v2 }
 0x1b8   : > { %12263 = vst [vmem:[#allocation126_spill] sm:$0xff] %v10279_v7  ;;  %v10287_v22 = vpop.eup %8527  ;;  %8547 = vpow2.f32 %v10186_v46  ;;  %v4440_v24 = vmul.f32 1.442695, %v4432_v60  ;;  %v10290_v44 = vmul.f32 1.442695, %v4436_v54  ;;  %v5438_v55 = vsub.f32 %v10270_v45, %v10047_v2 }
 0x1b9   : > { %12264 = vst [vmem:[#allocation127_spill] sm:$0xff] %v10287_v22  ;;  %v10292_v12 = vmul.f32 1.442695, %v4731_v56  ;;  %v8530_v35 = vpop.eup %8529  ;;  %8549 = vpow2.f32 %v3534_v6  ;;  %v10294_v7 = vmul.f32 1.442695, %v4472_v16  ;;  %v4439_v28 = vsub.f32 %v10069_v57, %v10240_v48 }
 0x1ba   : > { %v10300_v1 = vpop.eup %8531  ;;  %8551 = vpow2.f32 %v10189_v38  ;;  %v4475_v46 = vmin.f32 %v4467_v63, 60.0  ;;  %v4471_v60 = vsub.f32 %v10240_v48, %v10069_v57  ;;  %v10307_v56 = vrot.slane %v10069_v57, %v9677_v41 }
 0x1bb   : > { %v10309_v6 = vpop.eup %8533  ;;  %8553 = vpow2.f32 %v10202_v36  ;;  %v10312_v2 = vmul.f32 1.442695, %v4476_v29  ;;  %v10314_v54 = vmul.f32 1.442695, %v4435_v14  ;;  %v4433_v16 = vsub.f32 %v10055_v33, %v10230_v31 }
 0x1bc   : > { %12265 = vst [vmem:[#allocation128_spill] sm:$0xff] %v10307_v56  ;;  %12266 = vst [vmem:[#allocation129_spill] sm:$0xff] %v10309_v6  ;;  %v8536_v38 = vpop.eup %8535  ;;  %8555 = vpow2.f32 %v10210_v15  ;;  %v10320_v63 = vmul.f32 1.442695, %v10069_v57  ;;  %v4479_v22 = vmin.f32 %v4471_v60, 60.0  ;;  %v4465_v42 = vsub.f32 %v10230_v31, %v10055_v33 }
 0x1bd   : > { %v10324_v6 = vpop.eup %8537  ;;  %v10327_v36 = vrot.slane %v8530_v35, %v9629_v61  ;;  %8557 = vpow2.f32 %v10205_v30  ;;  %v5454_v14 = vsub.f32 %v10307_v56, %v10069_v57  ;;  %v5436_v15 = vsub.f32 %v10270_v45, %v10055_v33  ;;  %v12290_v56 = vld [vmem:[#allocation23_spill] sm:$0xff] }
 0x1be   : > { %12267 = vst [vmem:[#allocation130_spill] sm:$0xff] %v10324_v6  ;;  %v10334_v29 = vpop.eup %8539  ;;  %8559 = vpow2.f32 %v10212_v27  ;;  %v10337_v60 = vmul.f32 1.442695, %v4475_v46  ;;  %v10339_v31 = vmul.f32 1.442695, %v5438_v55  ;;  %v10346_v30 = vrot.slane %v8536_v38, %v9629_v61 }
 0x1bf   : > { %12268 = vst [vmem:[#allocation131_spill] sm:$0xff] %v10327_v36  ;;  %v10341_v6 = vmul.f32 1.442695, %v4439_v28  ;;  %v10343_v35 = vpop.eup %8541  ;;  %v10349_v57 = vmul.f32 1.442695, %v10055_v33  ;;  %v4437_v45 = vsub.f32 %v10075_v20, %v10240_v48  ;;  %8561 = vpow2.f32 %v3530_v11 }
 0x1c0   : > { %12269 = vst [vmem:[#allocation132_spill] sm:$0xff] %v10339_v31  ;;  %12270 = vst [vmem:[#allocation133_spill] sm:$0xff] %v10343_v35  ;;  %v10351_v36 = vmul.f32 1.442695, %v4433_v16  ;;  %v10355_v27 = vpop.eup %8543  ;;  %v10357_v55 = vmul.f32 1.442695, %v4479_v22  ;;  %v4469_v28 = vsub.f32 %v10240_v48, %v10075_v20  ;;  %8563 = vpow2.f32 %v10237_v34 }
 0x1c1   : > { %v10363_v38 = vpop.eup %8545  ;;  %v10366_v33 = vmul.f32 1.442695, %v5454_v14  ;;  %v1533_v16 = vmul.f32 %v10200_v50, %v9711_v10  ;;  %v10372_v11 = vmul.f32 %v10208_v13, %v9711_v10  ;;  %8565 = vpow2.f32 %v10251_v17  ;;  %v12277_v50 = vld [vmem:[#allocation16_spill] sm:$0xff] }
 0x1c2   : > { %12271 = vst [vmem:[#allocation134_spill] sm:$0xff] %v10357_v55  ;;  %v10374_v22 = vpop.eup %8547  ;;  %v4473_v48 = vmin.f32 %v4465_v42, 60.0  ;;  %v10377_v31 = vmul.f32 1.442695, %v5436_v15  ;;  %v1549_v46 = vmul.f32 %v10227_v51, %v9713_v58  ;;  %8567 = vpow2.f32 %v10248_v52  ;;  %v12278_v13 = vld [vmem:[#allocation100_spill] sm:$0xff]  ;;  %v12279_v42 = vld [vmem:[#allocation17_spill] sm:$0xff] }
 0x1c3   : > { %12272 = vst [vmem:[#allocation135_spill] sm:$0xff] %v10366_v33  ;;  %12273 = vst [vmem:[#allocation136_spill] sm:$0xff] %v10372_v11  ;;  %v10381_v34 = vpop.eup %8549  ;;  %7080 = vmatmul.mubr.msk.f32.gmra.mrb[20].mxu0 %vm1576_vm8, %v1533_v16  ;;  %v10387_v10 = vmul.f32 %v10233_v47, %v9713_v58  ;;  %v10391_v14 = vmul.f32 %v12278_v13, %v12277_v50  ;;  %v10395_v17 = vmul.f32 %v10071_v59, %v12279_v42  ;;  %v12280_v52 = vld [vmem:[#allocation20_spill] sm:$0xff]  ;;  %v12281_v16 = vld [vmem:[#allocation105_spill] sm:$0xff] }
 0x1c4   : > { %12274 = vst [vmem:[#allocation137_spill] sm:$0xff] %v10374_v22  ;;  %12275 = vst [vmem:[#allocation138_spill] sm:$0xff] %v10377_v31  ;;  %v8552_v15 = vpop.eup %8551  ;;  %8569 = vpow2.f32 %v4440_v24  ;;  %v10398_v51 = vmul.f32 1.442695, %v10075_v20  ;;  %7120 = vmatmul.mubr.msk.f32.gmra.mrb[20].mxu1 %vm1576_vm8, %v1549_v46  ;;  %v10403_v11 = vmul.f32 %v12281_v16, %v12280_v52  ;;  %v12282_v58 = vld [vmem:[#allocation21_spill] sm:$0xff]  ;;  %v4477_v59 = vmin.f32 %v4469_v28, 60.0 }
 0x1c5   : > { %12276 = vst [vmem:[#allocation139_spill] sm:$0xff] %v10387_v10  ;;  %v10407_v47 = vmul.f32 %v10080_v19, %v12282_v58  ;;  %v8554_v13 = vpop.eup %8553  ;;  %8571 = vpow2.f32 %v10275_v39  ;;  %v7761_v24 = vpack.c.bf16 %v10395_v17, %v10391_v14  ;;  %v12283_v10 = vld [vmem:[#allocation18_spill] sm:$0xff]  ;;  %v12284_v16 = vld [vmem:[#allocation19_spill] sm:$0xff]  ;;  %v10424_v31 = vmul.f32 1.442695, %v4473_v48 }
 0x1c6   : > { %v1534_v42 = vmul.f32 %v10089_v23, %v12283_v10  ;;  %v10414_v50 = vpop.eup %8555  ;;  %8573 = vpow2.f32 %v10282_v8  ;;  %v1550_v19 = vmul.f32 %v10100_v37, %v12284_v16  ;;  %v12285_v58 = vld [vmem:[#allocation58_spill] sm:$0xff]  ;;  %v12288_v23 = vld [vmem:[#allocation67_spill] sm:$0xff]  ;;  %v1535_v22 = vmul.f32 %v10162_v49, %v12290_v56  ;;  %v12292_v16 = vld [vmem:[#allocation28_spill] sm:$0xff] }
 0x1c7   : > { %v7773_v46 = vpack.c.bf16 %v10407_v47, %v10403_v11  ;;  %v12286_v52 = vld [vmem:[#allocation70_spill] sm:$0xff]  ;;  %v8558_v28 = vpop.eup %8557  ;;  %8575 = vpow2.f32 %v10294_v7  ;;  %7763 = vmatprep.subr.msk.bf16.mxu0 %vm9467_vm10, %v7761_v24  ;;  %v12289_v8 = vld [vmem:[#allocation75_spill] sm:$0xff]  ;;  %v10442_v10 = vmul.f32 1.442695, %v4437_v45  ;;  %v10444_v49 = vmul.f32 1.442695, %v4477_v59 }
 0x1c8   : > { %v2055_v39 = vsub.f32 %v12286_v52, %v12285_v58  ;;  %7082 = vmatprep.mubr.msk.f32.mxu0 %vm1576_vm8, %v1534_v42  ;;  %v2059_v20 = vsub.f32 %v12289_v8, %v12288_v23  ;;  %v8560_v37 = vpop.eup %8559  ;;  %8577 = vpow2.f32 %v10292_v12  ;;  %7122 = vmatprep.mubr.msk.f32.mxu1 %vm1576_vm8, %v1550_v19  ;;  %v12291_v48 = vld [vmem:[#allocation27_spill] sm:$0xff]  ;;  %v1536_v42 = vmul.f32 %v10272_v21, %v12292_v16  ;;  %v12293_v12 = vld [vmem:[#allocation29_spill] sm:$0xff] }
 0x1c9   : > { %7775 = vmatprep.subr.msk.bf16.mxu1 %vm9467_vm10, %v7773_v46  ;;  %v1551_v35 = vmul.f32 %v10178_v3, %v12291_v48  ;;  %8579 = vpow2.f32 %v10285_v5  ;;  %7766 = vmatpush3.bf16.xpose.msk.msra.mxu0 %vm9467_vm10, %v7761_v24  ;;  %v1552_v19 = vmul.f32 %v10300_v1, %v12293_v12  ;;  %v12294_v3 = vld [vmem:[#allocation30_spill] sm:$0xff]  ;;  %v12296_v21 = vld [vmem:[#allocation31_spill] sm:$0xff] }
 0x1ca   : > { %v2063_v7 = vmin.f32 %v2055_v39, 60.0  ;;  %7778 = vmatpush3.bf16.xpose.msk.msra.mxu1 %vm9467_vm10, %v7773_v46  ;;  %v10452_v39 = vpop.eup %8561  ;;  %8581 = vpow2.f32 %v10290_v44  ;;  %7083 = vmatmul.mubr.msk.f32.gmra.mrb[22].mxu0 %vm1576_vm8, %v1535_v22  ;;  %v1537_v5 = vmul.f32 %v8552_v15, %v12294_v3  ;;  %v10459_v45 = vmul.f32 %v8554_v13, %v12294_v3  ;;  %v12297_v46 = vld [vmem:[#allocation25_spill] sm:$0xff]  ;;  %v12298_v1 = vld [vmem:[#allocation103_spill] sm:$0xff]  ;;  %v12301_v13 = vld [vmem:[#allocation108_spill] sm:$0xff] }
 0x1cb   : > { %7123 = vmatmul.mubr.msk.f32.gmra.mrb[22].mxu1 %vm1576_vm8, %v1551_v35  ;;  %v1553_v59 = vmul.f32 %v8558_v28, %v12296_v21  ;;  %v8564_v24 = vpop.eup %8563  ;;  %8583 = vpow2.f32 %v10312_v2  ;;  %v10465_v55 = vmul.f32 %v12298_v1, %v12297_v46  ;;  %v2067_v33 = vmin.f32 %v2059_v20, 60.0  ;;  %7085 = vmatprep.mubr.msk.f32.mxu0 %vm1576_vm8, %v1536_v42  ;;  %v12300_v15 = vld [vmem:[#allocation33_spill] sm:$0xff]  ;;  %v12302_v28 = vld [vmem:[#allocation32_spill] sm:$0xff]  ;;  %v12303_v42 = vld [vmem:[#allocation34_spill] sm:$0xff] }
 0x1cc   : > { %12295 = vst [vmem:[#allocation100_spill] sm:$0xff] %v10459_v45  ;;  %7125 = vmatprep.mubr.msk.f32.mxu1 %vm1576_vm8, %v1552_v19  ;;  %v10470_v44 = vmul.f32 %v8560_v37, %v12296_v21  ;;  %v8566_v35 = vpop.eup %8565  ;;  %8585 = vpow2.f32 %v10314_v54  ;;  %v10473_v22 = vmul.f32 1.442695, %v2063_v7  ;;  %v10477_v2 = vmul.f32 %v12301_v13, %v12300_v15  ;;  %v12304_v37 = vld [vmem:[#allocation35_spill] sm:$0xff]  ;;  %v12305_v1 = vld [vmem:[#allocation36_spill] sm:$0xff]  ;;  %v12307_v13 = vld [vmem:[#allocation13_spill] sm:$0xff] }
 0x1cd   : > { %v1538_v3 = vmul.f32 %v10255_v4, %v12302_v28  ;;  %v8568_v20 = vpop.eup %8567  ;;  %8587 = vpow2.f32 %v10320_v63  ;;  %v1554_v19 = vmul.f32 %v10264_v26, %v12303_v42  ;;  %v1539_v21 = vmul.f32 %v10334_v29, %v12304_v37  ;;  %v12306_v4 = vld [vmem:[#allocation96_spill] sm:$0xff]  ;;  %v12308_v26 = vld [vmem:[#allocation101_spill] sm:$0xff]  ;;  %v12309_v29 = vld [vmem:[#allocation11_spill] sm:$0xff] }
 0x1ce   : > { %12299 = vst [vmem:[#allocation105_spill] sm:$0xff] %v10470_v44  ;;  %v1555_v54 = vmul.f32 %v10363_v38, %v12305_v1  ;;  %v10488_v7 = vpop.eup %8569  ;;  %8589 = vpow2.f32 %v10337_v60  ;;  %7086 = vmatmul.mubr.msk.f32.gmra.mrb[24].mxu0 %vm1576_vm8, %v1537_v5  ;;  %v10495_v63 = vmul.f32 %v12306_v4, %v9638_v62  ;;  %v10499_v44 = vmul.f32 %v12308_v26, %v12307_v13  ;;  %v12310_v45 = vld [vmem:[#allocation110_spill] sm:$0xff]  ;;  %v12311_v60 = vld [vmem:[#allocation37_spill] sm:$0xff]  ;;  %v12313_v42 = vld [vmem:[#allocation112_spill] sm:$0xff] }
 0x1cf   : > { %7126 = vmatmul.mubr.msk.f32.gmra.mrb[24].mxu1 %vm1576_vm8, %v1553_v59  ;;  %v10503_v15 = vmul.f32 %v12310_v45, %v12309_v29  ;;  %v8572_v38 = vpop.eup %8571  ;;  %v2081_v46 = vmul.f32 1.442695, %v2067_v33  ;;  %7088 = vmatprep.mubr.msk.f32.mxu0 %vm1576_vm8, %v1538_v3  ;;  %v1540_v5 = vmul.f32 %v8566_v35, %v12311_v60  ;;  %v12312_v59 = vld [vmem:[#allocation12_spill] sm:$0xff]  ;;  %v2023_v4 = vsub.f32 %v12285_v58, %v12286_v52  ;;  %v12314_v45 = vld [vmem:[#allocation38_spill] sm:$0xff]  ;;  %v12337_v28 = vld [vmem:[#allocation115_spill] sm:$0xff] }
 0x1d0   : > { %7128 = vmatprep.mubr.msk.f32.mxu1 %vm1576_vm8, %v1554_v19  ;;  %v10510_v62 = vmul.f32 %v12313_v42, %v12312_v59  ;;  %v8574_v13 = vpop.eup %8573  ;;  %8591 = vpow2.f32 %v10341_v6  ;;  %v1556_v26 = vmul.f32 %v8572_v38, %v12314_v45  ;;  %v2027_v33 = vsub.f32 %v12288_v23, %v12289_v8  ;;  %v12315_v3 = vld [vmem:[#allocation98_spill] sm:$0xff]  ;;  %v12316_v42 = vld [vmem:[#allocation41_spill] sm:$0xff]  ;;  %v12319_v6 = vld [vmem:[#allocation48_spill] sm:$0xff] }
 0x1d1   : > { %v10520_v19 = vmul.f32 %v12315_v3, %v9656_v32  ;;  %v10522_v35 = vpop.eup %8575  ;;  %8593 = vpow2.f32 %v10349_v57  ;;  %v10526_v29 = vmul.f32 %v8564_v24, %v12316_v42  ;;  %v12317_v52 = vld [vmem:[#allocation106_spill] sm:$0xff]  ;;  %v12320_v38 = vld [vmem:[#allocation116_spill] sm:$0xff]  ;;  %v12322_v24 = vld [vmem:[#allocation49_spill] sm:$0xff] }
 0x1d2   : > { %v10530_v59 = vmul.f32 %v12317_v52, %v9665_v53  ;;  %v10534_v58 = vmul.f32 %v12320_v38, %v12319_v6  ;;  %v8578_v8 = vpop.eup %8577  ;;  %8595 = vpow2.f32 %v10351_v36  ;;  %7089 = vmatmul.mubr.msk.f32.gmra.mrb[26].mxu0 %vm1576_vm8, %v1539_v21  ;;  %v12321_v32 = vld [vmem:[#allocation44_spill] sm:$0xff]  ;;  %v10544_v3 = vmul.f32 %v10218_v25, %v12322_v24  ;;  %v12323_v53 = vld [vmem:[#allocation50_spill] sm:$0xff]  ;;  %v12324_v52 = vld [vmem:[#allocation119_spill] sm:$0xff] }
 0x1d3   : > { %7129 = vmatmul.mubr.msk.f32.gmra.mrb[26].mxu1 %vm1576_vm8, %v1555_v54  ;;  %v10540_v57 = vmul.f32 %v8568_v20, %v12321_v32  ;;  %v10548_v42 = vmul.f32 %v12324_v52, %v12323_v53  ;;  %v8580_v38 = vpop.eup %8579  ;;  %v10551_v6 = vrot.slane %v8574_v13, %v9629_v61  ;;  %7091 = vmatprep.mubr.msk.f32.mxu0 %vm1576_vm8, %v1540_v5  ;;  %v2033_v36 = vmul.f32 1.442695, %v2023_v4  ;;  %v12326_v21 = vld [vmem:[#allocation51_spill] sm:$0xff]  ;;  %v12327_v54 = vld [vmem:[#allocation76_spill] sm:$0xff]  ;;  %v12328_v25 = vld [vmem:[#allocation90_spill] sm:$0xff] }
 0x1d4   : > { %12318 = vst [vmem:[#allocation70_spill] sm:$0xff] %v10530_v59  ;;  %7131 = vmatprep.mubr.msk.f32.mxu1 %vm1576_vm8, %v1556_v26  ;;  %v10557_v20 = vmul.f32 %v10245_v18, %v12326_v21  ;;  %v2578_v24 = vsub.f32 %v12328_v25, %v12327_v54  ;;  %v10561_v32 = vpop.eup %8581  ;;  %v10564_v52 = vrot.slane %v8580_v38, %v9677_v41  ;;  %8597 = vpow2.f32 %v10424_v31  ;;  %v12334_v31 = vld [vmem:[#allocation45_spill] sm:$0xff]  ;;  %v12335_v53 = vld [vmem:[#allocation79_spill] sm:$0xff] }
 0x1d5   : > { %12325 = vst [vmem:[#allocation75_spill] sm:$0xff] %v10551_v6  ;;  %v2041_v13 = vmul.f32 1.442695, %v2027_v33  ;;  %v10569_v5 = vpack.c.bf16 %v10544_v3, %v10534_v58  ;;  %v10571_v4 = vpop.eup %8583  ;;  %v10574_v18 = vrot.slane %v8578_v8, %v9629_v61  ;;  %8599 = vpow2.f32 %v10398_v51  ;;  %v12336_v23 = vld [vmem:[#allocation93_spill] sm:$0xff] }
 0x1d6   : > { %12329 = vst [vmem:[#allocation23_spill] sm:$0xff] %v10564_v52  ;;  %v10579_v26 = vpack.c.bf16 %v10557_v20, %v10548_v42  ;;  %v2586_v21 = vmin.f32 %v2578_v24, 60.0  ;;  %v10581_v52 = vpop.eup %8585  ;;  %8601 = vpow2.f32 %v10442_v10  ;;  %v1543_v33 = vmul.f32 %v8580_v38, %v12334_v31  ;;  %v12339_v51 = vld [vmem:[#allocation53_spill] sm:$0xff]  ;;  %v12341_v10 = vld [vmem:[#allocation118_spill] sm:$0xff] }
 0x1d7   : > { %12330 = vst [vmem:[#allocation27_spill] sm:$0xff] %v10569_v5  ;;  %12331 = vst [vmem:[#allocation28_spill] sm:$0xff] %v10574_v18  ;;  %v2582_v6 = vsub.f32 %v12336_v23, %v12335_v53  ;;  %v10589_v8 = vmul.f32 %v12337_v28, %v9667_v0  ;;  %v8588_v18 = vpop.eup %8587  ;;  %v10593_v5 = vmul.f32 %v10173_v40, %v12339_v51  ;;  %v12343_v38 = vld [vmem:[#allocation117_spill] sm:$0xff]  ;;  %v12345_v28 = vld [vmem:[#allocation46_spill] sm:$0xff]  ;;  %8603 = vpow2.f32 %v10473_v22 }
 0x1d8   : > { %12332 = vst [vmem:[#allocation29_spill] sm:$0xff] %v10579_v26  ;;  %12333 = vst [vmem:[#allocation30_spill] sm:$0xff] %v10581_v52  ;;  %v12340_v26 = vld [vmem:[#allocation55_spill] sm:$0xff]  ;;  %v10601_v52 = vmul.f32 %v12341_v10, %v9669_v9  ;;  %v10605_v31 = vrot.slane %v12343_v38, %v9629_v61  ;;  %v10607_v59 = vpop.eup %8589  ;;  %v10610_v0 = vrot.slane %v8588_v18, %v9677_v41  ;;  %v12346_v10 = vld [vmem:[#allocation120_spill] sm:$0xff]  ;;  %8605 = vpow2.f32 %v2081_v46 }
 0x1d9   : > { %12338 = vst [vmem:[#allocation31_spill] sm:$0xff] %v10589_v8  ;;  %v10597_v24 = vmul.f32 %v10193_v43, %v12340_v26  ;;  %v10613_v40 = vmul.f32 %v8588_v18, %v12345_v28  ;;  %v2596_v8 = vmul.f32 1.442695, %v2586_v21  ;;  %v2590_v51 = vmin.f32 %v2582_v6, 60.0 }
 0x1da   : > { %12342 = vst [vmem:[#allocation103_spill] sm:$0xff] %v10601_v52  ;;  %12344 = vst [vmem:[#allocation108_spill] sm:$0xff] %v10610_v0  ;;  %v2856_v9 = vmul.f32 %v10605_v31, %v10391_v14  ;;  %v2857_v43 = vmul.f32 %v10605_v31, %v10395_v17  ;;  %v10622_v38 = vrot.slane %v12346_v10, %v9629_v61  ;;  %v10624_v52 = vpop.eup %8591  ;;  %8607 = vpow2.f32 %v2033_v36  ;;  %v12348_v10 = vld [vmem:[#allocation39_spill] sm:$0xff] }
 0x1db   : > { %v2604_v41 = vmul.f32 1.442695, %v2590_v51  ;;  %v2546_v21 = vsub.f32 %v12327_v54, %v12328_v25  ;;  %v2550_v22 = vsub.f32 %v12335_v53, %v12336_v23  ;;  %v8594_v6 = vpop.eup %8593  ;;  %8609 = vpow2.f32 %v2041_v13  ;;  %v12351_v13 = vld [vmem:[#allocation121_spill] sm:$0xff] }
 0x1dc   : > { %v10630_v14 = vpack.c.bf16 %v2857_v43, %v2856_v9  ;;  %v2860_v17 = vmul.f32 %v10622_v38, %v10403_v11  ;;  %v2861_v61 = vmul.f32 %v10622_v38, %v10407_v47  ;;  %v8596_v18 = vpop.eup %8595  ;;  %v1541_v46 = vmul.f32 %v8594_v6, %v12348_v10 }
 0x1dd   : > { %v2556_v51 = vmul.f32 1.442695, %v2546_v21  ;;  %v2564_v0 = vmul.f32 1.442695, %v2550_v22  ;;  %v10638_v25 = vmul.f32 %v8596_v18, %v12348_v10  ;;  %8611 = vpow2.f32 %v2596_v8  ;;  %v12353_v8 = vld [vmem:[#allocation122_spill] sm:$0xff]  ;;  %v12355_v18 = vld [vmem:[#allocation56_spill] sm:$0xff] }
 0x1de   : > { %12347 = vst [vmem:[#allocation35_spill] sm:$0xff] %v10630_v14  ;;  %v10640_v23 = vpack.c.bf16 %v2861_v61, %v2860_v17  ;;  %v10644_v36 = vmul.f32 %v10605_v31, %v10465_v55  ;;  %v10646_v11 = vpop.eup %8597  ;;  %7092 = vmatmul.mubr.msk.f32.gmra.mrb[28].mxu0 %vm1576_vm8, %v1541_v46  ;;  %8613 = vpow2.f32 %v2604_v41  ;;  %v10651_v47 = vmul.f32 %v10622_v38, %v10477_v2  ;;  %v12356_v10 = vld [vmem:[#allocation127_spill] sm:$0xff]  ;;  %v12357_v46 = vld [vmem:[#allocation57_spill] sm:$0xff] }
 0x1df   : > { %12349 = vst [vmem:[#allocation36_spill] sm:$0xff] %v10638_v25  ;;  %v10655_v21 = vmul.f32 %v12351_v13, %v12290_v56  ;;  %v10659_v22 = vmul.f32 %v12353_v8, %v12291_v48  ;;  %v8600_v6 = vpop.eup %8599  ;;  %7094 = vmatprep.mubr.msk.f32.mxu0 %vm1576_vm8, %v10526_v29  ;;  %8615 = vpow2.f32 %v2556_v51  ;;  %v10665_v41 = vmul.f32 %v12356_v10, %v12355_v18  ;;  %v12359_v56 = vld [vmem:[#allocation130_spill] sm:$0xff]  ;;  %v12360_v48 = vld [vmem:[#allocation40_spill] sm:$0xff] }
 0x1e0   : > { %12350 = vst [vmem:[#allocation96_spill] sm:$0xff] %v10640_v23  ;;  %v10669_v25 = vmul.f32 %v10414_v50, %v12357_v46  ;;  %v12358_v23 = vld [vmem:[#allocation59_spill] sm:$0xff]  ;;  %v1557_v8 = vmul.f32 %v8600_v6, %v12360_v48  ;;  %8617 = vpow2.f32 %v2564_v0  ;;  %v12362_v51 = vld [vmem:[#allocation126_spill] sm:$0xff]  ;;  %v12368_v0 = vld [vmem:[#allocation88_spill] sm:$0xff] }
 0x1e1   : > { %12352 = vst [vmem:[#allocation13_spill] sm:$0xff] %v10655_v21  ;;  %12354 = vst [vmem:[#allocation101_spill] sm:$0xff] %v10659_v22  ;;  %v10673_v13 = vmul.f32 %v12359_v56, %v12358_v23  ;;  %v8602_v21 = vpop.eup %8601  ;;  %v12361_v22 = vld [vmem:[#allocation60_spill] sm:$0xff]  ;;  %v10682_v10 = vmul.f32 %v12362_v51, %v12292_v16  ;;  %v12366_v56 = vld [vmem:[#allocation129_spill] sm:$0xff]  ;;  %8619 = vpow2.f32 %v10444_v49 }
 0x1e2   : > { %v10678_v29 = vmul.f32 %v10452_v39, %v12361_v22  ;;  %v10685_v14 = vmul.f32 %v8602_v21, %v12360_v48  ;;  %v10689_v50 = vpack.c.bf16 %v10669_v25, %v10665_v41  ;;  %v10693_v23 = vmul.f32 %v12366_v56, %v12293_v12  ;;  %v12369_v6 = vld [vmem:[#allocation113_spill] sm:$0xff]  ;;  %7132 = vmatmul.mubr.msk.f32.gmra.mrb[28].mxu1 %vm1576_vm8, %v1557_v8  ;;  %v12371_v39 = vld [vmem:[#allocation63_spill] sm:$0xff]  ;;  %v12373_v12 = vld [vmem:[#allocation114_spill] sm:$0xff]  ;;  %v8604_v56 = vpop.eup %8603 }
 0x1e3   : > { %12363 = vst [vmem:[#allocation11_spill] sm:$0xff] %v10682_v10  ;;  %v3506_v46 = vsub.f32 %v12369_v6, %v12368_v0  ;;  %7095 = vmatmul.mubr.msk.f32.gmra.mrb[30].mxu0 %vm1576_vm8, %v1543_v33  ;;  %v10706_v21 = vmul.f32 %v10355_v27, %v12371_v39  ;;  %v12372_v48 = vld [vmem:[#allocation91_spill] sm:$0xff]  ;;  %7134 = vmatprep.mubr.msk.f32.mxu1 %vm1576_vm8, %v10540_v57  ;;  %v12374_v33 = vld [vmem:[#allocation65_spill] sm:$0xff]  ;;  %v8606_v10 = vpop.eup %8605  ;;  %v12377_v22 = vld [vmem:[#allocation26_spill] sm:$0xff] }
 0x1e4   : > { %12364 = vst [vmem:[#allocation110_spill] sm:$0xff] %v10685_v14  ;;  %12365 = vst [vmem:[#allocation37_spill] sm:$0xff] %v10689_v50  ;;  %v10702_v16 = vpack.c.bf16 %v10678_v29, %v10673_v13  ;;  %v3510_v51 = vsub.f32 %v12373_v12, %v12372_v48  ;;  %7145 = vmatprep.mubr.msk.f32.mxu0 %vm1576_vm8, %v10495_v63  ;;  %v10716_v8 = vmul.f32 %v10381_v34, %v12374_v33  ;;  %v12375_v14 = vld [vmem:[#allocation131_spill] sm:$0xff] }
 0x1e5   : > { %12367 = vst [vmem:[#allocation12_spill] sm:$0xff] %v10693_v23  ;;  %v3514_v49 = vmin.f32 %v3506_v46, 60.0  ;;  %v10719_v23 = vmul.f32 %v12375_v14, %v2856_v9  ;;  %v10722_v27 = vmul.f32 %v12375_v14, %v2857_v43  ;;  %v10726_v57 = vmul.f32 %v10346_v30, %v2860_v17  ;;  %v8608_v46 = vpop.eup %8607  ;;  %v12379_v17 = vld [vmem:[#allocation14_spill] sm:$0xff] }
 0x1e6   : > { %12370 = vst [vmem:[#allocation112_spill] sm:$0xff] %v10702_v16  ;;  %v12376_v16 = vld [vmem:[#allocation22_spill] sm:$0xff]  ;;  %v3518_v39 = vmin.f32 %v3510_v51, 60.0  ;;  %v10729_v63 = vmul.f32 %v10346_v30, %v2861_v61  ;;  %v2091_v34 = vmul.f32 %v8606_v10, %v12377_v22  ;;  %v3474_v43 = vsub.f32 %v12368_v0, %v12369_v6  ;;  %v8610_v18 = vpop.eup %8609  ;;  %7135 = vmatmul.mubr.msk.f32.gmra.mrb[30].mxu1 %vm1576_vm8, %v10613_v40 }
 0x1e7   : > { %v2087_v50 = vmul.f32 %v8604_v56, %v12376_v16  ;;  %v3524_v33 = vmul.f32 1.442695, %v3514_v49  ;;  %v10734_v9 = vpack.c.bf16 %v10722_v27, %v10719_v23  ;;  %v10742_v61 = vmul.f32 %v8608_v46, %v12379_v17  ;;  %v8612_v49 = vpop.eup %8611  ;;  %7159 = vmatprep.mubr.msk.f32.mxu1 %vm1576_vm8, %v10499_v44  ;;  %v12382_v46 = vld [vmem:[#allocation52_spill] sm:$0xff] }
 0x1e8   : > { %v3532_v10 = vmul.f32 1.442695, %v3518_v39  ;;  %v7779_v26 = vpack.c.bf16 %v10477_v2, %v2091_v34  ;;  %v8614_v22 = vpop.eup %8613  ;;  %v2610_v17 = vmul.f32 %v8612_v49, %v12382_v46  ;;  %v10760_v2 = vpack.c.bf16 %v10729_v63, %v10726_v57 }
 0x1e9   : > { %12378 = vst [vmem:[#allocation38_spill] sm:$0xff] %v10734_v9  ;;  %v7767_v51 = vpack.c.bf16 %v10465_v55, %v2087_v50  ;;  %v2858_v56 = vmul.f32 %v10605_v31, %v2087_v50  ;;  %v12380_v9 = vld [vmem:[#allocation15_spill] sm:$0xff]  ;;  %v2862_v55 = vmul.f32 %v10622_v38, %v2091_v34  ;;  %8621 = vpow2.f32 %v3524_v33  ;;  %v8616_v44 = vpop.eup %8615  ;;  %v12385_v38 = vld [vmem:[#allocation54_spill] sm:$0xff] }
 0x1ea   : > { %v10749_v6 = vmul.f32 %v8610_v18, %v12380_v9  ;;  %8623 = vpow2.f32 %v3532_v10  ;;  %12384 = vst [vmem:[#allocation106_spill] sm:$0xff] %v10760_v2  ;;  %7781 = vmatprep.subr.msk.bf16.mxu1 %vm9467_vm10, %v7779_v26  ;;  %v2614_v18 = vmul.f32 %v8614_v22, %v12385_v38  ;;  %v3484_v39 = vmul.f32 1.442695, %v3474_v43  ;;  %v8618_v34 = vpop.eup %8617  ;;  %v12387_v9 = vld [vmem:[#allocation134_spill] sm:$0xff]  ;;  %v12388_v10 = vld [vmem:[#allocation24_spill] sm:$0xff]  ;;  %v12393_v43 = vld [vmem:[#allocation19_spill] sm:$0xff] }
 0x1eb   : > { %7769 = vmatprep.subr.msk.bf16.mxu0 %vm9467_vm10, %v7767_v51  ;;  %v10756_v31 = vpack.c.bf16 %v10644_v36, %v2858_v56  ;;  %v10768_v50 = vpack.c.bf16 %v10651_v47, %v2862_v55  ;;  %v3478_v33 = vsub.f32 %v12372_v48, %v12373_v12  ;;  %8625 = vpow2.f32 %v12387_v9  ;;  %7784 = vmatpush3.bf16.xpose.msk.msra.mxu1 %vm9467_vm10, %v7779_v26 }
 0x1ec   : > { %7772 = vmatpush3.bf16.xpose.msk.msra.mxu0 %vm9467_vm10, %v7767_v51  ;;  %v10777_v49 = vpack.c.bf16 %v10593_v5, %v2610_v17  ;;  %v12390_v51 = vld [vmem:[#allocation18_spill] sm:$0xff]  ;;  %v10783_v2 = vmul.f32 %v12375_v14, %v2858_v56  ;;  %7794 = vmatprep.subr.bf16.mxu1 %v12388_v10  ;;  %v10787_v12 = vpack.c.bf16 %v10597_v24, %v2614_v18  ;;  %8627 = vpow2.f32 %v3484_v39  ;;  %v12397_v39 = vld [vmem:[#allocation137_spill] sm:$0xff] }
 0x1ed   : > { %12383 = vst [vmem:[#allocation98_spill] sm:$0xff] %v10756_v31  ;;  %12386 = vst [vmem:[#allocation116_spill] sm:$0xff] %v10768_v50  ;;  %7786 = vmatprep.subr.bf16.mxu0 %v12388_v10  ;;  %v10780_v22 = vmul.f32 %v8616_v44, %v12390_v51  ;;  %v10790_v9 = vmul.f32 %v8618_v34, %v12393_v43  ;;  %v3492_v26 = vmul.f32 1.442695, %v3478_v33  ;;  %v8620_v50 = vpop.eup %8619  ;;  %v12395_v51 = vld [vmem:[#allocation133_spill] sm:$0xff] }
 0x1ee   : > { %12389 = vst [vmem:[#allocation119_spill] sm:$0xff] %v10777_v49  ;;  %12392 = vst [vmem:[#allocation90_spill] sm:$0xff] %v10787_v12  ;;  %v10794_v31 = vmul.f32 %v12375_v14, %v10644_v36  ;;  %v10797_v44 = vmul.f32 %v10346_v30, %v2862_v55  ;;  %v10801_v56 = vmul.f32 %v10346_v30, %v10651_v47  ;;  %v12436_v12 = vld [vmem:[#allocation124_spill] sm:$0xff] }
 0x1ef   : > { %12391 = vst [vmem:[#allocation76_spill] sm:$0xff] %v10780_v22  ;;  %12394 = vst [vmem:[#allocation79_spill] sm:$0xff] %v10790_v9  ;;  %v10805_v22 = vmul.f32 %v12395_v51, %v12304_v37  ;;  %8629 = vpow2.f32 %v3492_v26  ;;  %v10809_v33 = vmul.f32 %v12397_v39, %v12305_v1  ;;  %v10813_v36 = vmul.f32 %v12375_v14, %v10534_v58  ;;  %v12404_v39 = vld [vmem:[#allocation72_spill] sm:$0xff]  ;;  %v12435_v9 = vld [vmem:[#allocation107_spill] sm:$0xff] }
 0x1f0   : > { %v10817_v55 = vmul.f32 %v12375_v14, %v10544_v3  ;;  %v10821_v47 = vpack.c.bf16 %v10794_v31, %v10783_v2  ;;  %v10825_v37 = vpack.c.bf16 %v10801_v56, %v10797_v44  ;;  %v10829_v1 = vmul.f32 %v10346_v30, %v10548_v42 }
 0x1f1   : > { %12396 = vst [vmem:[#allocation93_spill] sm:$0xff] %v10805_v22  ;;  %12398 = vst [vmem:[#allocation115_spill] sm:$0xff] %v10809_v33  ;;  %v10833_v58 = vmul.f32 %v10346_v30, %v10557_v20  ;;  %v10840_v34 = vmul.f32 %v12375_v14, %v2610_v17  ;;  %v10844_v43 = vmul.f32 %v12375_v14, %v10593_v5  ;;  %v12403_v17 = vld [vmem:[#allocation69_spill] sm:$0xff] }
 0x1f2   : > { %12399 = vst [vmem:[#allocation118_spill] sm:$0xff] %v10821_v47  ;;  %12400 = vst [vmem:[#allocation117_spill] sm:$0xff] %v10825_v37  ;;  %v10837_v3 = vpack.c.bf16 %v10817_v55, %v10813_v36  ;;  %v10847_v26 = vmul.f32 %v10346_v30, %v2614_v18  ;;  %v10857_v20 = vmul.f32 %v10346_v30, %v10597_v24  ;;  %v12405_v18 = vld [vmem:[#allocation128_spill] sm:$0xff]  ;;  %7160 = vmatmul.mubr.msk.f32.vlgmr.msra.gmra.mrb[32].mxu1 %vm1576_vm8, %v10510_v62  ;;  %v12410_v24 = vld [vmem:[#allocation85_spill] sm:$0xff] }
 0x1f3   : > { %7146 = vmatmul.mubr.msk.f32.vlgmr.msra.gmra.mrb[32].mxu0 %vm1576_vm8, %v10503_v15  ;;  %v10853_v42 = vpack.c.bf16 %v10833_v58, %v10829_v1  ;;  %v4496_v51 = vmul.f32 %v10522_v35, %v12403_v17  ;;  %v4497_v5 = vmul.f32 %v10646_v11, %v12404_v39  ;;  %v8622_v14 = vpop.eup %8621  ;;  %v10871_v30 = vpack.c.bf16 %v10844_v43, %v10840_v34  ;;  %v12409_v15 = vld [vmem:[#allocation82_spill] sm:$0xff]  ;;  %v12411_v37 = vld [vmem:[#allocation132_spill] sm:$0xff]  ;;  %v12412_v62 = vld [vmem:[#allocation61_spill] sm:$0xff] }
 0x1f4   : > { %12401 = vst [vmem:[#allocation46_spill] sm:$0xff] %v10837_v3  ;;  %v12406_v3 = vld [vmem:[#allocation111_spill] sm:$0xff]  ;;  %7788 = vmatpush3.bf16.msra.mxu0 %v12388_v10  ;;  %v4500_v35 = vmul.f32 %v10571_v4, %v12409_v15  ;;  %v8624_v11 = vpop.eup %8623  ;;  %8631 = vpow2.f32 %v12411_v37  ;;  %7796 = vmatpush3.bf16.msra.mxu1 %v12388_v10  ;;  %v12417_v37 = vld [vmem:[#allocation64_spill] sm:$0xff] }
 0x1f5   : > { %12402 = vst [vmem:[#allocation120_spill] sm:$0xff] %v10853_v42  ;;  %v12407_v33 = vsub.f32 %v12405_v18, %v12406_v3  ;;  %12408 = vst [vmem:[#allocation39_spill] sm:$0xff] %v10871_v30  ;;  %v4501_v42 = vmul.f32 %v8620_v50, %v12410_v24  ;;  %7148 = vmatprep.mubr.msk.f32.mxu0 %vm1576_vm8, %v10742_v61  ;;  %v10885_v3 = vpack.c.bf16 %v10857_v20, %v10847_v26  ;;  %v12415_v4 = vld [vmem:[#allocation135_spill] sm:$0xff]  ;;  %v12416_v50 = vld [vmem:[#allocation42_spill] sm:$0xff] }
 0x1f6   : > { %v10887_v30 = vpack.c.bf16 %v4497_v5, %v4496_v51  ;;  %8633 = vpow2.f32 %v12415_v4  ;;  %7162 = vmatprep.mubr.msk.f32.mxu1 %vm1576_vm8, %v10749_v6  ;;  %7790 = vmatprep.subr.bf16.mxu0 %v12416_v50  ;;  %v10894_v47 = vmul.f32 %v8624_v11, %v12417_v37  ;;  %v12420_v51 = vld [vmem:[#allocation138_spill] sm:$0xff]  ;;  %v12427_v4 = vld [vmem:[#allocation87_spill] sm:$0xff] }
 0x1f7   : > { %v5513_v22 = vmul.f32 1.442695, %v12407_v33  ;;  %v10881_v33 = vmul.f32 %v8622_v14, %v12412_v62  ;;  %12413 = vst [vmem:[#allocation121_spill] sm:$0xff] %v10885_v3  ;;  %v10896_v61 = vpack.c.bf16 %v4501_v42, %v4500_v35  ;;  %v10900_v14 = vmul.f32 %v10488_v7, %v12311_v60  ;;  %v8626_v3 = vpop.eup %8625  ;;  %7798 = vmatprep.subr.bf16.mxu1 %v12416_v50  ;;  %v12423_v5 = vld [vmem:[#allocation102_spill] sm:$0xff]  ;;  %v12424_v7 = vld [vmem:[#allocation123_spill] sm:$0xff] }
 0x1f8   : > { %12414 = vst [vmem:[#allocation122_spill] sm:$0xff] %v10887_v30  ;;  %8635 = vpow2.f32 %v12420_v51  ;;  %7149 = vmatmul.mubr.msk.f32.gmra.mrb[34].mxu0 %vm1576_vm8, %v10520_v19  ;;  %v10912_v42 = vmul.f32 %v10561_v32, %v12314_v45  ;;  %v4466_v60 = vsub.f32 %v12424_v7, %v12423_v5  ;;  %v8628_v35 = vpop.eup %8627  ;;  %v12425_v11 = vld [vmem:[#allocation70_spill] sm:$0xff]  ;;  %v10921_v19 = vpack.c.bf16 %v10716_v8, %v10894_v47  ;;  %v8711_v45 = vld [vmem:[%s9040_s7 + $0x70] sm:$0xff]  ;;  %v12428_v32 = vld [vmem:[#allocation43_spill] sm:$0xff] }
 0x1f9   : > { %12418 = vst [vmem:[#allocation127_spill] sm:$0xff] %v10896_v61  ;;  %12419 = vst [vmem:[#allocation130_spill] sm:$0xff] %v10900_v14  ;;  %v10908_v6 = vpack.c.bf16 %v10706_v21, %v10881_v33  ;;  %8637 = vpow2.f32 %v5513_v22  ;;  %7163 = vmatmul.mubr.msk.f32.gmra.mrb[34].mxu1 %vm1576_vm8, %v12425_v11  ;;  %7792 = vmatpush3.bf16.msra.mxu0 %v12416_v50  ;;  %v10925_v51 = vmul.f32 %v10607_v59, %v12427_v4  ;;  %v12430_v22 = vld [vmem:[#allocation27_spill] sm:$0xff]  ;;  %v12431_v11 = vld [vmem:[#allocation32_spill] sm:$0xff] }
 0x1fa   : > { %12422 = vst [vmem:[#allocation126_spill] sm:$0xff] %v10912_v42  ;;  %12426 = vst [vmem:[#allocation129_spill] sm:$0xff] %v10921_v19  ;;  %v12429_v42 = vsub.f32 1.0, %v12428_v32  ;;  %7800 = vmatpush3.bf16.msra.mxu1 %v12416_v50  ;;  %7803 = vmatprep.subr.msk.bf16.mxu0 %vm9467_vm10, %v12430_v22  ;;  %v10937_v61 = vmul.f32 %v8628_v35, %v12431_v11  ;;  %v4474_v30 = vmin.f32 %v4466_v60, 60.0  ;;  %v8712_v19 = vld [vmem:[%s9040_s7 + $0x78] sm:$0xff]  ;;  %v12438_v50 = vld [vmem:[#allocation75_spill] sm:$0xff] }
 0x1fb   : > { %12421 = vst [vmem:[#allocation40_spill] sm:$0xff] %v10908_v6  ;;  %v12433_v6 = vld [vmem:[#allocation47_spill] sm:$0xff]  ;;  %v4470_v32 = vsub.f32 %v12436_v12, %v12435_v9  ;;  %v4744_v49 = vmul.f32 %v12438_v50, %v10719_v23  ;;  %v4745_v35 = vmul.f32 %v12438_v50, %v10722_v27  ;;  %v12439_v60 = vld [vmem:[#allocation28_spill] sm:$0xff]  ;;  %v4434_v27 = vsub.f32 %v12423_v5, %v12424_v7 }
 0x1fc   : > { %v10930_v14 = vmul.f32 %v8711_v45, %v12429_v42  ;;  %12432 = vst [vmem:[#allocation88_spill] sm:$0xff] %v10937_v61  ;;  %v12434_v10 = vsub.f32 1.0, %v12433_v6  ;;  %v8630_v42 = vpop.eup %8629  ;;  %v12437_v45 = vld [vmem:[#allocation29_spill] sm:$0xff]  ;;  %v4756_v11 = vmul.f32 %v12439_v60, %v10726_v57  ;;  %v12440_v6 = vld [vmem:[#allocation34_spill] sm:$0xff]  ;;  %v4484_v61 = vmul.f32 1.442695, %v4474_v30 }
 0x1fd   : > { %7815 = vmatprep.subr.msk.bf16.mxu1 %vm9467_vm10, %v12437_v45  ;;  %v4478_v22 = vmin.f32 %v4470_v32, 60.0  ;;  %v10963_v45 = vpack.c.bf16 %v4745_v35, %v4744_v49  ;;  %v4438_v57 = vsub.f32 %v12435_v9, %v12436_v12  ;;  %v4747_v30 = vmul.f32 %v12438_v50, %v10794_v31 }
 0x1fe   : > { %v10942_v59 = vmul.f32 %v8712_v19, %v12434_v10  ;;  %v4757_v10 = vmul.f32 %v12439_v60, %v10729_v63  ;;  %v10958_v19 = vmul.f32 %v8630_v42, %v12440_v6  ;;  %8639 = vpow2.f32 %v4484_v61  ;;  %v10979_v7 = vpop.eup %8631  ;;  %v12441_v61 = vld [vmem:[#allocation45_spill] sm:$0xff] }
 0x1ff   : > { %v4492_v63 = vmul.f32 1.442695, %v4478_v22  ;;  %v4746_v42 = vmul.f32 %v12438_v50, %v10783_v2  ;;  %v4452_v32 = vmul.f32 1.442695, %v4438_v57  ;;  %v4758_v49 = vmul.f32 %v12439_v60, %v10797_v44  ;;  %v12442_v22 = vld [vmem:[#allocation30_spill] sm:$0xff] }
 0x200   : > { %v10961_v40 = vmul.f32 %v8626_v3, %v10942_v59  ;;  %v10965_v23 = vpack.c.bf16 %v4757_v10, %v4756_v11  ;;  %v4444_v3 = vmul.f32 1.442695, %v4434_v27  ;;  %v4759_v35 = vmul.f32 %v12439_v60, %v10801_v56  ;;  %v10991_v2 = vpop.eup %8633 }
 0x201   : > { %8641 = vpow2.f32 %v4492_v63  ;;  %v10981_v12 = vpack.c.bf16 %v4747_v30, %v4746_v42  ;;  %v10985_v11 = vmul.f32 %v12442_v22, %v12441_v61  ;;  %v10989_v31 = vmul.f32 %v10624_v52, %v12345_v28  ;;  %v12448_v61 = vld [vmem:[#allocation125_spill] sm:$0xff] }
 0x202   : > { %8643 = vpow2.f32 %v4444_v3  ;;  %v10993_v44 = vpack.c.bf16 %v4759_v35, %v4758_v49  ;;  %v4748_v56 = vmul.f32 %v12438_v50, %v10813_v36  ;;  %v4749_v10 = vmul.f32 %v12438_v50, %v10817_v55  ;;  %v10999_v6 = vpop.eup %8635  ;;  %v12447_v35 = vld [vmem:[#allocation62_spill] sm:$0xff] }
 0x203   : > { %8645 = vpow2.f32 %v4452_v32  ;;  %v4760_v27 = vmul.f32 %v12439_v60, %v10829_v1  ;;  %v4761_v52 = vmul.f32 %v12439_v60, %v10833_v58  ;;  %v4750_v28 = vmul.f32 %v12438_v50, %v10840_v34  ;;  %v11007_v57 = vpop.eup %8637 }
 0x204   : > { %v11009_v63 = vpack.c.bf16 %v4749_v10, %v4748_v56  ;;  %v4751_v36 = vmul.f32 %v12438_v50, %v10844_v43  ;;  %v4762_v55 = vmul.f32 %v12439_v60, %v10847_v26  ;;  %v4763_v42 = vmul.f32 %v12439_v60, %v10857_v20 }
 0x205   : > { %v11017_v1 = vpack.c.bf16 %v4761_v52, %v4760_v27  ;;  %v4752_v58 = vmul.f32 %v12438_v50, %v10665_v41  ;;  %v4753_v34 = vmul.f32 %v12438_v50, %v10669_v25  ;;  %v4764_v30 = vmul.f32 %v12439_v60, %v10673_v13 }
 0x206   : > { %v11025_v3 = vpack.c.bf16 %v4751_v36, %v4750_v28  ;;  %v11027_v43 = vpack.c.bf16 %v4763_v42, %v4762_v55  ;;  %v4765_v26 = vmul.f32 %v12439_v60, %v10678_v29  ;;  %v4754_v20 = vmul.f32 %v12438_v50, %v10881_v33  ;;  %v12449_v29 = vld [vmem:[#allocation68_spill] sm:$0xff]  ;;  %v12450_v33 = vld [vmem:[#allocation71_spill] sm:$0xff]  ;;  %v12455_v28 = vld [vmem:[#allocation86_spill] sm:$0xff] }
 0x207   : > { %v11033_v32 = vpack.c.bf16 %v4753_v34, %v4752_v58  ;;  %v4755_v41 = vmul.f32 %v12438_v50, %v10706_v21  ;;  %v4766_v25 = vmul.f32 %v12439_v60, %v10894_v47  ;;  %v4767_v13 = vmul.f32 %v12439_v60, %v10716_v8  ;;  %v12453_v47 = vld [vmem:[#allocation74_spill] sm:$0xff] }
 0x208   : > { %12443 = vst [vmem:[#allocation113_spill] sm:$0xff] %v11025_v3  ;;  %12444 = vst [vmem:[#allocation91_spill] sm:$0xff] %v11027_v43  ;;  %v11041_v49 = vpack.c.bf16 %v4765_v26, %v4764_v30  ;;  %v5423_v22 = vsub.f32 %v12448_v61, %v12447_v35  ;;  %v5424_v56 = vsub.f32 %v12448_v61, %v12449_v29  ;;  %v8640_v27 = vpop.eup %8639  ;;  %v12454_v8 = vld [vmem:[#allocation58_spill] sm:$0xff]  ;;  %v12477_v43 = vld [vmem:[#allocation104_spill] sm:$0xff] }
 0x209   : > { %12445 = vst [vmem:[#allocation114_spill] sm:$0xff] %v11033_v32  ;;  %v5439_v10 = vsub.f32 %v12405_v18, %v12450_v33  ;;  %v11049_v52 = vpack.c.bf16 %v4755_v41, %v4754_v20  ;;  %v11051_v21 = vpack.c.bf16 %v4767_v13, %v4766_v25  ;;  %v5440_v50 = vsub.f32 %v12405_v18, %v12453_v47  ;;  %v12456_v26 = vld [vmem:[#allocation66_spill] sm:$0xff]  ;;  %v12457_v41 = vld [vmem:[#allocation67_spill] sm:$0xff] }
 0x20a   : > { %12446 = vst [vmem:[#allocation131_spill] sm:$0xff] %v11041_v49  ;;  %v5425_v60 = vsub.f32 %v12448_v61, %v12454_v8  ;;  %v4498_v36 = vmul.f32 %v8640_v27, %v12455_v28  ;;  %v5455_v55 = vmul.f32 1.442695, %v5423_v22  ;;  %v5457_v42 = vmul.f32 1.442695, %v5424_v56  ;;  %v12458_v27 = vld [vmem:[#allocation73_spill] sm:$0xff] }
 0x20b   : > { %12451 = vst [vmem:[#allocation22_spill] sm:$0xff] %v11049_v52  ;;  %12452 = vst [vmem:[#allocation14_spill] sm:$0xff] %v11051_v21  ;;  %v5487_v58 = vmul.f32 1.442695, %v5439_v10  ;;  %v8642_v34 = vpop.eup %8641  ;;  %v5489_v30 = vmul.f32 1.442695, %v5440_v50  ;;  %v5426_v35 = vsub.f32 %v12448_v61, %v12456_v26  ;;  %v5441_v25 = vsub.f32 %v12405_v18, %v12457_v41 }
 0x20c   : > { %v5459_v20 = vmul.f32 1.442695, %v5425_v60  ;;  %v8644_v13 = vpop.eup %8643  ;;  %v11063_v29 = vpack.c.bf16 %v10925_v51, %v4498_v36  ;;  %v4502_v33 = vmul.f32 %v8642_v34, %v10930_v14  ;;  %8647 = vpow2.f32 %v5455_v55  ;;  %v12459_v10 = vld [vmem:[#allocation41_spill] sm:$0xff]  ;;  %v12460_v26 = vld [vmem:[#allocation44_spill] sm:$0xff] }
 0x20d   : > { %v5442_v22 = vsub.f32 %v12405_v18, %v12458_v27  ;;  %v8646_v56 = vpop.eup %8645  ;;  %v11069_v47 = vmul.f32 %v8644_v13, %v12459_v10  ;;  %8649 = vpow2.f32 %v5457_v42  ;;  %v5461_v50 = vmul.f32 1.442695, %v5426_v35  ;;  %v12461_v36 = vld [vmem:[#allocation77_spill] sm:$0xff]  ;;  %v12463_v13 = vld [vmem:[#allocation80_spill] sm:$0xff] }
 0x20e   : > { %v5491_v8 = vmul.f32 1.442695, %v5441_v25  ;;  %v11072_v60 = vpack.c.bf16 %v10961_v40, %v4502_v33  ;;  %v11075_v41 = vmul.f32 %v8646_v56, %v12460_v26  ;;  %8651 = vpow2.f32 %v5487_v58  ;;  %v12462_v34 = vld [vmem:[#allocation81_spill] sm:$0xff]  ;;  %v12464_v35 = vld [vmem:[#allocation84_spill] sm:$0xff]  ;;  %v12465_v33 = vld [vmem:[#allocation78_spill] sm:$0xff] }
 0x20f   : > { %v5493_v51 = vmul.f32 1.442695, %v5442_v22  ;;  %8653 = vpow2.f32 %v5489_v30  ;;  %v5427_v55 = vsub.f32 %v12448_v61, %v12461_v36  ;;  %v5428_v27 = vsub.f32 %v12448_v61, %v12462_v34  ;;  %v12466_v34 = vld [vmem:[#allocation83_spill] sm:$0xff] }
 0x210   : > { %v5443_v42 = vsub.f32 %v12405_v18, %v12463_v13  ;;  %8655 = vpow2.f32 %v5459_v20  ;;  %v5444_v40 = vsub.f32 %v12405_v18, %v12464_v35  ;;  %v5429_v25 = vsub.f32 %v12448_v61, %v12327_v54  ;;  %v12467_v35 = vld [vmem:[#allocation89_spill] sm:$0xff] }
 0x211   : > { %v5430_v58 = vsub.f32 %v12448_v61, %v12465_v33  ;;  %8657 = vpow2.f32 %v5461_v50  ;;  %v5463_v30 = vmul.f32 1.442695, %v5427_v55  ;;  %v5465_v22 = vmul.f32 1.442695, %v5428_v27  ;;  %v12468_v33 = vld [vmem:[#allocation95_spill] sm:$0xff]  ;;  %v12469_v55 = vld [vmem:[#allocation94_spill] sm:$0xff] }
 0x212   : > { %v5495_v56 = vmul.f32 1.442695, %v5443_v42  ;;  %8659 = vpow2.f32 %v5491_v8  ;;  %v5497_v10 = vmul.f32 1.442695, %v5444_v40  ;;  %v5467_v26 = vmul.f32 1.442695, %v5429_v25 }
 0x213   : > { %v5469_v36 = vmul.f32 1.442695, %v5430_v58  ;;  %8661 = vpow2.f32 %v5493_v51  ;;  %v5445_v20 = vsub.f32 %v12405_v18, %v12335_v53  ;;  %v5446_v13 = vsub.f32 %v12405_v18, %v12466_v34  ;;  %v12470_v27 = vld [vmem:[#allocation99_spill] sm:$0xff] }
 0x214   : > { %v5431_v54 = vsub.f32 %v12448_v61, %v12467_v35  ;;  %8663 = vpow2.f32 %v5463_v30  ;;  %v5432_v50 = vsub.f32 %v12448_v61, %v12468_v33  ;;  %v5447_v8 = vsub.f32 %v12405_v18, %v12469_v55  ;;  %v12471_v30 = vld [vmem:[#allocation16_spill] sm:$0xff] }
 0x215   : > { %v5448_v42 = vsub.f32 %v12405_v18, %v12470_v27  ;;  %8665 = vpow2.f32 %v5465_v22  ;;  %v5499_v51 = vmul.f32 1.442695, %v5445_v20  ;;  %v5501_v40 = vmul.f32 1.442695, %v5446_v13  ;;  %v12472_v55 = vld [vmem:[#allocation92_spill] sm:$0xff]  ;;  %v12473_v22 = vld [vmem:[#allocation17_spill] sm:$0xff] }
 0x216   : > { %v5471_v53 = vmul.f32 1.442695, %v5431_v54  ;;  %v8648_v25 = vpop.eup %8647  ;;  %8667 = vpow2.f32 %v5495_v56  ;;  %v5473_v58 = vmul.f32 1.442695, %v5432_v50  ;;  %v5503_v34 = vmul.f32 1.442695, %v5447_v8 }
 0x217   : > { %v5505_v21 = vmul.f32 1.442695, %v5448_v42  ;;  %v8650_v35 = vpop.eup %8649  ;;  %v5519_v52 = vmul.f32 %v8648_v25, %v12471_v30  ;;  %8669 = vpow2.f32 %v5497_v10  ;;  %v5433_v33 = vsub.f32 %v12448_v61, %v12368_v0  ;;  %v12474_v13 = vld [vmem:[#allocation97_spill] sm:$0xff]  ;;  %v12475_v8 = vld [vmem:[#allocation20_spill] sm:$0xff] }
 0x218   : > { %v5434_v49 = vsub.f32 %v12448_v61, %v12472_v55  ;;  %v8652_v27 = vpop.eup %8651  ;;  %v5520_v20 = vmul.f32 %v8650_v35, %v12473_v22  ;;  %8671 = vpow2.f32 %v5467_v26  ;;  %v5449_v56 = vsub.f32 %v12405_v18, %v12372_v48  ;;  %v12476_v55 = vld [vmem:[#allocation21_spill] sm:$0xff] }
 0x219   : > { %v5450_v54 = vsub.f32 %v12405_v18, %v12474_v13  ;;  %v8654_v50 = vpop.eup %8653  ;;  %v5535_v42 = vmul.f32 %v8652_v27, %v12475_v8  ;;  %8673 = vpow2.f32 %v5469_v36  ;;  %v5475_v10 = vmul.f32 1.442695, %v5433_v33  ;;  %v12478_v36 = vld [vmem:[#allocation25_spill] sm:$0xff]  ;;  %v12479_v33 = vld [vmem:[#allocation26_spill] sm:$0xff] }
 0x21a   : > { %v5477_v25 = vmul.f32 1.442695, %v5434_v49  ;;  %v8656_v0 = vpop.eup %8655  ;;  %v11112_v30 = vpack.c.bf16 %v5520_v20, %v5519_v52  ;;  %v5536_v32 = vmul.f32 %v8654_v50, %v12476_v55  ;;  %8675 = vpow2.f32 %v5499_v51  ;;  %v12483_v55 = vld [vmem:[#allocation49_spill] sm:$0xff] }
 0x21b   : > { %v5507_v35 = vmul.f32 1.442695, %v5449_v56  ;;  %v8658_v26 = vpop.eup %8657  ;;  %v5521_v22 = vmul.f32 %v8656_v0, %v12376_v16  ;;  %8677 = vpow2.f32 %v5501_v40  ;;  %v5509_v48 = vmul.f32 1.442695, %v5450_v54  ;;  %v12480_v40 = vld [vmem:[#allocation109_spill] sm:$0xff] }
 0x21c   : > { %v5435_v13 = vsub.f32 %v12448_v61, %v12477_v43  ;;  %v8660_v3 = vpop.eup %8659  ;;  %v11118_v27 = vpack.c.bf16 %v5536_v32, %v5535_v42  ;;  %v5522_v49 = vmul.f32 %v8658_v26, %v12478_v36  ;;  %8679 = vpow2.f32 %v5471_v53  ;;  %v12481_v32 = vld [vmem:[#allocation33_spill] sm:$0xff] }
 0x21d   : > { %v11123_v52 = vmul.f32 %v10999_v6, %v12404_v39  ;;  %v8662_v51 = vpop.eup %8661  ;;  %v5537_v20 = vmul.f32 %v8660_v3, %v12479_v33  ;;  %8681 = vpow2.f32 %v5473_v58  ;;  %v5451_v56 = vsub.f32 %v12405_v18, %v12480_v40  ;;  %v12482_v6 = vld [vmem:[#allocation48_spill] sm:$0xff] }
 0x21e   : > { %v5479_v16 = vmul.f32 1.442695, %v5435_v13  ;;  %v8664_v54 = vpop.eup %8663  ;;  %v11128_v43 = vpack.c.bf16 %v5522_v49, %v5521_v22  ;;  %v5538_v50 = vmul.f32 %v8662_v51, %v12481_v32  ;;  %8683 = vpow2.f32 %v5503_v34 }
 0x21f   : > { %v11133_v53 = vmul.f32 %v11007_v57, %v12410_v24  ;;  %v8666_v39 = vpop.eup %8665  ;;  %v5523_v8 = vmul.f32 %v8664_v54, %v12482_v6  ;;  %8685 = vpow2.f32 %v5505_v21  ;;  %v5511_v3 = vmul.f32 1.442695, %v5451_v56  ;;  %v12484_v24 = vld [vmem:[#allocation50_spill] sm:$0xff]  ;;  %v12487_v54 = vld [vmem:[#allocation55_spill] sm:$0xff] }
 0x220   : > { %v5437_v58 = vsub.f32 %v12448_v61, %v12423_v5  ;;  %v8668_v42 = vpop.eup %8667  ;;  %v11138_v0 = vpack.c.bf16 %v5538_v50, %v5537_v20  ;;  %v5524_v26 = vmul.f32 %v8666_v39, %v12483_v55  ;;  %8687 = vpow2.f32 %v5475_v10  ;;  %v12485_v5 = vld [vmem:[#allocation51_spill] sm:$0xff]  ;;  %v12486_v20 = vld [vmem:[#allocation53_spill] sm:$0xff] }
 0x221   : > { %v5534_v34 = vmul.f32 %v10979_v7, %v12427_v4  ;;  %v8670_v22 = vpop.eup %8669  ;;  %v5539_v57 = vmul.f32 %v8668_v42, %v12484_v24  ;;  %8689 = vpow2.f32 %v5477_v25  ;;  %v5453_v21 = vsub.f32 %v12405_v18, %v12435_v9  ;;  %v12489_v39 = vld [vmem:[#allocation57_spill] sm:$0xff]  ;;  %v12491_v42 = vld [vmem:[#allocation60_spill] sm:$0xff] }
 0x222   : > { %v5483_v13 = vmul.f32 1.442695, %v5437_v58  ;;  %v8672_v36 = vpop.eup %8671  ;;  %v11146_v49 = vpack.c.bf16 %v5524_v26, %v5523_v8  ;;  %v5540_v61 = vmul.f32 %v8670_v22, %v12485_v5  ;;  %8691 = vpow2.f32 %v5507_v35  ;;  %v12490_v8 = vld [vmem:[#allocation59_spill] sm:$0xff] }
 0x223   : > { %v5550_v10 = vmul.f32 %v10991_v2, %v10942_v59  ;;  %v8674_v51 = vpop.eup %8673  ;;  %v5525_v4 = vmul.f32 %v8672_v36, %v12382_v46  ;;  %8693 = vpow2.f32 %v5509_v48  ;;  %v5515_v7 = vmul.f32 1.442695, %v5453_v21  ;;  %v12488_v46 = vld [vmem:[#allocation56_spill] sm:$0xff] }
 0x224   : > { %v8676_v33 = vpop.eup %8675  ;;  %v11152_v25 = vpack.c.bf16 %v5540_v61, %v5539_v57  ;;  %v5526_v40 = vmul.f32 %v8674_v51, %v12486_v20  ;;  %8695 = vpow2.f32 %v5479_v16 }
 0x225   : > { %v8678_v9 = vpop.eup %8677  ;;  %v5541_v18 = vmul.f32 %v8676_v33, %v12385_v38  ;;  %8697 = vpow2.f32 %v5511_v3 }
 0x226   : > { %v8680_v56 = vpop.eup %8679  ;;  %v11156_v35 = vpack.c.bf16 %v5526_v40, %v5525_v4  ;;  %v5542_v59 = vmul.f32 %v8678_v9, %v12487_v54  ;;  %8699 = vpow2.f32 %v5483_v13  ;;  %v12492_v13 = vld [vmem:[#allocation63_spill] sm:$0xff]  ;;  %v12493_v4 = vld [vmem:[#allocation65_spill] sm:$0xff] }
 0x227   : > { %v8682_v2 = vpop.eup %8681  ;;  %v5527_v48 = vmul.f32 %v8680_v56, %v12488_v46  ;;  %8701 = vpow2.f32 %v5515_v7 }
 0x228   : > { %v8684_v32 = vpop.eup %8683  ;;  %v11160_v50 = vpack.c.bf16 %v5542_v59, %v5541_v18  ;;  %v5528_v6 = vmul.f32 %v8682_v2, %v12489_v39 }
 0x229   : > { %v8686_v16 = vpop.eup %8685  ;;  %v5543_v58 = vmul.f32 %v8684_v32, %v12490_v8 }
 0x22a   : > { %v8688_v38 = vpop.eup %8687  ;;  %v11164_v3 = vpack.c.bf16 %v5528_v6, %v5527_v48  ;;  %v5544_v55 = vmul.f32 %v8686_v16, %v12491_v42  ;;  %v12496_v16 = vld [vmem:[#allocation27_spill] sm:$0xff] }
 0x22b   : > { %v8690_v26 = vpop.eup %8689  ;;  %v5529_v22 = vmul.f32 %v8688_v38, %v12412_v62  ;;  %v12498_v38 = vld [vmem:[#allocation29_spill] sm:$0xff]  ;;  %v12548_v42 = vld [vmem:[#allocation23_spill] sm:$0xff] }
 0x22c   : > { %v8692_v24 = vpop.eup %8691  ;;  %v11168_v57 = vpack.c.bf16 %v5544_v55, %v5543_v58  ;;  %v5530_v21 = vmul.f32 %v8690_v26, %v12492_v13 }
 0x22d   : > { %v8694_v36 = vpop.eup %8693  ;;  %v5545_v5 = vmul.f32 %v8692_v24, %v12417_v37 }
 0x22e   : > { %v8696_v61 = vpop.eup %8695  ;;  %v11172_v51 = vpack.c.bf16 %v5530_v21, %v5529_v22  ;;  %v5546_v7 = vmul.f32 %v8694_v36, %v12493_v4  ;;  %v12500_v22 = vld [vmem:[#allocation119_spill] sm:$0xff]  ;;  %v12502_v36 = vld [vmem:[#allocation90_spill] sm:$0xff] }
 0x22f   : > { %v8698_v33 = vpop.eup %8697  ;;  %v5531_v20 = vmul.f32 %v8696_v61, %v12403_v17  ;;  %v12503_v61 = vld [vmem:[#allocation31_spill] sm:$0xff] }
 0x230   : > { %v8700_v40 = vpop.eup %8699  ;;  %v11176_v9 = vpack.c.bf16 %v5546_v7, %v5545_v5  ;;  %v5547_v62 = vmul.f32 %v8698_v33, %v12409_v15  ;;  %v12504_v4 = vld [vmem:[#allocation103_spill] sm:$0xff]  ;;  %v12506_v33 = vld [vmem:[#allocation96_spill] sm:$0xff] }
 0x231   : > { %v8702_v18 = vpop.eup %8701  ;;  %v11180_v56 = vpack.c.bf16 %v11123_v52, %v5531_v20  ;;  %v5533_v54 = vmul.f32 %v8700_v40, %v12455_v28  ;;  %v12505_v7 = vld [vmem:[#allocation35_spill] sm:$0xff]  ;;  %v12507_v20 = vld [vmem:[#allocation136_spill] sm:$0xff] }
 0x232   : > { %v11184_v37 = vpack.c.bf16 %v11133_v53, %v5547_v62  ;;  %v5549_v59 = vmul.f32 %v8702_v18, %v10930_v14  ;;  %v12508_v40 = vld [vmem:[#allocation139_spill] sm:$0xff]  ;;  %v12509_v62 = vld [vmem:[#allocation76_spill] sm:$0xff] }
 0x233   : > { %v11187_v2 = vpack.c.bf16 %v5534_v34, %v5533_v54  ;;  %v12510_v18 = vld [vmem:[#allocation79_spill] sm:$0xff]  ;;  %v12511_v54 = vld [vmem:[#allocation98_spill] sm:$0xff] }
 0x234   : > { %v11189_v46 = vpack.c.bf16 %v5550_v10, %v5549_v59  ;;  %v12512_v59 = vld [vmem:[#allocation116_spill] sm:$0xff] }
 0x2c5   : > { %v7161_v48 = vpop.f32.mrb[32].mxu1 }
 0x2c6   : > { %v7147_v17 = vpop.f32.mrb[32].mxu0  ;;  %v2292_v52 = vpop.f32.mrb[33].mxu1  ;;  %v2320_v14 = vsel %vm9309_vm2, %v7161_v48, 0.0  ;;  %v12514_v48 = vld [vmem:[#allocation101_spill] sm:$0xff] }
 0x2c7   : > { %v2183_v32 = vpop.f32.mrb[33].mxu0  ;;  %v2316_v28 = vsel %vm9309_vm2, %v7147_v17, 0.0  ;;  %v2319_v53 = vsel %vm9300_vm1, %v2292_v52, 0.0  ;;  %v12513_v17 = vld [vmem:[#allocation13_spill] sm:$0xff]  ;;  %v765_v52 = vld [vmem:[%s9045_s15 + $0x20] sm:$0xff] }
 0x2c8   : > { %v2315_v39 = vsel %vm9300_vm1, %v2183_v32, 0.0  ;;  %7187 = vmatprep.mubr.msk.f32.mxu1 %vm2323_vm4, %v2319_v53  ;;  %v12515_v32 = vld [vmem:[#allocation24_spill] sm:$0xff]  ;;  %5555 = vxpose.xlu0.b32.cont [5/16] (narrow) %v765_v52, 64 }
 0x2c9   : > { %7173 = vmatprep.mubr.msk.f32.mxu0 %vm2323_vm4, %v2315_v39  ;;  %7188 = vmatmul.mubr.msk.f32.vlgmr.msra.gmra.mrb[16].mxu1 %vm2323_vm4, %v2320_v14  ;;  %v12516_v39 = vld [vmem:[#allocation42_spill] sm:$0xff]  ;;  %v767_v14 = vld [vmem:[%s9045_s15 + $0x30] sm:$0xff] }
 0x2ca   : > { %7174 = vmatmul.mubr.msk.f32.vlgmr.msra.gmra.mrb[16].mxu0 %vm2323_vm4, %v2316_v28  ;;  %7818 = vmatpush3.bf16.xpose.msk.msra.mxu1 %vm9467_vm10, %v12498_v38  ;;  %v766_v28 = vld [vmem:[%s9045_s15 + $0x28] sm:$0xff] }
 0x2cb   : > { %v7150_v34 = vpop.f32.mrb[34].mxu0  ;;  %7806 = vmatpush3.bf16.xpose.msk.msra.mxu0 %vm9467_vm10, %v12496_v16  ;;  %7821 = vmatprep.subr.msk.bf16.mxu1 %vm9467_vm10, %v12502_v36  ;;  %v11299_v53 = vpack.c.bf16 %v766_v28, %v765_v52 }
 0x2cc   : > { %v7164_v10 = vpop.f32.mrb[34].mxu1  ;;  %v2193_v58 = vpop.f32.mrb[35].mxu0  ;;  %7809 = vmatprep.subr.msk.bf16.mxu0 %vm9467_vm10, %v12500_v22  ;;  %v2318_v13 = vsel %vm9327_vm5, %v7150_v34, 0.0  ;;  %v768_v34 = vld [vmem:[%s9045_s15 + $0x38] sm:$0xff]  ;;  %5556 = vxpose.xlu0.b32.cont [6/16] (narrow) %v766_v28, 64 }
 0x2cd   : > { %v2317_v55 = vsel %vm9314_vm3, %v2193_v58, 0.0  ;;  %v2302_v26 = vpop.f32.mrb[35].mxu1  ;;  %v2322_v5 = vsel %vm9327_vm5, %v7164_v10, 0.0  ;;  %v11305_v10 = vpack.c.bf16 %v768_v34, %v767_v14 }
 0x2ce   : > { %v2321_v21 = vsel %vm9314_vm3, %v2302_v26, 0.0  ;;  %7176 = vmatprep.mubr.msk.f32.mxu0 %vm2323_vm4, %v2317_v55 }
 0x2cf   : > { %7190 = vmatprep.mubr.msk.f32.mxu1 %vm2323_vm4, %v2321_v21  ;;  %7177 = vmatmul.mubr.msk.f32.gmra.mrb[18].mxu0 %vm2323_vm4, %v2318_v13 }
 0x2d0   : > { %7191 = vmatmul.mubr.msk.f32.gmra.mrb[18].mxu1 %vm2323_vm4, %v2322_v5  ;;  %7201 = vmatprep.mubr.msk.f32.mxu0 %vm1576_vm8, %v12503_v61 }
 0x2d1   : > { %7215 = vmatprep.mubr.msk.f32.mxu1 %vm1576_vm8, %v12504_v4  ;;  %5557 = vxpose.xlu0.b32.cont [7/16] (narrow) %v767_v14, 64 }
 0x2d2   : > { %7824 = vmatpush3.bf16.xpose.msk.msra.mxu1 %vm9467_vm10, %v12502_v36 }
 0x2d3   : > { %7812 = vmatpush3.bf16.xpose.msk.msra.mxu0 %vm9467_vm10, %v12500_v22  ;;  %7839 = vmatprep.subr.msk.bf16.mxu1 %vm9467_vm10, %v12506_v33 }
 0x2d4   : > { %7827 = vmatprep.subr.msk.bf16.mxu0 %vm9467_vm10, %v12505_v7 }
 0x2d5   : > { %5558 = vxpose.xlu0.b32.cont [8/16] (narrow) %v768_v34, 64 }
 0x2d9   : > { %7216 = vmatmul.mubr.msk.f32.vlgmr.msra.gmra.mrb[36].mxu1 %vm1576_vm8, %v12508_v40 }
 0x2da   : > { %7202 = vmatmul.mubr.msk.f32.vlgmr.msra.gmra.mrb[36].mxu0 %vm1576_vm8, %v12507_v20  ;;  %7218 = vmatprep.mubr.msk.f32.mxu1 %vm1576_vm8, %v12510_v18 }
 0x2db   : > { %7204 = vmatprep.mubr.msk.f32.mxu0 %vm1576_vm8, %v12509_v62  ;;  %7830 = vmatpush3.bf16.xpose.msk.msra.mxu0 %vm9467_vm10, %v12505_v7 }
 0x2dc   : > { %7842 = vmatpush3.bf16.xpose.msk.msra.mxu1 %vm9467_vm10, %v12506_v33  ;;  %7833 = vmatprep.subr.msk.bf16.mxu0 %vm9467_vm10, %v12511_v54 }
 0x2dd   : > { %7845 = vmatprep.subr.msk.bf16.mxu1 %vm9467_vm10, %v12512_v59  ;;  %7219 = vmatmul.mubr.msk.f32.gmra.mrb[38].mxu1 %vm1576_vm8, %v12514_v48 }
 0x2de   : > { %7205 = vmatmul.mubr.msk.f32.gmra.mrb[38].mxu0 %vm1576_vm8, %v12513_v17  ;;  %7243 = vmatprep.mubr.msk.f32.mxu1 %vm1576_vm8, %v12504_v4 }
 0x2df   : > { %7229 = vmatprep.mubr.msk.f32.mxu0 %vm1576_vm8, %v12503_v61 }
 0x2e3   : > { %7836 = vmatpush3.bf16.xpose.msk.msra.mxu0 %vm9467_vm10, %v12511_v54 }
 0x2e4   : > { %7848 = vmatpush3.bf16.xpose.msk.msra.mxu1 %vm9467_vm10, %v12512_v59  ;;  %7850 = vmatprep.subr.bf16.mxu0 %v12515_v32 }
 0x2e5   : > { %7858 = vmatprep.subr.bf16.mxu1 %v12515_v32 }
 0x2ea   : > { %7230 = vmatmul.mubr.msk.f32.vlgmr.msra.gmra.mrb[40].mxu0 %vm1576_vm8, %v12507_v20 }
 0x2eb   : > { %7244 = vmatmul.mubr.msk.f32.vlgmr.msra.gmra.mrb[40].mxu1 %vm1576_vm8, %v12508_v40  ;;  %7232 = vmatprep.mubr.msk.f32.mxu0 %vm1576_vm8, %v12509_v62 }
 0x2ec   : > { %7246 = vmatprep.mubr.msk.f32.mxu1 %vm1576_vm8, %v12510_v18  ;;  %7852 = vmatpush3.bf16.msra.mxu0 %v12515_v32 }
 0x2ed   : > { %7860 = vmatpush3.bf16.msra.mxu1 %v12515_v32  ;;  %7854 = vmatprep.subr.bf16.mxu0 %v12516_v39 }
 0x2ee   : > { %7233 = vmatmul.mubr.msk.f32.gmra.mrb[42].mxu0 %vm1576_vm8, %v12513_v17  ;;  %7862 = vmatprep.subr.bf16.mxu1 %v12516_v39 }
 0x2ef   : > { %7247 = vmatmul.mubr.msk.f32.gmra.mrb[42].mxu1 %vm1576_vm8, %v12514_v48 }
 0x2f0   : > { %7856 = vmatpush3.bf16.msra.mxu0 %v12516_v39 }
 0x2f1   : > { %7864 = vmatpush3.bf16.msra.mxu1 %v12516_v39  ;;  %7866 = vmatprep.subr.bf16.mxu0 %v11299_v53 }
 0x2f2   : > { %7874 = vmatprep.subr.bf16.mxu1 %v11299_v53 }
 0x39c   : > { %v7189_v58 = vpop.f32.mrb[16].mxu1 }
 0x39d   : > { %v7175_v16 = vpop.f32.mrb[16].mxu0  ;;  %2531 = vst.msk [vmem:[%s9051_s11 + $0x88] sm:$0xff] %vm1576_vm8, %v7189_v58  ;;  %v2499_v55 = vpop.f32.mrb[17].mxu1  ;;  %v12517_v58 = vld [vmem:[#allocation37_spill] sm:$0xff] }
 0x39e   : > { %2527 = vst.msk [vmem:[%s9051_s11 + $0x8] sm:$0xff] %vm1576_vm8, %v7175_v16  ;;  %v2402_v38 = vpop.f32.mrb[17].mxu0  ;;  %2530 = vst.msk [vmem:[%s9051_s11 + $0x80] sm:$0xff] %vm1576_vm8, %v2499_v55 }
 0x39f   : > { %2526 = vst.msk [vmem:[%s9051_s11] sm:$0xff] %vm1576_vm8, %v2402_v38 }
 0x3a2   : > { %v7178_v26 = vpop.f32.mrb[18].mxu0 }
 0x3a3   : > { %2529 = vst.msk [vmem:[%s9051_s11 + $0x18] sm:$0xff] %vm1576_vm8, %v7178_v26  ;;  %v7192_v22 = vpop.f32.mrb[18].mxu1  ;;  %v2412_v13 = vpop.f32.mrb[19].mxu0  ;;  %v12518_v26 = vld [vmem:[#allocation112_spill] sm:$0xff] }
 0x3a4   : > { %2533 = vst.msk [vmem:[%s9051_s11 + $0x98] sm:$0xff] %vm1576_vm8, %v7192_v22  ;;  %2528 = vst.msk [vmem:[%s9051_s11 + $0x10] sm:$0xff] %vm1576_vm8, %v2412_v13  ;;  %v2509_v21 = vpop.f32.mrb[19].mxu1 }
 0x3a5   : > { %2532 = vst.msk [vmem:[%s9051_s11 + $0x90] sm:$0xff] %vm1576_vm8, %v2509_v21 }
 0x3ac   : > { %v7217_v5 = vpop.f32.mrb[36].mxu1 }
 0x3ad   : > { %v7203_v36 = vpop.f32.mrb[36].mxu0  ;;  %v2815_v4 = vpop.f32.mrb[37].mxu1  ;;  %v2839_v38 = vsel %vm9309_vm2, %v7217_v5, 0.0  ;;  %v12520_v5 = vld [vmem:[#allocation12_spill] sm:$0xff] }
 0x3ae   : > { %v2706_v61 = vpop.f32.mrb[37].mxu0  ;;  %v2838_v34 = vsel %vm9300_vm1, %v2815_v4, 0.0  ;;  %v2835_v16 = vsel %vm9309_vm2, %v7203_v36, 0.0  ;;  %v12519_v36 = vld [vmem:[#allocation11_spill] sm:$0xff]  ;;  %v12522_v4 = vld [vmem:[#allocation129_spill] sm:$0xff] }
 0x3af   : > { %v2834_v14 = vsel %vm9300_vm1, %v2706_v61, 0.0  ;;  %v12521_v61 = vld [vmem:[#allocation40_spill] sm:$0xff] }
 0x3b0   : > { %v7220_v33 = vpop.f32.mrb[38].mxu1 }
 0x3b1   : > { %v7206_v7 = vpop.f32.mrb[38].mxu0  ;;  %v2825_v40 = vpop.f32.mrb[39].mxu1  ;;  %v2841_v21 = vsel %vm9327_vm5, %v7220_v33, 0.0  ;;  %v12524_v33 = vld [vmem:[#allocation106_spill] sm:$0xff] }
 0x3b2   : > { %v2716_v20 = vpop.f32.mrb[39].mxu0  ;;  %v2840_v22 = vsel %vm9314_vm3, %v2825_v40, 0.0  ;;  %v2837_v13 = vsel %vm9327_vm5, %v7206_v7, 0.0  ;;  %v12523_v7 = vld [vmem:[#allocation38_spill] sm:$0xff]  ;;  %v12526_v40 = vld [vmem:[#allocation105_spill] sm:$0xff] }
 0x3b3   : > { %v2836_v55 = vsel %vm9314_vm3, %v2716_v20, 0.0  ;;  %v12525_v20 = vld [vmem:[#allocation100_spill] sm:$0xff] }
 0x3bd   : > { %v7231_v62 = vpop.f32.mrb[40].mxu0 }
 0x3be   : > { %v7245_v18 = vpop.f32.mrb[40].mxu1  ;;  %v2942_v54 = vpop.f32.mrb[41].mxu0 }
 0x3bf   : > { %v3039_v59 = vpop.f32.mrb[41].mxu1  ;;  %7257 = vmatprep.mubr.msk.f32.mxu0 %vm2323_vm4, %v2942_v54  ;;  %v12529_v54 = vld [vmem:[#allocation117_spill] sm:$0xff] }
 0x3c0   : > { %7271 = vmatprep.mubr.msk.f32.mxu1 %vm2323_vm4, %v3039_v59  ;;  %7258 = vmatmul.mubr.msk.f32.vlgmr.msra.gmra.mrb[20].mxu0 %vm2323_vm4, %v7231_v62  ;;  %v12527_v62 = vld [vmem:[#allocation88_spill] sm:$0xff]  ;;  %v12530_v59 = vld [vmem:[#allocation93_spill] sm:$0xff] }
 0x3c1   : > { %7272 = vmatmul.mubr.msk.f32.vlgmr.msra.gmra.mrb[20].mxu1 %vm2323_vm4, %v7245_v18  ;;  %7868 = vmatpush3.bf16.msra.mxu0 %v11299_v53  ;;  %v7234_v17 = vpop.f32.mrb[42].mxu0  ;;  %v12528_v18 = vld [vmem:[#allocation118_spill] sm:$0xff] }
 0x3c2   : > { %7876 = vmatpush3.bf16.msra.mxu1 %v11299_v53  ;;  %v7248_v48 = vpop.f32.mrb[42].mxu1  ;;  %v2952_v52 = vpop.f32.mrb[43].mxu0  ;;  %7870 = vmatprep.subr.bf16.mxu0 %v11305_v10 }
 0x3c3   : > { %v3049_v28 = vpop.f32.mrb[43].mxu1  ;;  %7260 = vmatprep.mubr.msk.f32.mxu0 %vm2323_vm4, %v2952_v52  ;;  %7878 = vmatprep.subr.bf16.mxu1 %v11305_v10  ;;  %v12533_v52 = vld [vmem:[#allocation120_spill] sm:$0xff] }
 0x3c4   : > { %7274 = vmatprep.mubr.msk.f32.mxu1 %vm2323_vm4, %v3049_v28  ;;  %7261 = vmatmul.mubr.msk.f32.gmra.mrb[22].mxu0 %vm2323_vm4, %v7234_v17  ;;  %v12531_v17 = vld [vmem:[#allocation115_spill] sm:$0xff] }
 0x3c5   : > { %7275 = vmatmul.mubr.msk.f32.gmra.mrb[22].mxu1 %vm2323_vm4, %v7248_v48  ;;  %7872 = vmatpush3.bf16.msra.mxu0 %v11305_v10  ;;  %v12532_v48 = vld [vmem:[#allocation46_spill] sm:$0xff]  ;;  %v12534_v28 = vld [vmem:[#allocation39_spill] sm:$0xff] }
 0x3c6   : > { %7880 = vmatpush3.bf16.msra.mxu1 %v11305_v10  ;;  %7285 = vmatprep.mubr.msk.f32.mxu0 %vm2323_vm4, %v2834_v14  ;;  %v12535_v14 = vld [vmem:[#allocation121_spill] sm:$0xff] }
 0x3c7   : > { %7299 = vmatprep.mubr.msk.f32.mxu1 %vm2323_vm4, %v2838_v34  ;;  %7883 = vmatprep.subr.msk.bf16.mxu0 %vm9467_vm10, %v12517_v58  ;;  %v770_v34 = vld [vmem:[%s9045_s15 + $0x48] sm:$0xff] }
 0x3c8   : > { %7895 = vmatprep.subr.msk.bf16.mxu1 %vm9467_vm10, %v12518_v26  ;;  %7286 = vmatmul.mubr.msk.f32.vlgmr.msra.gmra.mrb[20].mxu0 %vm2323_vm4, %v2835_v16 }
 0x3c9   : > { %7300 = vmatmul.mubr.msk.f32.vlgmr.msra.gmra.mrb[20].mxu1 %vm2323_vm4, %v2839_v38  ;;  %7288 = vmatprep.mubr.msk.f32.mxu0 %vm2323_vm4, %v2836_v55  ;;  %v772_v38 = vld [vmem:[%s9045_s15 + $0x58] sm:$0xff] }
 0x3ca   : > { %7302 = vmatprep.mubr.msk.f32.mxu1 %vm2323_vm4, %v2840_v22 }
 0x3cc   : > { %7289 = vmatmul.mubr.msk.f32.gmra.mrb[22].mxu0 %vm2323_vm4, %v2837_v13 }
 0x3cd   : > { %7303 = vmatmul.mubr.msk.f32.gmra.mrb[22].mxu1 %vm2323_vm4, %v2841_v21  ;;  %7313 = vmatprep.mubr.msk.f32.mxu0 %vm1576_vm8, %v12519_v36 }
 0x3ce   : > { %7886 = vmatpush3.bf16.xpose.msk.msra.mxu0 %vm9467_vm10, %v12517_v58  ;;  %7327 = vmatprep.mubr.msk.f32.mxu1 %vm1576_vm8, %v12520_v5  ;;  %v771_v58 = vld [vmem:[%s9045_s15 + $0x50] sm:$0xff] }
 0x3cf   : > { %7898 = vmatpush3.bf16.xpose.msk.msra.mxu1 %vm9467_vm10, %v12518_v26  ;;  %7889 = vmatprep.subr.msk.bf16.mxu0 %vm9467_vm10, %v12521_v61  ;;  %v11489_v55 = vpack.c.bf16 %v772_v38, %v771_v58 }
 0x3d0   : > { %7901 = vmatprep.subr.msk.bf16.mxu1 %vm9467_vm10, %v12522_v4 }
 0x3d6   : > { %7892 = vmatpush3.bf16.xpose.msk.msra.mxu0 %vm9467_vm10, %v12521_v61 }
 0x3d7   : > { %7904 = vmatpush3.bf16.xpose.msk.msra.mxu1 %vm9467_vm10, %v12522_v4  ;;  %7907 = vmatprep.subr.msk.bf16.mxu0 %vm9467_vm10, %v12523_v7 }
 0x3d8   : > { %7931 = vmatprep.subr.msk.bf16.mxu1 %vm9467_vm10, %v12524_v33 }
 0x3dd   : > { %7314 = vmatmul.mubr.msk.f32.vlgmr.msra.gmra.mrb[44].mxu0 %vm1576_vm8, %v12525_v20 }
 0x3de   : > { %7328 = vmatmul.mubr.msk.f32.vlgmr.msra.gmra.mrb[44].mxu1 %vm1576_vm8, %v12526_v40  ;;  %7316 = vmatprep.mubr.msk.f32.mxu0 %vm1576_vm8, %v12527_v62 }
 0x3df   : > { %7330 = vmatprep.mubr.msk.f32.mxu1 %vm1576_vm8, %v10958_v19  ;;  %7910 = vmatpush3.bf16.xpose.msk.msra.mxu0 %vm9467_vm10, %v12523_v7 }
 0x3e0   : > { %7934 = vmatpush3.bf16.xpose.msk.msra.mxu1 %vm9467_vm10, %v12524_v33  ;;  %7913 = vmatprep.subr.msk.bf16.mxu0 %vm9467_vm10, %v12528_v18 }
 0x3e1   : > { %7937 = vmatprep.subr.msk.bf16.mxu1 %vm9467_vm10, %v12529_v54  ;;  %7317 = vmatmul.mubr.msk.f32.gmra.mrb[46].mxu0 %vm1576_vm8, %v12530_v59 }
 0x3e2   : > { %7331 = vmatmul.mubr.msk.f32.gmra.mrb[46].mxu1 %vm1576_vm8, %v12531_v17  ;;  %7349 = vmatprep.mubr.msk.f32.mxu0 %vm1576_vm8, %v12519_v36 }
 0x3e3   : > { %7371 = vmatprep.mubr.msk.f32.mxu1 %vm1576_vm8, %v12520_v5 }
 0x3e7   : > { %7916 = vmatpush3.bf16.xpose.msk.msra.mxu0 %vm9467_vm10, %v12528_v18 }
 0x3e8   : > { %7940 = vmatpush3.bf16.xpose.msk.msra.mxu1 %vm9467_vm10, %v12529_v54  ;;  %7919 = vmatprep.subr.msk.bf16.mxu0 %vm9467_vm10, %v12532_v48 }
 0x3e9   : > { %7943 = vmatprep.subr.msk.bf16.mxu1 %vm9467_vm10, %v12533_v52 }
 0x3ef   : > { %7922 = vmatpush3.bf16.xpose.msk.msra.mxu0 %vm9467_vm10, %v12532_v48 }
 0x3f0   : > { %7946 = vmatpush3.bf16.xpose.msk.msra.mxu1 %vm9467_vm10, %v12533_v52  ;;  %7925 = vmatprep.subr.msk.bf16.mxu0 %vm9467_vm10, %v12534_v28 }
 0x3f1   : > { %7949 = vmatprep.subr.msk.bf16.mxu1 %vm9467_vm10, %v12535_v14 }
 0x3f7   : > { %7928 = vmatpush3.bf16.xpose.msk.msra.mxu0 %vm9467_vm10, %v12534_v28 }
 0x3f8   : > { %7952 = vmatpush3.bf16.xpose.msk.msra.mxu1 %vm9467_vm10, %v12535_v14  ;;  %7954 = vmatprep.subr.bf16.mxu0 %v12515_v32 }
 0x3f9   : > { %7970 = vmatprep.subr.bf16.mxu1 %v12515_v32 }
 0x3fe   : > { %7350 = vmatmul.mubr.msk.f32.vlgmr.msra.gmra.mrb[48].mxu0 %vm1576_vm8, %v12525_v20 }
 0x3ff   : > { %7372 = vmatmul.mubr.msk.f32.vlgmr.msra.gmra.mrb[48].mxu1 %vm1576_vm8, %v12526_v40  ;;  %7352 = vmatprep.mubr.msk.f32.mxu0 %vm1576_vm8, %v12527_v62 }
 0x400   : > { %7374 = vmatprep.mubr.msk.f32.mxu1 %vm1576_vm8, %v10958_v19  ;;  %7956 = vmatpush3.bf16.msra.mxu0 %v12515_v32  ;;  %v769_v19 = vld [vmem:[%s9045_s15 + $0x40] sm:$0xff] }
 0x401   : > { %7972 = vmatpush3.bf16.msra.mxu1 %v12515_v32  ;;  %7958 = vmatprep.subr.bf16.mxu0 %v12516_v39  ;;  %v11483_v16 = vpack.c.bf16 %v770_v34, %v769_v19 }
 0x402   : > { %7353 = vmatmul.mubr.msk.f32.gmra.mrb[50].mxu0 %vm1576_vm8, %v12530_v59  ;;  %7974 = vmatprep.subr.bf16.mxu1 %v12516_v39 }
 0x403   : > { %7375 = vmatmul.mubr.msk.f32.gmra.mrb[50].mxu1 %vm1576_vm8, %v12531_v17  ;;  %5559 = vxpose.xlu0.b32.cont [9/16] (narrow) %v769_v19, 64 }
 0x404   : > { %7960 = vmatpush3.bf16.msra.mxu0 %v12516_v39 }
 0x405   : > { %7976 = vmatpush3.bf16.msra.mxu1 %v12516_v39  ;;  %7962 = vmatprep.subr.bf16.mxu0 %v11299_v53 }
 0x406   : > { %7978 = vmatprep.subr.bf16.mxu1 %v11299_v53 }
 0x407   : > { %5560 = vxpose.xlu0.b32.cont [10/16] (narrow) %v770_v34, 64 }
 0x408   : > { %7964 = vmatpush3.bf16.msra.mxu0 %v11299_v53 }
 0x409   : > { %7980 = vmatpush3.bf16.msra.mxu1 %v11299_v53  ;;  %7966 = vmatprep.subr.bf16.mxu0 %v11305_v10 }
 0x40a   : > { %7982 = vmatprep.subr.bf16.mxu1 %v11305_v10 }
 0x40b   : > { %5561 = vxpose.xlu0.b32.cont [11/16] (narrow) %v771_v58, 64 }
 0x40c   : > { %7968 = vmatpush3.bf16.msra.mxu0 %v11305_v10 }
 0x40d   : > { %7984 = vmatpush3.bf16.msra.mxu1 %v11305_v10  ;;  %7986 = vmatprep.subr.bf16.mxu0 %v11483_v16 }
 0x40e   : > { %7994 = vmatprep.subr.bf16.mxu1 %v11483_v16 }
 0x40f   : > { %5562 = vxpose.xlu0.b32.cont [12/16] (narrow) %v772_v38, 64 }
 0x49b   : > { %v7287_v26 = vpop.f32.mrb[20].mxu0 }
 0x49c   : > { %3455 = vst.msk [vmem:[%s9051_s11 + $0x28] sm:$0xff] %vm1576_vm8, %v7287_v26  ;;  %v7301_v22 = vpop.f32.mrb[20].mxu1  ;;  %v3330_v13 = vpop.f32.mrb[21].mxu0 }
 0x49d   : > { %3459 = vst.msk [vmem:[%s9051_s11 + $0xa8] sm:$0xff] %vm1576_vm8, %v7301_v22  ;;  %3454 = vst.msk [vmem:[%s9051_s11 + $0x20] sm:$0xff] %vm1576_vm8, %v3330_v13  ;;  %v3427_v21 = vpop.f32.mrb[21].mxu1  ;;  %v12536_v13 = vld [vmem:[#allocation122_spill] sm:$0xff] }
 0x49e   : > { %3458 = vst.msk [vmem:[%s9051_s11 + $0xa0] sm:$0xff] %vm1576_vm8, %v3427_v21 }
 0x49f   : > { %v7290_v36 = vpop.f32.mrb[22].mxu0 }
 0x4a0   : > { %3457 = vst.msk [vmem:[%s9051_s11 + $0x38] sm:$0xff] %vm1576_vm8, %v7290_v36  ;;  %v7304_v5 = vpop.f32.mrb[22].mxu1  ;;  %v3340_v61 = vpop.f32.mrb[23].mxu0 }
 0x4a1   : > { %3461 = vst.msk [vmem:[%s9051_s11 + $0xb8] sm:$0xff] %vm1576_vm8, %v7304_v5  ;;  %3456 = vst.msk [vmem:[%s9051_s11 + $0x30] sm:$0xff] %vm1576_vm8, %v3340_v61  ;;  %v3437_v4 = vpop.f32.mrb[23].mxu1  ;;  %v12537_v5 = vld [vmem:[#allocation127_spill] sm:$0xff] }
 0x4a2   : > { %3460 = vst.msk [vmem:[%s9051_s11 + $0xb0] sm:$0xff] %vm1576_vm8, %v3437_v4 }
 0x4b0   : > { %v7315_v7 = vpop.f32.mrb[44].mxu0 }
 0x4b1   : > { %v7329_v33 = vpop.f32.mrb[44].mxu1  ;;  %v3634_v20 = vpop.f32.mrb[45].mxu0  ;;  %v3763_v22 = vsel %vm9309_vm2, %v7315_v7, 0.0 }
 0x4b2   : > { %v3743_v40 = vpop.f32.mrb[45].mxu1  ;;  %v3762_v38 = vsel %vm9300_vm1, %v3634_v20, 0.0  ;;  %v3767_v21 = vsel %vm9309_vm2, %v7329_v33, 0.0  ;;  %v12538_v33 = vld [vmem:[#allocation130_spill] sm:$0xff] }
 0x4b3   : > { %v3766_v26 = vsel %vm9300_vm1, %v3743_v40, 0.0  ;;  %v12539_v20 = vld [vmem:[#allocation126_spill] sm:$0xff]  ;;  %v12540_v40 = vld [vmem:[#allocation36_spill] sm:$0xff] }
 0x4b4   : > { %v7318_v62 = vpop.f32.mrb[46].mxu0 }
 0x4b5   : > { %v7332_v18 = vpop.f32.mrb[46].mxu1  ;;  %v3644_v54 = vpop.f32.mrb[47].mxu0  ;;  %v3765_v4 = vsel %vm9327_vm5, %v7318_v62, 0.0  ;;  %v12541_v62 = vld [vmem:[#allocation110_spill] sm:$0xff] }
 0x4b6   : > { %v3753_v59 = vpop.f32.mrb[47].mxu1  ;;  %v3764_v36 = vsel %vm9314_vm3, %v3644_v54, 0.0  ;;  %v3769_v7 = vsel %vm9327_vm5, %v7332_v18, 0.0 }
 0x4b7   : > { %v3768_v61 = vsel %vm9314_vm3, %v3753_v59, 0.0 }
 0x4d1   : > { %v7351_v17 = vpop.f32.mrb[48].mxu0 }
 0x4d2   : > { %v7373_v48 = vpop.f32.mrb[48].mxu1  ;;  %v3890_v52 = vpop.f32.mrb[49].mxu0 }
 0x4d3   : > { %v3999_v28 = vpop.f32.mrb[49].mxu1  ;;  %7393 = vmatprep.mubr.msk.f32.mxu0 %vm1576_vm8, %v3890_v52 }
 0x4d4   : > { %7415 = vmatprep.mubr.msk.f32.mxu1 %vm1576_vm8, %v3999_v28  ;;  %7394 = vmatmul.mubr.msk.f32.vlgmr.msra.gmra.mrb[24].mxu0 %vm1576_vm8, %v7351_v17 }
 0x4d5   : > { %7416 = vmatmul.mubr.msk.f32.vlgmr.msra.gmra.mrb[24].mxu1 %vm1576_vm8, %v7373_v48  ;;  %7988 = vmatpush3.bf16.msra.mxu0 %v11483_v16  ;;  %v7354_v14 = vpop.f32.mrb[50].mxu0 }
 0x4d6   : > { %7996 = vmatpush3.bf16.msra.mxu1 %v11483_v16  ;;  %v7376_v19 = vpop.f32.mrb[50].mxu1  ;;  %v3900_v34 = vpop.f32.mrb[51].mxu0  ;;  %7990 = vmatprep.subr.bf16.mxu0 %v11489_v55 }
 0x4d7   : > { %v4009_v58 = vpop.f32.mrb[51].mxu1  ;;  %7396 = vmatprep.mubr.msk.f32.mxu0 %vm1576_vm8, %v3900_v34  ;;  %7998 = vmatprep.subr.bf16.mxu1 %v11489_v55 }
 0x4d8   : > { %7418 = vmatprep.mubr.msk.f32.mxu1 %vm1576_vm8, %v4009_v58  ;;  %7397 = vmatmul.mubr.msk.f32.gmra.mrb[26].mxu0 %vm1576_vm8, %v7354_v14 }
 0x4d9   : > { %7419 = vmatmul.mubr.msk.f32.gmra.mrb[26].mxu1 %vm1576_vm8, %v7376_v19  ;;  %7992 = vmatpush3.bf16.msra.mxu0 %v11489_v55 }
 0x4da   : > { %8000 = vmatpush3.bf16.msra.mxu1 %v11489_v55  ;;  %7429 = vmatprep.mubr.msk.f32.mxu0 %vm2323_vm4, %v3762_v38 }
 0x4db   : > { %7443 = vmatprep.mubr.msk.f32.mxu1 %vm2323_vm4, %v3766_v26  ;;  %8003 = vmatprep.subr.msk.bf16.mxu0 %vm9467_vm10, %v12536_v13 }
 0x4dc   : > { %8015 = vmatprep.subr.msk.bf16.mxu1 %vm9467_vm10, %v12537_v5  ;;  %7430 = vmatmul.mubr.msk.f32.vlgmr.msra.gmra.mrb[24].mxu0 %vm2323_vm4, %v3763_v22 }
 0x4dd   : > { %7444 = vmatmul.mubr.msk.f32.vlgmr.msra.gmra.mrb[24].mxu1 %vm2323_vm4, %v3767_v21  ;;  %7432 = vmatprep.mubr.msk.f32.mxu0 %vm2323_vm4, %v3764_v36 }
 0x4de   : > { %7446 = vmatprep.mubr.msk.f32.mxu1 %vm2323_vm4, %v3768_v61 }
 0x4e0   : > { %7433 = vmatmul.mubr.msk.f32.gmra.mrb[26].mxu0 %vm2323_vm4, %v3765_v4 }
 0x4e1   : > { %7447 = vmatmul.mubr.msk.f32.gmra.mrb[26].mxu1 %vm2323_vm4, %v3769_v7  ;;  %7457 = vmatprep.mubr.msk.f32.mxu0 %vm1576_vm8, %v12538_v33 }
 0x4e2   : > { %8006 = vmatpush3.bf16.xpose.msk.msra.mxu0 %vm9467_vm10, %v12536_v13  ;;  %7471 = vmatprep.mubr.msk.f32.mxu1 %vm1576_vm8, %v12539_v20 }
 0x4e3   : > { %8018 = vmatpush3.bf16.xpose.msk.msra.mxu1 %vm9467_vm10, %v12537_v5  ;;  %8009 = vmatprep.subr.msk.bf16.mxu0 %vm9467_vm10, %v11063_v29 }
 0x4e4   : > { %8021 = vmatprep.subr.msk.bf16.mxu1 %vm9467_vm10, %v11072_v60 }
 0x4ea   : > { %8012 = vmatpush3.bf16.xpose.msk.msra.mxu0 %vm9467_vm10, %v11063_v29 }
 0x4eb   : > { %8024 = vmatpush3.bf16.xpose.msk.msra.mxu1 %vm9467_vm10, %v11072_v60  ;;  %8027 = vmatprep.subr.msk.bf16.mxu0 %vm9467_vm10, %v10963_v45  ;;  %v776_v60 = vld [vmem:[%s9045_s15 + $0x78] sm:$0xff] }
 0x4ec   : > { %8063 = vmatprep.subr.msk.bf16.mxu1 %vm9467_vm10, %v10965_v23 }
 0x4f1   : > { %7458 = vmatmul.mubr.msk.f32.vlgmr.msra.gmra.mrb[52].mxu0 %vm1576_vm8, %v12540_v40 }
 0x4f2   : > { %7472 = vmatmul.mubr.msk.f32.vlgmr.msra.gmra.mrb[52].mxu1 %vm1576_vm8, %v12541_v62  ;;  %7460 = vmatprep.mubr.msk.f32.mxu0 %vm1576_vm8, %v11069_v47 }
 0x4f3   : > { %7474 = vmatprep.mubr.msk.f32.mxu1 %vm1576_vm8, %v11075_v41  ;;  %8030 = vmatpush3.bf16.xpose.msk.msra.mxu0 %vm9467_vm10, %v10963_v45  ;;  %v12542_v45 = vld [vmem:[#allocation113_spill] sm:$0xff] }
 0x4f4   : > { %8066 = vmatpush3.bf16.xpose.msk.msra.mxu1 %vm9467_vm10, %v10965_v23  ;;  %8033 = vmatprep.subr.msk.bf16.mxu0 %vm9467_vm10, %v10981_v12  ;;  %v12543_v23 = vld [vmem:[#allocation91_spill] sm:$0xff] }
 0x4f5   : > { %8069 = vmatprep.subr.msk.bf16.mxu1 %vm9467_vm10, %v10993_v44  ;;  %7461 = vmatmul.mubr.msk.f32.gmra.mrb[54].mxu0 %vm1576_vm8, %v10985_v11 }
 0x4f6   : > { %7475 = vmatmul.mubr.msk.f32.gmra.mrb[54].mxu1 %vm1576_vm8, %v10989_v31  ;;  %7501 = vmatprep.mubr.msk.f32.mxu0 %vm1576_vm8, %v12538_v33 }
 0x4f7   : > { %7531 = vmatprep.mubr.msk.f32.mxu1 %vm1576_vm8, %v12539_v20 }
 0x4fb   : > { %8036 = vmatpush3.bf16.xpose.msk.msra.mxu0 %vm9467_vm10, %v10981_v12  ;;  %v12544_v12 = vld [vmem:[#allocation114_spill] sm:$0xff] }
 0x4fc   : > { %8072 = vmatpush3.bf16.xpose.msk.msra.mxu1 %vm9467_vm10, %v10993_v44  ;;  %8039 = vmatprep.subr.msk.bf16.mxu0 %vm9467_vm10, %v11009_v63  ;;  %v12545_v44 = vld [vmem:[#allocation131_spill] sm:$0xff] }
 0x4fd   : > { %8075 = vmatprep.subr.msk.bf16.mxu1 %vm9467_vm10, %v11017_v1 }
 0x503   : > { %8042 = vmatpush3.bf16.xpose.msk.msra.mxu0 %vm9467_vm10, %v11009_v63  ;;  %v12546_v63 = vld [vmem:[#allocation22_spill] sm:$0xff] }
 0x504   : > { %8078 = vmatpush3.bf16.xpose.msk.msra.mxu1 %vm9467_vm10, %v11017_v1  ;;  %8045 = vmatprep.subr.msk.bf16.mxu0 %vm9467_vm10, %v12542_v45  ;;  %v12547_v1 = vld [vmem:[#allocation14_spill] sm:$0xff] }
 0x505   : > { %8081 = vmatprep.subr.msk.bf16.mxu1 %vm9467_vm10, %v12543_v23 }
 0x50b   : > { %8048 = vmatpush3.bf16.xpose.msk.msra.mxu0 %vm9467_vm10, %v12542_v45  ;;  %v8714_v45 = vld [vmem:[#allocation2 + $0x48] sm:$0xff] }
 0x50c   : > { %8084 = vmatpush3.bf16.xpose.msk.msra.mxu1 %vm9467_vm10, %v12543_v23  ;;  %8051 = vmatprep.subr.msk.bf16.mxu0 %vm9467_vm10, %v12544_v12  ;;  %v12549_v23 = vld [vmem:[#allocation108_spill] sm:$0xff] }
 0x50d   : > { %8087 = vmatprep.subr.msk.bf16.mxu1 %vm9467_vm10, %v12545_v44 }
 0x513   : > { %8054 = vmatpush3.bf16.xpose.msk.msra.mxu0 %vm9467_vm10, %v12544_v12  ;;  %v5810_v12 = vmul.f32 %v8714_v45, %v12549_v23  ;;  %v5954_v45 = vld [vmem:[%s9051_s11 + $0x10] sm:$0xff] (%p8864_p6) }
 0x514   : > { %8090 = vmatpush3.bf16.xpose.msk.msra.mxu1 %vm9467_vm10, %v12545_v44  ;;  %8057 = vmatprep.subr.msk.bf16.mxu0 %vm9467_vm10, %v12546_v63  ;;  %v8715_v44 = vld [vmem:[#allocation2] sm:$0xff]  ;;  %5955 = vst [vmem:[%s11845_s25 + $0x10] sm:$0xff] (%p8864_p6), %v5954_v45 }
 0x515   : > { %8093 = vmatprep.subr.msk.bf16.mxu1 %vm9467_vm10, %v12547_v1 }
 0x51b   : > { %8060 = vmatpush3.bf16.xpose.msk.msra.mxu0 %vm9467_vm10, %v12546_v63  ;;  %v5801_v63 = vmul.f32 %v8715_v44, %v12548_v42  ;;  %v5960_v44 = vld [vmem:[%s9051_s11 + $0x28] sm:$0xff] (%p8864_p6) }
 0x51c   : > { %8096 = vmatpush3.bf16.xpose.msk.msra.mxu1 %vm9467_vm10, %v12547_v1  ;;  %8098 = vmatprep.subr.bf16.mxu0 %v12515_v32  ;;  %5961 = vst [vmem:[%s11845_s25 + $0x28] sm:$0xff] (%p8864_p6), %v5960_v44 }
 0x51d   : > { %8122 = vmatprep.subr.bf16.mxu1 %v12515_v32 }
 0x522   : > { %7502 = vmatmul.mubr.msk.f32.vlgmr.msra.gmra.mrb[56].mxu0 %vm1576_vm8, %v12540_v40 }
 0x523   : > { %7532 = vmatmul.mubr.msk.f32.vlgmr.msra.gmra.mrb[56].mxu1 %vm1576_vm8, %v12541_v62  ;;  %7504 = vmatprep.mubr.msk.f32.mxu0 %vm1576_vm8, %v11069_v47  ;;  %v775_v47 = vld [vmem:[%s9045_s15 + $0x70] sm:$0xff] }
 0x524   : > { %7534 = vmatprep.mubr.msk.f32.mxu1 %vm1576_vm8, %v11075_v41  ;;  %8100 = vmatpush3.bf16.msra.mxu0 %v12515_v32  ;;  %v8149_v41 = vpack.c.bf16 %v776_v60, %v775_v47 }
 0x525   : > { %8124 = vmatpush3.bf16.msra.mxu1 %v12515_v32  ;;  %8102 = vmatprep.subr.bf16.mxu0 %v12516_v39 }
 0x526   : > { %7505 = vmatmul.mubr.msk.f32.gmra.mrb[58].mxu0 %vm1576_vm8, %v10985_v11  ;;  %8126 = vmatprep.subr.bf16.mxu1 %v12516_v39  ;;  %v773_v11 = vld [vmem:[%s9045_s15 + $0x60] sm:$0xff] }
 0x527   : > { %7535 = vmatmul.mubr.msk.f32.gmra.mrb[58].mxu1 %vm1576_vm8, %v10989_v31  ;;  %v774_v31 = vld [vmem:[%s9045_s15 + $0x68] sm:$0xff]  ;;  %5563 = vxpose.xlu0.b32.cont [13/16] (narrow) %v773_v11, 64 }
 0x528   : > { %8104 = vmatpush3.bf16.msra.mxu0 %v12516_v39  ;;  %v8145_v29 = vpack.c.bf16 %v774_v31, %v773_v11 }
 0x529   : > { %8128 = vmatpush3.bf16.msra.mxu1 %v12516_v39  ;;  %8106 = vmatprep.subr.bf16.mxu0 %v11299_v53 }
 0x52a   : > { %8130 = vmatprep.subr.bf16.mxu1 %v11299_v53 }
 0x52b   : > { %5564 = vxpose.xlu0.b32.cont [14/16] (narrow) %v774_v31, 64 }
 0x52c   : > { %8108 = vmatpush3.bf16.msra.mxu0 %v11299_v53 }
 0x52d   : > { %8132 = vmatpush3.bf16.msra.mxu1 %v11299_v53  ;;  %8110 = vmatprep.subr.bf16.mxu0 %v11305_v10 }
 0x52e   : > { %8134 = vmatprep.subr.bf16.mxu1 %v11305_v10 }
 0x52f   : > { %5565 = vxpose.xlu0.b32.cont [15/16] (narrow) %v775_v47, 64 }
 0x530   : > { %8112 = vmatpush3.bf16.msra.mxu0 %v11305_v10 }
 0x531   : > { %8136 = vmatpush3.bf16.msra.mxu1 %v11305_v10  ;;  %8114 = vmatprep.subr.bf16.mxu0 %v11483_v16 }
 0x532   : > { %8138 = vmatprep.subr.bf16.mxu1 %v11483_v16 }
 0x533   : > { %5566 = vxpose.xlu0.b32.end [16/16] (narrow) %v776_v60, 64 }
 0x534   : > { %8116 = vmatpush3.bf16.msra.mxu0 %v11483_v16 }
 0x535   : > { %8140 = vmatpush3.bf16.msra.mxu1 %v11483_v16  ;;  %8118 = vmatprep.subr.bf16.mxu0 %v11489_v55 }
 0x536   : > { %8142 = vmatprep.subr.bf16.mxu1 %v11489_v55 }
 0x538   : > { %8120 = vmatpush3.bf16.msra.mxu0 %v11489_v55 }
 0x539   : > { %8144 = vmatpush3.bf16.msra.mxu1 %v11489_v55  ;;  %8146 = vmatprep.subr.bf16.mxu0 %v8145_v29 }
 0x53a   : > { %8154 = vmatprep.subr.bf16.mxu1 %v8145_v29 }
 0x577   : > { %v5567_v7 = vpop.trf.xlu0 }
 0x5af   : > { %v7431_v8 = vpop.f32.mrb[24].mxu0 }
 0x5b0   : > { %4415 = vst.msk [vmem:[%s9051_s11 + $0x48] sm:$0xff] %vm1576_vm8, %v7431_v8  ;;  %v7445_v32 = vpop.f32.mrb[24].mxu1  ;;  %v4290_v39 = vpop.f32.mrb[25].mxu0 }
 0x5b1   : > { %4419 = vst.msk [vmem:[%s9051_s11 + $0xc8] sm:$0xff] %vm1576_vm8, %v7445_v32  ;;  %4414 = vst.msk [vmem:[%s9051_s11 + $0x40] sm:$0xff] %vm1576_vm8, %v4290_v39  ;;  %v4387_v53 = vpop.f32.mrb[25].mxu1  ;;  %v8717_v39 = vld [vmem:[#allocation2 + $0x18] sm:$0xff] }
 0x5b2   : > { %4418 = vst.msk [vmem:[%s9051_s11 + $0xc0] sm:$0xff] %vm1576_vm8, %v4387_v53  ;;  %v5804_v53 = vmul.f32 %v8717_v39, %v12548_v42  ;;  %v5982_v39 = vld [vmem:[%s9051_s11 + $0x80] sm:$0xff] (%p8864_p6) }
 0x5b3   : > { %v7434_v10 = vpop.f32.mrb[26].mxu0  ;;  %5983 = vst [vmem:[%s11845_s25 + $0x200] sm:$0xff] (%p8864_p6), %v5982_v39 }
 0x5b4   : > { %4417 = vst.msk [vmem:[%s9051_s11 + $0x58] sm:$0xff] %vm1576_vm8, %v7434_v10  ;;  %v7448_v16 = vpop.f32.mrb[26].mxu1  ;;  %v4300_v55 = vpop.f32.mrb[27].mxu0 }
 0x5b5   : > { %4421 = vst.msk [vmem:[%s9051_s11 + $0xd8] sm:$0xff] %vm1576_vm8, %v7448_v16  ;;  %4416 = vst.msk [vmem:[%s9051_s11 + $0x50] sm:$0xff] %vm1576_vm8, %v4300_v55  ;;  %v4397_v18 = vpop.f32.mrb[27].mxu1  ;;  %v8718_v16 = vld [vmem:[#allocation2 + $0x58] sm:$0xff] }
 0x5b6   : > { %4420 = vst.msk [vmem:[%s9051_s11 + $0xd0] sm:$0xff] %vm1576_vm8, %v4397_v18  ;;  %v5812_v55 = vmul.f32 %v8718_v16, %v12549_v23  ;;  %v8719_v18 = vld [vmem:[#allocation2 + $0x10] sm:$0xff]  ;;  %v5988_v16 = vld [vmem:[%s9051_s11 + $0x98] sm:$0xff] (%p8864_p6) }
 0x5b7   : > { %5989 = vst [vmem:[%s11845_s25 + $0x218] sm:$0xff] (%p8864_p6), %v5988_v16 }
 0x5c4   : > { %v7459_v54 = vpop.f32.mrb[52].mxu0 }
 0x5c5   : > { %v7473_v59 = vpop.f32.mrb[52].mxu1  ;;  %v4594_v17 = vpop.f32.mrb[53].mxu0  ;;  %v4723_v4 = vsel %vm9309_vm2, %v7459_v54, 0.0  ;;  %v5803_v54 = vmul.f32 %v8719_v18, %v12548_v42  ;;  %v5992_v18 = vld [vmem:[%s9051_s11 + $0xa8] sm:$0xff] (%p8864_p6) }
 0x5c6   : > { %v4703_v48 = vpop.f32.mrb[53].mxu1  ;;  %v4722_v5 = vsel %vm9300_vm1, %v4594_v17, 0.0  ;;  %v4727_v33 = vsel %vm9309_vm2, %v7473_v59, 0.0  ;;  %5993 = vst [vmem:[%s11845_s25 + $0x228] sm:$0xff] (%p8864_p6), %v5992_v18 }
 0x5c7   : > { %v4726_v61 = vsel %vm9300_vm1, %v4703_v48, 0.0 }
 0x5c8   : > { %v7462_v52 = vpop.f32.mrb[54].mxu0 }
 0x5c9   : > { %v7476_v28 = vpop.f32.mrb[54].mxu1  ;;  %v4604_v14 = vpop.f32.mrb[55].mxu0  ;;  %v4725_v6 = vsel %vm9327_vm5, %v7462_v52, 0.0  ;;  %v8720_v52 = vld [vmem:[#allocation2 + $0x50] sm:$0xff] }
 0x5ca   : > { %v4713_v19 = vpop.f32.mrb[55].mxu1  ;;  %v4724_v15 = vsel %vm9314_vm3, %v4604_v14, 0.0  ;;  %v4729_v40 = vsel %vm9327_vm5, %v7476_v28, 0.0  ;;  %v5811_v28 = vmul.f32 %v8720_v52, %v12549_v23  ;;  %v6002_v52 = vld [vmem:[%s9051_s11 + $0xd0] sm:$0xff] (%p8864_p6) }
 0x5cb   : > { %v4728_v20 = vsel %vm9314_vm3, %v4713_v19, 0.0  ;;  %6003 = vst [vmem:[%s11845_s25 + $0x250] sm:$0xff] (%p8864_p6), %v6002_v52 }
 0x5f5   : > { %v7503_v34 = vpop.f32.mrb[56].mxu0 }
 0x5f6   : > { %v7533_v58 = vpop.f32.mrb[56].mxu1  ;;  %v4870_v38 = vpop.f32.mrb[57].mxu0 }
 0x5f7   : > { %v4991_v26 = vpop.f32.mrb[57].mxu1  ;;  %7561 = vmatprep.mubr.msk.f32.mxu0 %vm5010_vm7, %v4870_v38  ;;  %v8721_v38 = vld [vmem:[#allocation2 + $0x28] sm:$0xff] }
 0x5f8   : > { %7591 = vmatprep.mubr.msk.f32.mxu1 %vm5010_vm7, %v4991_v26  ;;  %7562 = vmatmul.mubr.msk.f32.vlgmr.msra.gmra.mrb[28].mxu0 %vm5010_vm7, %v7503_v34  ;;  %v5806_v26 = vmul.f32 %v8721_v38, %v12548_v42 }
 0x5f9   : > { %7592 = vmatmul.mubr.msk.f32.vlgmr.msra.gmra.mrb[28].mxu1 %vm5010_vm7, %v7533_v58  ;;  %8148 = vmatpush3.bf16.msra.mxu0 %v8145_v29  ;;  %v7506_v22 = vpop.f32.mrb[58].mxu0 }
 0x5fa   : > { %8156 = vmatpush3.bf16.msra.mxu1 %v8145_v29  ;;  %v7536_v13 = vpop.f32.mrb[58].mxu1  ;;  %v4880_v21 = vpop.f32.mrb[59].mxu0  ;;  %8150 = vmatprep.subr.bf16.mxu0 %v8149_v41  ;;  %v8716_v29 = vld [vmem:[#allocation2 + $0x40] sm:$0xff] }
 0x5fb   : > { %v5001_v36 = vpop.f32.mrb[59].mxu1  ;;  %7564 = vmatprep.mubr.msk.f32.mxu0 %vm5010_vm7, %v4880_v21  ;;  %8158 = vmatprep.subr.bf16.mxu1 %v8149_v41  ;;  %v5809_v47 = vmul.f32 %v8716_v29, %v12549_v23  ;;  %v5970_v29 = vld [vmem:[%s9051_s11 + $0x50] sm:$0xff] (%p8864_p6) }
 0x5fc   : > { %7594 = vmatprep.mubr.msk.f32.mxu1 %vm5010_vm7, %v5001_v36  ;;  %7565 = vmatmul.mubr.msk.f32.gmra.mrb[30].mxu0 %vm5010_vm7, %v7506_v22  ;;  %v8723_v36 = vld [vmem:[#allocation2 + $0x20] sm:$0xff]  ;;  %5971 = vst [vmem:[%s11845_s25 + $0x50] sm:$0xff] (%p8864_p6), %v5970_v29 }
 0x5fd   : > { %7595 = vmatmul.mubr.msk.f32.gmra.mrb[30].mxu1 %vm5010_vm7, %v7536_v13  ;;  %8152 = vmatpush3.bf16.msra.mxu0 %v8149_v41  ;;  %v8722_v13 = vld [vmem:[#allocation2 + $0x68] sm:$0xff] }
 0x5fe   : > { %8160 = vmatpush3.bf16.msra.mxu1 %v8149_v41  ;;  %7605 = vmatprep.mubr.msk.f32.mxu0 %vm2323_vm4, %v4722_v5  ;;  %v5814_v21 = vmul.f32 %v8722_v13, %v12549_v23  ;;  %v5805_v5 = vmul.f32 %v8723_v36, %v12548_v42 }
 0x5ff   : > { %7619 = vmatprep.mubr.msk.f32.mxu1 %vm2323_vm4, %v4726_v61  ;;  %8162 = vmatprep.subr.bf16.mxu0 %v11112_v30 }
 0x600   : > { %8194 = vmatprep.subr.bf16.mxu1 %v11118_v27  ;;  %7606 = vmatmul.mubr.msk.f32.vlgmr.msra.gmra.mrb[28].mxu0 %vm2323_vm4, %v4723_v4 }
 0x601   : > { %7620 = vmatmul.mubr.msk.f32.vlgmr.msra.gmra.mrb[28].mxu1 %vm2323_vm4, %v4727_v33  ;;  %8164 = vmatpush3.bf16.msra.mxu0 %v11112_v30  ;;  %v5568_v30 = vpop.trf.xlu0  ;;  %v8724_v33 = vld [vmem:[#allocation2 + $0x60] sm:$0xff] }
 0x602   : > { %8196 = vmatpush3.bf16.msra.mxu1 %v11118_v27  ;;  %7608 = vmatprep.mubr.msk.f32.mxu0 %vm2323_vm4, %v4724_v15  ;;  %v5813_v15 = vmul.f32 %v8724_v33, %v12549_v23 }
 0x603   : > { %7622 = vmatprep.mubr.msk.f32.mxu1 %vm2323_vm4, %v4728_v20  ;;  %8166 = vmatprep.subr.bf16.mxu0 %v11128_v43 }
 0x604   : > { %8198 = vmatprep.subr.bf16.mxu1 %v11138_v0  ;;  %7609 = vmatmul.mubr.msk.f32.gmra.mrb[30].mxu0 %vm2323_vm4, %v4725_v6 }
 0x605   : > { %7623 = vmatmul.mubr.msk.f32.gmra.mrb[30].mxu1 %vm2323_vm4, %v4729_v40  ;;  %8168 = vmatpush3.bf16.msra.mxu0 %v11128_v43  ;;  %v5569_v27 = vpop.trf.xlu0 }
 0x606   : > { %8200 = vmatpush3.bf16.msra.mxu1 %v11138_v0  ;;  %8170 = vmatprep.subr.bf16.mxu0 %v11146_v49 }
 0x607   : > { %8202 = vmatprep.subr.bf16.mxu1 %v11152_v25  ;;  %7657 = vmatprep.mubr.f32.mxu0 %v5567_v7 }
 0x608   : > { %7701 = vmatprep.mubr.f32.mxu1 %v5567_v7 }
 0x609   : > { %8172 = vmatpush3.bf16.msra.mxu0 %v11146_v49  ;;  %v5570_v43 = vpop.trf.xlu0 }
 0x60a   : > { %8204 = vmatpush3.bf16.msra.mxu1 %v11152_v25  ;;  %8174 = vmatprep.subr.bf16.mxu0 %v11156_v35 }
 0x60b   : > { %8206 = vmatprep.subr.bf16.mxu1 %v11160_v50 }
 0x60d   : > { %8176 = vmatpush3.bf16.msra.mxu0 %v11156_v35  ;;  %v5571_v0 = vpop.trf.xlu0 }
 0x60e   : > { %8208 = vmatpush3.bf16.msra.mxu1 %v11160_v50  ;;  %8178 = vmatprep.subr.bf16.mxu0 %v11164_v3 }
 0x60f   : > { %8210 = vmatprep.subr.bf16.mxu1 %v11168_v57 }
 0x611   : > { %8180 = vmatpush3.bf16.msra.mxu0 %v11164_v3  ;;  %v5572_v49 = vpop.trf.xlu0 }
 0x612   : > { %8212 = vmatpush3.bf16.msra.mxu1 %v11168_v57  ;;  %8182 = vmatprep.subr.bf16.mxu0 %v11172_v51 }
 0x613   : > { %8214 = vmatprep.subr.bf16.mxu1 %v11176_v9 }
 0x615   : > { %8184 = vmatpush3.bf16.msra.mxu0 %v11172_v51  ;;  %v5573_v25 = vpop.trf.xlu0 }
 0x616   : > { %8216 = vmatpush3.bf16.msra.mxu1 %v11176_v9  ;;  %8186 = vmatprep.subr.bf16.mxu0 %v11180_v56 }
 0x617   : > { %8218 = vmatprep.subr.bf16.mxu1 %v11184_v37 }
 0x619   : > { %8188 = vmatpush3.bf16.msra.mxu0 %v11180_v56  ;;  %v5574_v35 = vpop.trf.xlu0 }
 0x61a   : > { %8220 = vmatpush3.bf16.msra.mxu1 %v11184_v37  ;;  %8190 = vmatprep.subr.bf16.mxu0 %v11187_v2 }
 0x61b   : > { %8222 = vmatprep.subr.bf16.mxu1 %v11189_v46 }
 0x61d   : > { %8192 = vmatpush3.bf16.msra.mxu0 %v11187_v2 }
 0x61e   : > { %8224 = vmatpush3.bf16.msra.mxu1 %v11189_v46  ;;  %v8713_v46 = vld [vmem:[#allocation2 + $0x8] sm:$0xff] }
 0x61f   : > { %v5802_v24 = vmul.f32 %v8713_v46, %v12548_v42 }
 0x620   : > { %7658 = vmatmul.mubr.f32.vlgmr.msra.gmra.mrb[60].mxu0 %v5568_v30 }
 0x621   : > { %7702 = vmatmul.mubr.f32.vlgmr.msra.gmra.mrb[60].mxu1 %v5568_v30  ;;  %7660 = vmatprep.mubr.f32.mxu0 %v5569_v27 }
 0x622   : > { %7704 = vmatprep.mubr.f32.mxu1 %v5569_v27  ;;  %v8725_v27 = vld [vmem:[#allocation2 + $0x38] sm:$0xff] }
 0x624   : > { %7661 = vmatmul.mubr.f32.gmra.mrb[62].mxu0 %v5570_v43 }
 0x625   : > { %7705 = vmatmul.mubr.f32.gmra.mrb[62].mxu1 %v5570_v43  ;;  %7663 = vmatprep.mubr.f32.mxu0 %v5571_v0  ;;  %v5808_v43 = vmul.f32 %v8725_v27, %v12548_v42 }
 0x626   : > { %7707 = vmatprep.mubr.f32.mxu1 %v5571_v0 }
 0x628   : > { %7664 = vmatmul.mubr.f32.gmra.mrb[64].mxu0 %v5572_v49 }
 0x629   : > { %7708 = vmatmul.mubr.f32.gmra.mrb[64].mxu1 %v5572_v49  ;;  %7666 = vmatprep.mubr.f32.mxu0 %v5573_v25  ;;  %v8726_v49 = vld [vmem:[#allocation2 + $0x78] sm:$0xff] }
 0x62a   : > { %7710 = vmatprep.mubr.f32.mxu1 %v5573_v25  ;;  %v5816_v25 = vmul.f32 %v8726_v49, %v12549_v23 }
 0x62c   : > { %7667 = vmatmul.mubr.f32.gmra.mrb[66].mxu0 %v5574_v35 }
 0x62d   : > { %7711 = vmatmul.mubr.f32.gmra.mrb[66].mxu1 %v5574_v35  ;;  %v8727_v35 = vld [vmem:[#allocation2 + $0x30] sm:$0xff] }
 0x6d3   : > { %v7607_v50 = vpop.f32.mrb[28].mxu0 }
 0x6d4   : > { %5408 = vst.msk [vmem:[%s9051_s11 + $0x68] sm:$0xff] %vm1576_vm8, %v7607_v50  ;;  %v7621_v3 = vpop.f32.mrb[28].mxu1  ;;  %v5283_v57 = vpop.f32.mrb[29].mxu0  ;;  %v5807_v50 = vmul.f32 %v8727_v35, %v12548_v42  ;;  %v5950_v42 = vld [vmem:[%s9051_s11] sm:$0xff] (%p8864_p6) }
 0x6d5   : > { %5412 = vst.msk [vmem:[%s9051_s11 + $0xe8] sm:$0xff] %vm1576_vm8, %v7621_v3  ;;  %5407 = vst.msk [vmem:[%s9051_s11 + $0x60] sm:$0xff] %vm1576_vm8, %v5283_v57  ;;  %v5380_v51 = vpop.f32.mrb[29].mxu1 }
 0x6d6   : > { %5411 = vst.msk [vmem:[%s9051_s11 + $0xe0] sm:$0xff] %vm1576_vm8, %v5380_v51  ;;  %5951 = vst [vmem:[%s11845_s25] sm:$0xff] (%p8864_p6), %v5950_v42 }
 0x6d7   : > { %v7610_v9 = vpop.f32.mrb[30].mxu0 }
 0x6d8   : > { %5410 = vst.msk [vmem:[%s9051_s11 + $0x78] sm:$0xff] %vm1576_vm8, %v7610_v9  ;;  %v7624_v56 = vpop.f32.mrb[30].mxu1  ;;  %v5293_v37 = vpop.f32.mrb[31].mxu0  ;;  %v8728_v9 = vld [vmem:[#allocation2 + $0x70] sm:$0xff] }
 0x6d9   : > { %5414 = vst.msk [vmem:[%s9051_s11 + $0xf8] sm:$0xff] %vm1576_vm8, %v7624_v56  ;;  %5409 = vst.msk [vmem:[%s9051_s11 + $0x70] sm:$0xff] %vm1576_vm8, %v5293_v37  ;;  %v5390_v2 = vpop.f32.mrb[31].mxu1  ;;  %v5815_v56 = vmul.f32 %v8728_v9, %v12549_v23  ;;  %v5956_v23 = vld [vmem:[%s9051_s11 + $0x18] sm:$0xff] (%p8864_p6) }
 0x6da   : > { %5413 = vst.msk [vmem:[%s9051_s11 + $0xf0] sm:$0xff] %vm1576_vm8, %v5390_v2  ;;  %5957 = vst [vmem:[%s11845_s25 + $0x18] sm:$0xff] (%p8864_p6), %v5956_v23 }
 0x6f3   : > { %v7659_v62 = vpop.f32.mrb[60].mxu0 }
 0x6f4   : > { %v5818_v1 = vadd.f32 %v7659_v62, %v5802_v24  ;;  %v7703_v11 = vpop.f32.mrb[60].mxu1  ;;  %v5649_v31 = vpop.f32.mrb[61].mxu0  ;;  %v5952_v62 = vld [vmem:[%s9051_s11 + $0x8] sm:$0xff] (%p8864_p6) }
 0x6f5   : > { %v5826_v60 = vadd.f32 %v7703_v11, %v5810_v12  ;;  %v5817_v41 = vadd.f32 %v5801_v63, %v5649_v31  ;;  %v5754_v8 = vpop.f32.mrb[61].mxu1  ;;  %v5958_v12 = vld [vmem:[%s9051_s11 + $0x20] sm:$0xff] (%p8864_p6)  ;;  %v5962_v63 = vld [vmem:[%s9051_s11 + $0x30] sm:$0xff] (%p8864_p6)  ;;  %v5968_v31 = vld [vmem:[%s9051_s11 + $0x48] sm:$0xff] (%p8864_p6)  ;;  %5953 = vst [vmem:[%s11845_s25 + $0x8] sm:$0xff] (%p8864_p6), %v5952_v62 }
 0x6f6   : > { %5834 = vst.msk [vmem:[#allocation2 + $0x8] sm:$0xff] %vm1576_vm8, %v5818_v1  ;;  %v5825_v32 = vadd.f32 %v5809_v47, %v5754_v8  ;;  %v5964_v1 = vld [vmem:[%s9051_s11 + $0x38] sm:$0xff] (%p8864_p6)  ;;  %v5966_v11 = vld [vmem:[%s9051_s11 + $0x40] sm:$0xff] (%p8864_p6)  ;;  %5959 = vst [vmem:[%s11845_s25 + $0x20] sm:$0xff] (%p8864_p6), %v5958_v12 }
 0x6f7   : > { %5842 = vst.msk [vmem:[#allocation2 + $0x48] sm:$0xff] %vm1576_vm8, %v5826_v60  ;;  %5833 = vst.msk [vmem:[#allocation2] sm:$0xff] %vm1576_vm8, %v5817_v41  ;;  %v7662_v10 = vpop.f32.mrb[62].mxu0  ;;  %v5972_v47 = vld [vmem:[%s9051_s11 + $0x58] sm:$0xff] (%p8864_p6)  ;;  %v5974_v60 = vld [vmem:[%s9051_s11 + $0x60] sm:$0xff] (%p8864_p6) }
 0x6f8   : > { %5841 = vst.msk [vmem:[#allocation2 + $0x40] sm:$0xff] %vm1576_vm8, %v5825_v32  ;;  %v5820_v59 = vadd.f32 %v7662_v10, %v5804_v53  ;;  %v7706_v17 = vpop.f32.mrb[62].mxu1  ;;  %v5659_v48 = vpop.f32.mrb[63].mxu0  ;;  %5963 = vst [vmem:[%s11845_s25 + $0x30] sm:$0xff] (%p8864_p6), %v5962_v63  ;;  %v5976_v41 = vld [vmem:[%s9051_s11 + $0x68] sm:$0xff] (%p8864_p6)  ;;  %v5978_v8 = vld [vmem:[%s9051_s11 + $0x70] sm:$0xff] (%p8864_p6) }
 0x6f9   : > { %v5828_v14 = vadd.f32 %v7706_v17, %v5812_v55  ;;  %v5819_v19 = vadd.f32 %v5803_v54, %v5659_v48  ;;  %v5764_v34 = vpop.f32.mrb[63].mxu1  ;;  %5965 = vst [vmem:[%s11845_s25 + $0x38] sm:$0xff] (%p8864_p6), %v5964_v1  ;;  %5967 = vst [vmem:[%s11845_s25 + $0x40] sm:$0xff] (%p8864_p6), %v5966_v11  ;;  %v5980_v32 = vld [vmem:[%s9051_s11 + $0x78] sm:$0xff] (%p8864_p6)  ;;  %v5984_v53 = vld [vmem:[%s9051_s11 + $0x88] sm:$0xff] (%p8864_p6) }
 0x6fa   : > { %5836 = vst.msk [vmem:[#allocation2 + $0x18] sm:$0xff] %vm1576_vm8, %v5820_v59  ;;  %v5827_v58 = vadd.f32 %v5811_v28, %v5764_v34  ;;  %5969 = vst [vmem:[%s11845_s25 + $0x48] sm:$0xff] (%p8864_p6), %v5968_v31  ;;  %v5986_v10 = vld [vmem:[%s9051_s11 + $0x90] sm:$0xff] (%p8864_p6)  ;;  %v5990_v55 = vld [vmem:[%s9051_s11 + $0xa0] sm:$0xff] (%p8864_p6) }
 0x6fb   : > { %5844 = vst.msk [vmem:[#allocation2 + $0x58] sm:$0xff] %vm1576_vm8, %v5828_v14  ;;  %5835 = vst.msk [vmem:[#allocation2 + $0x10] sm:$0xff] %vm1576_vm8, %v5819_v19  ;;  %v7665_v22 = vpop.f32.mrb[64].mxu0  ;;  %v5994_v54 = vld [vmem:[%s9051_s11 + $0xb0] sm:$0xff] (%p8864_p6)  ;;  %v5996_v59 = vld [vmem:[%s9051_s11 + $0xb8] sm:$0xff] (%p8864_p6) }
 0x6fc   : > { %5843 = vst.msk [vmem:[#allocation2 + $0x50] sm:$0xff] %vm1576_vm8, %v5827_v58  ;;  %v5822_v61 = vadd.f32 %v7665_v22, %v5806_v26  ;;  %v7709_v4 = vpop.f32.mrb[64].mxu1  ;;  %v5669_v7 = vpop.f32.mrb[65].mxu0  ;;  %5973 = vst [vmem:[%s11845_s25 + $0x58] sm:$0xff] (%p8864_p6), %v5972_v47  ;;  %v5998_v17 = vld [vmem:[%s9051_s11 + $0xc0] sm:$0xff] (%p8864_p6)  ;;  %v6000_v48 = vld [vmem:[%s9051_s11 + $0xc8] sm:$0xff] (%p8864_p6) }
 0x6fd   : > { %v5830_v20 = vadd.f32 %v7709_v4, %v5814_v21  ;;  %v5821_v6 = vadd.f32 %v5805_v5, %v5669_v7  ;;  %v5774_v40 = vpop.f32.mrb[65].mxu1  ;;  %5975 = vst [vmem:[%s11845_s25 + $0x60] sm:$0xff] (%p8864_p6), %v5974_v60  ;;  %5977 = vst [vmem:[%s11845_s25 + $0x68] sm:$0xff] (%p8864_p6), %v5976_v41  ;;  %v6004_v28 = vld [vmem:[%s9051_s11 + $0xd8] sm:$0xff] (%p8864_p6)  ;;  %v6006_v14 = vld [vmem:[%s9051_s11 + $0xe0] sm:$0xff] (%p8864_p6) }
 0x6fe   : > { %5838 = vst.msk [vmem:[#allocation2 + $0x28] sm:$0xff] %vm1576_vm8, %v5822_v61  ;;  %v5829_v30 = vadd.f32 %v5813_v15, %v5774_v40  ;;  %5855 = sbr.rel (!%p8864_p6) target bundleno = 1801 (0x709), region = 120  ;;  %5979 = vst [vmem:[%s11845_s25 + $0x70] sm:$0xff] (%p8864_p6), %v5978_v8  ;;  %v6008_v19 = vld [vmem:[%s9051_s11 + $0xe8] sm:$0xff] (%p8864_p6)  ;;  %v6010_v34 = vld [vmem:[%s9051_s11 + $0xf0] sm:$0xff] (%p8864_p6) }
 0x6ff   : > { %5846 = vst.msk [vmem:[#allocation2 + $0x68] sm:$0xff] %vm1576_vm8, %v5830_v20  ;;  %5837 = vst.msk [vmem:[#allocation2 + $0x20] sm:$0xff] %vm1576_vm8, %v5821_v6  ;;  %v7668_v0 = vpop.f32.mrb[66].mxu0  ;;  %v6012_v58 = vld [vmem:[%s9051_s11 + $0xf8] sm:$0xff] (%p8864_p6) }
 0x700   : > { %5845 = vst.msk [vmem:[#allocation2 + $0x60] sm:$0xff] %vm1576_vm8, %v5829_v30  ;;  %v5824_v3 = vadd.f32 %v7668_v0, %v5808_v43  ;;  %v7712_v57 = vpop.f32.mrb[66].mxu1  ;;  %v5679_v51 = vpop.f32.mrb[67].mxu0  ;;  %5981 = vst [vmem:[%s11845_s25 + $0x78] sm:$0xff] (%p8864_p6), %v5980_v32 }
 0x701   : > { %v5832_v37 = vadd.f32 %v7712_v57, %v5816_v25  ;;  %v5823_v2 = vadd.f32 %v5807_v50, %v5679_v51  ;;  %v5784_v46 = vpop.f32.mrb[67].mxu1  ;;  %5985 = vst [vmem:[%s11845_s25 + $0x208] sm:$0xff] (%p8864_p6), %v5984_v53  ;;  %5987 = vst [vmem:[%s11845_s25 + $0x210] sm:$0xff] (%p8864_p6), %v5986_v10 }
 0x702   : > { %5840 = vst.msk [vmem:[#allocation2 + $0x38] sm:$0xff] %vm1576_vm8, %v5824_v3  ;;  %v5831_v24 = vadd.f32 %v5815_v56, %v5784_v46  ;;  %5991 = vst [vmem:[%s11845_s25 + $0x220] sm:$0xff] (%p8864_p6), %v5990_v55 }
 0x703   : > { %5848 = vst.msk [vmem:[#allocation2 + $0x78] sm:$0xff] %vm1576_vm8, %v5832_v37  ;;  %5839 = vst.msk [vmem:[#allocation2 + $0x30] sm:$0xff] %vm1576_vm8, %v5823_v2 }
 0x704   : > { %5847 = vst.msk [vmem:[#allocation2 + $0x70] sm:$0xff] %vm1576_vm8, %v5831_v24  ;;  %5995 = vst [vmem:[%s11845_s25 + $0x230] sm:$0xff] (%p8864_p6), %v5994_v54 }
 0x705   : > { %5997 = vst [vmem:[%s11845_s25 + $0x238] sm:$0xff] %v5996_v59  ;;  %5999 = vst [vmem:[%s11845_s25 + $0x240] sm:$0xff] %v5998_v17 }
 0x706   : > { %6001 = vst [vmem:[%s11845_s25 + $0x248] sm:$0xff] %v6000_v48  ;;  %6005 = vst [vmem:[%s11845_s25 + $0x258] sm:$0xff] %v6004_v28 }
 0x707   : > { %6007 = vst [vmem:[%s11845_s25 + $0x260] sm:$0xff] %v6006_v14  ;;  %6009 = vst [vmem:[%s11845_s25 + $0x268] sm:$0xff] %v6008_v19 }
 0x708   : > { %6011 = vst [vmem:[%s11845_s25 + $0x270] sm:$0xff] %v6010_v34  ;;  %6013 = vst [vmem:[%s11845_s25 + $0x278] sm:$0xff] %v6012_v58 }
 0x709 PF: > { %s14_s21 = sadd.s32 1, %s8783_s21   ;;  %s12550_s15 = smov %s8763_s16 }
 0x70a   : > { %p11_p1 = scmp.ge.s32.totalorder %s14_s21, 10   ;;  %s12551_s16 = smov %s8872_s5 }
 0x70b   : > { %s12552_s17 = smov %s8775_s19  ;;  %s12553_s18 = smov %s8779_s20 }
 0x70c   : > { %s12554_s19 = smov %s12557_s22  ;;  %s12555_s20 = smov %s12561_s23 }
 0x70d   :  { %13 = sbr.rel (!%p11_p1) target bundleno = 4 (0x4), region = 203 }

</bundles_post_ra>
